<compile_context>
chip_gen: v7x
topology: tpu7x:2x2x1
jax: 0.10.0
libtpu: 0.0.40
codegen_flags: <defaults>
</compile_context>

<pallas_src>
import jax
import jax.numpy as jnp
from jax.experimental import pallas as pl
from jax.experimental.pallas import tpu as pltpu


LEAKY_SLOPE = 0.01  # torch.nn.functional.leaky_relu default negative_slope


def _leaky_relu(x):
    return jnp.where(x > 0, x, LEAKY_SLOPE * x)


def mlp2_kernel(xt_ref, w1_ref, b1_ref, w2_ref, b2_ref, w3_ref, b3_ref, o_ref):
    # xt_ref: (in_dim, tile) f32  -- batch on lanes
    # w1_ref: (hid_1, in_dim) bf16, b1_ref: (hid_1, 1) f32
    # w2_ref: (hid_2, hid_1) bf16, b2_ref: (hid_2, 1) f32
    # w3_ref: (hid_2, 1) f32,      b3_ref: (1, 1) f32 in SMEM
    x = xt_ref[...].astype(jnp.bfloat16)

    # fc1 on the MXU: (hid_1, in_dim) @ (in_dim, tile) -> (hid_1, tile), f32 acc.
    h = jnp.dot(w1_ref[...], x, preferred_element_type=jnp.float32)
    h = _leaky_relu(h + b1_ref[...])
    # dropout(p=0.0) is the identity -> no-op

    # fc2 on the MXU: (hid_2, hid_1) @ (hid_1, tile) -> (hid_2, tile), f32 acc.
    h = jnp.dot(w2_ref[...], h.astype(jnp.bfloat16), preferred_element_type=jnp.float32)
    h = _leaky_relu(h + b2_ref[...])

    # fc3 (out_features = 1): VPU multiply + sublane reduction instead of an N=1
    # MXU matmul; result is a lane-dense (1, tile) row.
    out = jnp.sum(h * w3_ref[...], axis=0, keepdims=True) + b3_ref[0, 0]
    o_ref[...] = out.astype(o_ref.dtype)


def mlp2_forward(x, w1, b1, w2, b2, w3, b3, *, batch_tile=256):
    """x: (B, in_dim) f32.  Params in PyTorch layout:
    w1 (hid_1, in_dim), b1 (hid_1,), w2 (hid_2, hid_1), b2 (hid_2,),
    w3 (1, hid_2), b3 (1,).  Returns (B, 1) f32."""
    B, in_dim = x.shape
    hid_1 = w1.shape[0]
    hid_2 = w2.shape[0]

    tile = min(batch_tile, B)
    assert B % tile == 0, "batch must be divisible by the batch tile"
    if B // tile > 1:
        assert tile % 128 == 0, "multi-step grids need 128-multiple lane tiles"
    grid = (B // tile,)

    # Layout / dtype plumbing done once in XLA outside the kernel.
    xt = x.T                                   # (in_dim, B), batch on lanes
    w1b = w1.astype(jnp.bfloat16)              # (hid_1, in_dim)
    w2b = w2.astype(jnp.bfloat16)              # (hid_2, hid_1)
    b1c = b1.reshape(hid_1, 1).astype(jnp.float32)
    b2c = b2.reshape(hid_2, 1).astype(jnp.float32)
    w3c = w3.reshape(hid_2, 1).astype(jnp.float32)
    b3c = b3.reshape(1, 1).astype(jnp.float32)

    flops = 2 * B * (in_dim * hid_1 + hid_1 * hid_2 + hid_2)
    bytes_accessed = (
        xt.size * 4 + w1b.size * 2 + w2b.size * 2
        + b1c.size * 4 + b2c.size * 4 + w3c.size * 4 + 4 + B * 4
    )

    out_row = pl.pallas_call(
        mlp2_kernel,
        out_shape=jax.ShapeDtypeStruct((1, B), jnp.float32),
        grid_spec=pltpu.PrefetchScalarGridSpec(
            num_scalar_prefetch=0,
            grid=grid,
            in_specs=[
                pl.BlockSpec((in_dim, tile), lambda i: (0, i)),    # x^T tile
                pl.BlockSpec((hid_1, in_dim), lambda i: (0, 0)),   # W1 (resident)
                pl.BlockSpec((hid_1, 1), lambda i: (0, 0)),        # b1
                pl.BlockSpec((hid_2, hid_1), lambda i: (0, 0)),    # W2 (resident)
                pl.BlockSpec((hid_2, 1), lambda i: (0, 0)),        # b2
                pl.BlockSpec((hid_2, 1), lambda i: (0, 0)),        # w3 column
                pl.BlockSpec(memory_space=pltpu.MemorySpace.SMEM), # b3 scalar
            ],
            out_specs=pl.BlockSpec((1, tile), lambda i: (0, i)),   # lane-dense out
        ),
        compiler_params=pltpu.CompilerParams(
            dimension_semantics=("parallel",),
        ),
        cost_estimate=pl.CostEstimate(
            flops=flops, transcendentals=0, bytes_accessed=bytes_accessed
        ),
    )(xt, w1b, b1c, w2b, b2c, w3c, b3c)

    return out_row.reshape(B, 1)


def weight_norm_effective(v, g):
    # torch.nn.utils.weight_norm with dim=None:
    #   w = g * v / ||v||_F   (g is a scalar, Frobenius norm over the whole tensor)
    return g * v / jnp.sqrt(jnp.sum(v * v))


def make_params(key, in_dim, hid_1, hid_2):
    """Deterministic init mimicking nn.Linear + weight_norm(dim=None), PyTorch layout."""
    keys = jax.random.split(key, 6)

    def linear_init(kw, kb, fan_in, fan_out):
        bound = 1.0 / jnp.sqrt(jnp.float32(fan_in))
        v = jax.random.uniform(kw, (fan_out, fan_in), jnp.float32, -bound, bound)
        b = jax.random.uniform(kb, (fan_out,), jnp.float32, -bound, bound)
        g = jnp.sqrt(jnp.sum(v * v))  # weight_norm init: effective weight == v
        return weight_norm_effective(v, g), b

    w1, b1 = linear_init(keys[0], keys[1], in_dim, hid_1)
    w2, b2 = linear_init(keys[2], keys[3], hid_1, hid_2)
    w3, b3 = linear_init(keys[4], keys[5], hid_2, 1)
    return w1, b1, w2, b2, w3, b3


def reference_forward_f32(x, w1, b1, w2, b2, w3, b3):
    h = _leaky_relu(x @ w1.T + b1)
    h = _leaky_relu(h @ w2.T + b2)
    return h @ w3.T + b3


def reference_forward_bf16(x, w1, b1, w2, b2, w3, b3):
    # Mirrors the kernel's bf16 matmul operands with f32 accumulation.
    h = jnp.dot(x.astype(jnp.bfloat16), w1.astype(jnp.bfloat16).T,
                preferred_element_type=jnp.float32) + b1
    h = _leaky_relu(h)
    h = jnp.dot(h.astype(jnp.bfloat16), w2.astype(jnp.bfloat16).T,
                preferred_element_type=jnp.float32) + b2
    h = _leaky_relu(h)
    return h @ w3.T + b3


if __name__ == "__main__":
    key = jax.random.PRNGKey(0)
    k_x, k_p = jax.random.split(key)

    # Shapes consistent with the module: hid_1 = hid_2 = 512; small batch/in_dim.
    B, in_dim, hid_1, hid_2 = 512, 32, 512, 512

    x = jax.random.normal(k_x, (B, in_dim), dtype=jnp.float32)
    params = make_params(k_p, in_dim, hid_1, hid_2)

    out = mlp2_forward(x, *params, batch_tile=256)   # grid of 2 parallel tiles
    out = jax.block_until_ready(out)
    assert out.shape == (B, 1)

    # Tight check vs. a reference using the same bf16 matmul operands.
    ref_bf16 = reference_forward_bf16(x, *params)
    assert jnp.allclose(out, ref_bf16, atol=1e-3, rtol=1e-3), "mismatch vs. bf16 reference"

    # Loose check vs. the pure-f32 module semantics (bf16 MXU operands).
    ref_f32 = reference_forward_f32(x, *params)
    assert jnp.allclose(out, ref_f32, atol=3e-2, rtol=3e-2), "mismatch vs. f32 reference"

    print("KERNEL_OK")
</pallas_src>

<mosaic_0001>
module attributes {stable_mosaic.version = 11 : i64} {
  func.func @mlp2_kernel(%arg0: i32, %arg1: memref<32x256xf32, #tpu.memory_space<vmem>>, %arg2: memref<512x32xbf16, #tpu.memory_space<vmem>>, %arg3: memref<512x1xf32, #tpu.memory_space<vmem>>, %arg4: memref<512x512xbf16, #tpu.memory_space<vmem>>, %arg5: memref<512x1xf32, #tpu.memory_space<vmem>>, %arg6: memref<512x1xf32, #tpu.memory_space<vmem>>, %arg7: memref<1x1xf32, #tpu.memory_space<smem>>, %arg8: memref<1x256xf32, #tpu.memory_space<vmem>>) attributes {dimension_semantics = [#tpu.dimension_semantics<parallel>], iteration_bounds = array<i64: 2>, scalar_prefetch = 0 : i64, scratch_operands = 0 : i64, tpu.core_type = #tpu.core_type<tc>, window_params = [{transform_indices = @transform_0, window_bounds = array<i64: 32, 256>}, {pipeline_mode = #tpu.pipeline_mode<synchronous>, transform_indices = @transform_1, window_bounds = array<i64: 512, 32>}, {pipeline_mode = #tpu.pipeline_mode<synchronous>, transform_indices = @transform_2, window_bounds = array<i64: 512, 1>}, {pipeline_mode = #tpu.pipeline_mode<synchronous>, transform_indices = @transform_3, window_bounds = array<i64: 512, 512>}, {pipeline_mode = #tpu.pipeline_mode<synchronous>, transform_indices = @transform_4, window_bounds = array<i64: 512, 1>}, {pipeline_mode = #tpu.pipeline_mode<synchronous>, transform_indices = @transform_5, window_bounds = array<i64: 512, 1>}, {transform_indices = @transform_6, window_bounds = array<i64: 1, 1>}, {transform_indices = @transform_7, window_bounds = array<i64: 1, 256>}]} {
    %c0 = arith.constant 0 : index
    %c0_0 = arith.constant 0 : index
    %0 = vector.load %arg1[%c0, %c0_0] : memref<32x256xf32, #tpu.memory_space<vmem>>, vector<32x256xf32>
    %1 = arith.truncf %0 : vector<32x256xf32> to vector<32x256xbf16>
    %c0_1 = arith.constant 0 : index
    %c0_2 = arith.constant 0 : index
    %2 = vector.load %arg2[%c0_1, %c0_2] : memref<512x32xbf16, #tpu.memory_space<vmem>>, vector<512x32xbf16>
    %cst = arith.constant dense<0.000000e+00> : vector<512x256xf32>
    %3 = tpu.matmul %2, %1, %cst {dimension_numbers = #tpu.dot_dimension_numbers<[1], [0], [0], [1], [0, 0, 1, 1], [], []>} : vector<512x32xbf16>, vector<32x256xbf16>, vector<512x256xf32> -> vector<512x256xf32>
    %c0_3 = arith.constant 0 : index
    %c0_4 = arith.constant 0 : index
    %4 = vector.load %arg3[%c0_3, %c0_4] : memref<512x1xf32, #tpu.memory_space<vmem>>, vector<512x1xf32>
    %5 = vector.broadcast %4 : vector<512x1xf32> to vector<512x256xf32>
    %6 = arith.addf %3, %5 : vector<512x256xf32>
    %cst_5 = arith.constant 0.000000e+00 : f32
    %7 = vector.broadcast %cst_5 : f32 to vector<512x256xf32>
    %8 = arith.cmpf ogt, %6, %7 : vector<512x256xf32>
    %cst_6 = arith.constant 0.00999999977 : f32
    %9 = vector.broadcast %cst_6 : f32 to vector<512x256xf32>
    %10 = arith.mulf %9, %6 : vector<512x256xf32>
    %11 = arith.select %8, %6, %10 : vector<512x256xi1>, vector<512x256xf32>
    %c0_7 = arith.constant 0 : index
    %c0_8 = arith.constant 0 : index
    %12 = vector.load %arg4[%c0_7, %c0_8] : memref<512x512xbf16, #tpu.memory_space<vmem>>, vector<512x512xbf16>
    %13 = arith.truncf %11 : vector<512x256xf32> to vector<512x256xbf16>
    %cst_9 = arith.constant dense<0.000000e+00> : vector<512x256xf32>
    %14 = tpu.matmul %12, %13, %cst_9 {dimension_numbers = #tpu.dot_dimension_numbers<[1], [0], [0], [1], [0, 0, 1, 1], [], []>} : vector<512x512xbf16>, vector<512x256xbf16>, vector<512x256xf32> -> vector<512x256xf32>
    %c0_10 = arith.constant 0 : index
    %c0_11 = arith.constant 0 : index
    %15 = vector.load %arg5[%c0_10, %c0_11] : memref<512x1xf32, #tpu.memory_space<vmem>>, vector<512x1xf32>
    %16 = vector.broadcast %15 : vector<512x1xf32> to vector<512x256xf32>
    %17 = arith.addf %14, %16 : vector<512x256xf32>
    %cst_12 = arith.constant 0.000000e+00 : f32
    %18 = vector.broadcast %cst_12 : f32 to vector<512x256xf32>
    %19 = arith.cmpf ogt, %17, %18 : vector<512x256xf32>
    %cst_13 = arith.constant 0.00999999977 : f32
    %20 = vector.broadcast %cst_13 : f32 to vector<512x256xf32>
    %21 = arith.mulf %20, %17 : vector<512x256xf32>
    %22 = arith.select %19, %17, %21 : vector<512x256xi1>, vector<512x256xf32>
    %c0_14 = arith.constant 0 : index
    %c0_15 = arith.constant 0 : index
    %23 = vector.load %arg6[%c0_14, %c0_15] : memref<512x1xf32, #tpu.memory_space<vmem>>, vector<512x1xf32>
    %24 = vector.broadcast %23 : vector<512x1xf32> to vector<512x256xf32>
    %25 = arith.mulf %22, %24 : vector<512x256xf32>
    %cst_16 = arith.constant dense<0.000000e+00> : vector<256xf32>
    %26 = vector.multi_reduction <add>, %25, %cst_16 [0] : vector<512x256xf32> to vector<256xf32>
    %27 = vector.shape_cast %26 : vector<256xf32> to vector<1x256xf32>
    %c0_17 = arith.constant 0 : index
    %c0_18 = arith.constant 0 : index
    %28 = memref.load %arg7[%c0_17, %c0_18] : memref<1x1xf32, #tpu.memory_space<smem>>
    %29 = vector.broadcast %28 : f32 to vector<1x256xf32>
    %30 = arith.addf %27, %29 : vector<1x256xf32>
    %c0_19 = arith.constant 0 : index
    %c0_20 = arith.constant 0 : index
    %31 = vector.load %arg8[%c0_19, %c0_20] : memref<1x256xf32, #tpu.memory_space<vmem>>, vector<1x256xf32>
    tpu.vector_store %arg8[%c0_19, %c0_20], %30 {strides = array<i32>} : memref<1x256xf32, #tpu.memory_space<vmem>>, vector<1x256xf32>,
    return
  }
  func.func @transform_0(%arg0: i32) -> (i32, i32) {
    %c0_i32 = arith.constant 0 : i32
    %c0_i32_0 = arith.constant 0 : i32
    return %c0_i32, %arg0 : i32, i32
  }
  func.func @transform_1(%arg0: i32) -> (i32, i32) {
    %c0_i32 = arith.constant 0 : i32
    %c0_i32_0 = arith.constant 0 : i32
    %c0_i32_1 = arith.constant 0 : i32
    return %c0_i32, %c0_i32_0 : i32, i32
  }
  func.func @transform_2(%arg0: i32) -> (i32, i32) {
    %c0_i32 = arith.constant 0 : i32
    %c0_i32_0 = arith.constant 0 : i32
    %c0_i32_1 = arith.constant 0 : i32
    return %c0_i32, %c0_i32_0 : i32, i32
  }
  func.func @transform_3(%arg0: i32) -> (i32, i32) {
    %c0_i32 = arith.constant 0 : i32
    %c0_i32_0 = arith.constant 0 : i32
    %c0_i32_1 = arith.constant 0 : i32
    return %c0_i32, %c0_i32_0 : i32, i32
  }
  func.func @transform_4(%arg0: i32) -> (i32, i32) {
    %c0_i32 = arith.constant 0 : i32
    %c0_i32_0 = arith.constant 0 : i32
    %c0_i32_1 = arith.constant 0 : i32
    return %c0_i32, %c0_i32_0 : i32, i32
  }
  func.func @transform_5(%arg0: i32) -> (i32, i32) {
    %c0_i32 = arith.constant 0 : i32
    %c0_i32_0 = arith.constant 0 : i32
    %c0_i32_1 = arith.constant 0 : i32
    return %c0_i32, %c0_i32_0 : i32, i32
  }
  func.func @transform_6(%arg0: i32) -> (i32, i32) {
    %c0_i32 = arith.constant 0 : i32
    %c0_i32_0 = arith.constant 0 : i32
    %c0_i32_1 = arith.constant 0 : i32
    return %c0_i32, %c0_i32_0 : i32, i32
  }
  func.func @transform_7(%arg0: i32) -> (i32, i32) {
    %c0_i32 = arith.constant 0 : i32
    %c0_i32_0 = arith.constant 0 : i32
    return %c0_i32, %arg0 : i32, i32
  }
}

</mosaic_0001>

<bundles_post_ra>
// kernel: tpu_custom_call.1
= control target key start
LH: loop header
LB: loop body
LE: loop exit
PB: predicated region body
PF: predicated region fallthrough
CT: control target
= control target key end

     0   :  { %s7692_s0 = inlined_call_operand.vmem [shape: f32[32,512], index: 0, kind: input, shape index: {}]   ;;  %s7693_s1 = inlined_call_operand.vmem [shape: bf16[512,32], index: 1, kind: input, shape index: {}]   ;;  %s7694_s2 = inlined_call_operand.vmem [shape: f32[512,1], index: 2, kind: input, shape index: {}]   ;;  %s7695_s3 = inlined_call_operand.vmem [shape: bf16[512,512], index: 3, kind: input, shape index: {}]   ;;  %s7696_s4 = inlined_call_operand.vmem [shape: f32[512,1], index: 4, kind: input, shape index: {}]   ;;  %s7697_s5 = inlined_call_operand.vmem [shape: f32[512,1], index: 5, kind: input, shape index: {}]   ;;  %s7698_s6 = inlined_call_operand.<no memory space> [shape: f32[1,1], index: 6, kind: input, shape index: {}]   ;;  %s7699_s7 = inlined_call_operand.hbm [shape: f32[1,512], index: 7, kind: output, shape index: {}]  }
   0x1   :  { %12 = sst [smem:[#allocation2]] %s7698_s6 }
   0x2   :  { %13 = vsyncpa [#allocation5], 0 }
   0x3   :  { %15 = vsyncpa [#allocation5 + $0x1], 0  ;;  %s5705_s26 = smov 0   ;;  %s5707_s27 = smov 0  }
   0x4   :  { %s5709_s28 = smov 0   ;;  %s5711_s29 = smov 0  }
   0x5 LB: > { %s4831_s6 = sadd.s32 4294967295, %s5657_s29   ;;  %s4832_s30 = sadd.s32 4294967294, %s5657_s29   ;;  %s5657_s29 = sphi %s5711_s29, %s7940_s29   ;;  %s5653_s28 = sphi %s5709_s28, %s7939_s28   ;;  %s5649_s27 = sphi %s5707_s27, %s7938_s27   ;;  %s5645_s26 = sphi %s5705_s26, %s7937_s26  }
   0x6   : > { %s5728_s8 = sadd.s32 1, %s5657_s29   ;;  %s28_s9 = sadd.s32 1, %s5653_s28 }
   0x7   : > { %s25_s10 = ssub.s32 %s5657_s29, %s5728_s8  ;;  %p35_p0 = scmp.ne.s32.totalorder %s5653_s28, %s5649_s27 }
   0x8   : > { %p26_p1 = scmp.eq.s32.totalorder %s25_s10, 0  ;;  %p36_p2 = scmp.eq.s32.totalorder %s5657_s29, 0 }
   0x9   : > { %p191_p3 = scmp.eq.s32.totalorder %s4831_s6, 1  ;;  %p196_p4 = scmp.ne.s32.totalorder %s5649_s27, %s5645_s26 }
   0xa   : > { %s5741_s11 = scalar_select %p26_p1, %s5653_s28, %s28_s9  }
   0xb   : > { %p37_p5 = por %p36_p2, %p35_p0  ;;  %p5743_p6 = por %p191_p3, %p35_p0 }
   0xc   : > { %p197_p7 = scmp.eq.s32.totalorder %s4832_s30, 1  ;;  %p4834_p9 = scmp.ge.s32.totalorder %s5657_s29, 2 }
   0xe   : > { %p5747_p8 = por %p197_p7, %p196_p4  ;;  %231 = sbr.rel (%p4834_p9) target bundleno = 29 (0x1d), region = 40 }
  0x15   : > { %234 = sbr.rel (!%p37_p5) target bundleno = 29 (0x1d), region = 44  ;;  %s236_s14 = sand.u32 (%p37_p5), 1, %s5653_s28  }
  0x16   : > { %s5038_s15 = sshll.u32 (%p37_p5), %s5657_s29, 4  ;;  %s4835_s16 = sshll.u32 (%p37_p5), %s236_s14, 6 }
  0x17   : > { %s241_s19 = scalar_lea.vmem (%p37_p5), %s7692_s0, %s5038_s15  ;;  %s238_s20 = scalar_lea.vmem (%p37_p5), [#allocation3], %s4835_s16 }
  0x18   : > { %v254_v0 = vld [vmem:[%s241_s19] sm:$0xff] (%p37_p5)  ;;  %v256_v1 = vld [vmem:[%s241_s19 + $0x8] sm:$0xff] (%p37_p5) }
  0x19   : > { %v258_v2 = vld [vmem:[%s241_s19 + $0x20] sm:$0xff] (%p37_p5)  ;;  %255 = vst [vmem:[%s238_s20] sm:$0xff] (%p37_p5), %v254_v0  ;;  %257 = vst [vmem:[%s238_s20 + $0x8] sm:$0xff] (%p37_p5), %v256_v1  ;;  %v260_v3 = vld [vmem:[%s241_s19 + $0x28] sm:$0xff] (%p37_p5) }
  0x1a   : > { %259 = vst [vmem:[%s238_s20 + $0x10] sm:$0xff] (%p37_p5), %v258_v2  ;;  %v262_v4 = vld [vmem:[%s241_s19 + $0x40] sm:$0xff] (%p37_p5)  ;;  %v264_v5 = vld [vmem:[%s241_s19 + $0x48] sm:$0xff] (%p37_p5)  ;;  %261 = vst [vmem:[%s238_s20 + $0x18] sm:$0xff] (%p37_p5), %v260_v3 }
  0x1b   : > { %263 = vst [vmem:[%s238_s20 + $0x20] sm:$0xff] (%p37_p5), %v262_v4  ;;  %265 = vst [vmem:[%s238_s20 + $0x28] sm:$0xff] (%p37_p5), %v264_v5  ;;  %v266_v6 = vld [vmem:[%s241_s19 + $0x60] sm:$0xff] (%p37_p5)  ;;  %v268_v7 = vld [vmem:[%s241_s19 + $0x68] sm:$0xff] (%p37_p5) }
  0x1c   : > { %267 = vst [vmem:[%s238_s20 + $0x30] sm:$0xff] %v266_v6  ;;  %269 = vst [vmem:[%s238_s20 + $0x38] sm:$0xff] %v268_v7 }
  0x1d PF: > { %p4838_p10 = scmp.ge.s32.totalorder %s5657_s29, 1  ;;  %p274_p11 = scmp.lt.s32.totalorder %s5657_s29, 3 }
  0x1f   : > { %p275_p12 = pnand %p4838_p10, %p274_p11 }
  0x21   : > { %278 = sbr.rel (%p275_p12) target bundleno = 1036 (0x40c), region = 67 }
  0x28   : > { %v393_v8 = vld [vmem:[%s7694_s2 + $0x10] sm:$0xff]  ;;  %v391_v9 = vld [vmem:[%s7694_s2] sm:$0xff]  ;;  %s5768_s25 = sand.u32 1, %s5649_s27   ;;  %v5659_v10 = vmov 0   ;;  %v394_v11 = vld [vmem:[%s7694_s2 + $0x18] sm:$0xff]  ;;  %vm935_vm0 = vcmask 261120  }
  0x29   : > { %5370 = vset.pattern.permute.xlu1 %v5659_v10  ;;  %5369 = vset.pattern.permute.xlu0 %v5659_v10  ;;  %s4839_s30 = sshll.u32 %s5768_s25, 6  ;;  %v392_v12 = vld [vmem:[%s7694_s2 + $0x8] sm:$0xff]  ;;  %v395_v25 = vld [vmem:[%s7694_s2 + $0x20] sm:$0xff]  ;;  %v398_v27 = vld [vmem:[%s7694_s2 + $0x38] sm:$0xff]  ;;  %s4725_s10 = sld [smem:[#allocation2]] }
  0x2a   : > { %467 = vperm.xlu1 %5370, %v393_v8   ;;  %457 = vperm.xlu0 %5369, %v391_v9   ;;  %s283_s16 = scalar_lea.vmem [#allocation3], %s4839_s30  ;;  %v396_v24 = vld [vmem:[%s7694_s2 + $0x28] sm:$0xff]  ;;  %v397_v28 = vld [vmem:[%s7694_s2 + $0x30] sm:$0xff]  ;;  %v5371_v29 = vld [vmem:[%s7693_s1] sm:$0xff]   ;;  %s4840_s14 = sshll.u32 %s5768_s25, 1 }
  0x2b   : > { %v316_v13 = vld [vmem:[%s283_s16 + $0x8] sm:$0xff]  ;;  %v318_v14 = vld [vmem:[%s283_s16 + $0x18] sm:$0xff]  ;;  %v315_v15 = vld [vmem:[%s283_s16] sm:$0xff]  ;;  %1064 = vmatprep.mubr.bf16.mxu0 %v5659_v10  ;;  %s5039_s15 = sshll.u32 %s4831_s6, 5  ;;  %s4753_s21 = scalar_lea.sflag [#allocation5], %s5768_s25 }
  0x2c   : > { %v324_v16 = vpack.c.bf16 %v318_v14, %v316_v13  ;;  %v317_v17 = vld [vmem:[%s283_s16 + $0x10] sm:$0xff]  ;;  %v320_v18 = vld [vmem:[%s283_s16 + $0x28] sm:$0xff]  ;;  %v322_v19 = vld [vmem:[%s283_s16 + $0x38] sm:$0xff]  ;;  %s7648_s20 = scalar_lea.hbm %s7699_s7, %s5039_s15  ;;  %s5661_s6 = smov [#allocation4]  }
  0x2d   : > { %v323_v20 = vpack.c.bf16 %v317_v17, %v315_v15  ;;  %v326_v21 = vpack.c.bf16 %v322_v19, %v320_v18  ;;  %v319_v22 = vld [vmem:[%s283_s16 + $0x20] sm:$0xff]  ;;  %v321_v23 = vld [vmem:[%s283_s16 + $0x30] sm:$0xff]  ;;  %v400_v30 = vld [vmem:[%s7694_s2 + $0x48] sm:$0xff]  ;;  %s311_s16 = scalar_lea.vmem [#allocation4], %s4840_s14  ;;  %s5599_s23 = sshll.u32 %s5661_s6, 4  ;;  %s5600_s23 = int_to_ptr.vmem [resolvable:$false] %s5599_s23 }
  0x2e   : > { %472 = vperm.xlu1 %5370, %v394_v11   ;;  %462 = vperm.xlu0 %5369, %v392_v12   ;;  %v325_v26 = vpack.c.bf16 %v321_v23, %v319_v22  ;;  %v399_v31 = vld [vmem:[%s7694_s2 + $0x40] sm:$0xff]  ;;  %v402_v32 = vld [vmem:[%s7694_s2 + $0x58] sm:$0xff]  ;;  %v401_v33 = vld [vmem:[%s7694_s2 + $0x50] sm:$0xff]  ;;  %s4767_s17 = sshll.u32 %s311_s16, 4  ;;  %s5601_s24 = scalar_lea.vmem %s5600_s23, 64  ;;  %s7650_s17 = int_to_ptr.vmem [resolvable:$true] %s4767_s17 }
  0x2f   : > { %1032 = vmatprep.subr.bf16.mxu0 %v324_v16  ;;  %v5372_v34 = vld [vmem:[%s7693_s1 + $0x8] sm:$0xff]   ;;  %v403_v36 = vld [vmem:[%s7694_s2 + $0x60] sm:$0xff]  ;;  %v406_v37 = vld [vmem:[%s7694_s2 + $0x78] sm:$0xff]  ;;  %s5595_s22 = scalar_lea.vmem %s7650_s17, 32  ;;  %p5602_p2 = scmp.lt.s32.totalorder %s7650_s17, %s5600_s23 }
  0x30   : > { %1033 = vmatpush1.bf16.msra.mxu0 %v323_v20  ;;  %v404_v35 = vld [vmem:[%s7694_s2 + $0x68] sm:$0xff]  ;;  %v405_v38 = vld [vmem:[%s7694_s2 + $0x70] sm:$0xff]  ;;  %v407_v41 = vld [vmem:[%s7694_s2 + $0x80] sm:$0xff]  ;;  %p5596_p13 = scmp.ne.s32.totalorder %s7650_s17, %s5595_s22  ;;  %p5603_p3 = scmp.lt.s32.totalorder %s5601_s24, %s5595_s22 }
  0x31   : > { %1034 = vmatprep.subr.bf16.mxu0 %v326_v21  ;;  %v5373_v39 = vld [vmem:[%s7693_s1 + $0x10] sm:$0xff]   ;;  %v408_v40 = vld [vmem:[%s7694_s2 + $0x88] sm:$0xff]  ;;  %v410_v42 = vld [vmem:[%s7694_s2 + $0x98] sm:$0xff] }
  0x32   : > { %482 = vperm.xlu1 %5370, %v396_v24   ;;  %477 = vperm.xlu0 %5369, %v395_v25   ;;  %v409_v43 = vld [vmem:[%s7694_s2 + $0x90] sm:$0xff]  ;;  %v5374_v44 = vld [vmem:[%s7693_s1 + $0x18] sm:$0xff]   ;;  %v412_v45 = vld [vmem:[%s7694_s2 + $0xa8] sm:$0xff]  ;;  %p5597_p0 = pnand %p5596_p13, %p5743_p6  ;;  %p5604_p4 = por %p5603_p3, %p5602_p2 }
  0x33   : > { %v411_v46 = vld [vmem:[%s7694_s2 + $0xa0] sm:$0xff]  ;;  %v414_v47 = vld [vmem:[%s7694_s2 + $0xb8] sm:$0xff]  ;;  %v413_v48 = vld [vmem:[%s7694_s2 + $0xb0] sm:$0xff] }
  0x34   : > { %1035 = vmatpush1.bf16.msra.mxu0 %v325_v26  ;;  %v5375_v49 = vld [vmem:[%s7693_s1 + $0x20] sm:$0xff]   ;;  %v416_v50 = vld [vmem:[%s7694_s2 + $0xc8] sm:$0xff]  ;;  %v418_v52 = vld [vmem:[%s7694_s2 + $0xd8] sm:$0xff]  ;;  %p5598_p1 = pneg %p5597_p0 }
  0x35   : > { %v415_v51 = vld [vmem:[%s7694_s2 + $0xc0] sm:$0xff]  ;;  %v417_v53 = vld [vmem:[%s7694_s2 + $0xd0] sm:$0xff]  ;;  %v5376_v54 = vld [vmem:[%s7693_s1 + $0x28] sm:$0xff]  }
  0x36   : > { %492 = vperm.xlu1 %5370, %v398_v27   ;;  %487 = vperm.xlu0 %5369, %v397_v28   ;;  %v420_v55 = vld [vmem:[%s7694_s2 + $0xe8] sm:$0xff]  ;;  %v419_v56 = vld [vmem:[%s7694_s2 + $0xe0] sm:$0xff]  ;;  %v422_v57 = vld [vmem:[%s7694_s2 + $0xf8] sm:$0xff]  ;;  %p5605_p5 = pnand %p5604_p4, %p5598_p1 }
  0x37   : > { %4873 = vmatmul.mubr.msk.bf16.vlgmr.msra.gmra.mrb[0].mxu0 %vm935_vm0, %v5371_v29  ;;  %v421_v58 = vld [vmem:[%s7694_s2 + $0xf0] sm:$0xff]  ;;  %v424_v60 = vld [vmem:[%s7694_s2 + $0x108] sm:$0xff]  ;;  %v423_v61 = vld [vmem:[%s7694_s2 + $0x100] sm:$0xff] }
  0x38   : > { %1074 = vmatprep.mubr.bf16.mxu0 %v5659_v10  ;;  %v5377_v59 = vld [vmem:[%s7693_s1 + $0x30] sm:$0xff]   ;;  %v426_v62 = vld [vmem:[%s7694_s2 + $0x118] sm:$0xff]  ;;  %v428_v1 = vld [vmem:[%s7694_s2 + $0x128] sm:$0xff] }
  0x39   : > { %v425_v63 = vld [vmem:[%s7694_s2 + $0x110] sm:$0xff]  ;;  %v5378_v0 = vld [vmem:[%s7693_s1 + $0x38] sm:$0xff]   ;;  %v427_v2 = vld [vmem:[%s7694_s2 + $0x120] sm:$0xff] }
  0x3a   : > { %502 = vperm.xlu1 %5370, %v400_v30   ;;  %497 = vperm.xlu0 %5369, %v399_v31   ;;  %v430_v3 = vld [vmem:[%s7694_s2 + $0x138] sm:$0xff]  ;;  %v429_v4 = vld [vmem:[%s7694_s2 + $0x130] sm:$0xff]  ;;  %v5379_v5 = vld [vmem:[%s7693_s1 + $0x40] sm:$0xff]  }
  0x3b   : > { %v432_v6 = vld [vmem:[%s7694_s2 + $0x148] sm:$0xff]  ;;  %v431_v7 = vld [vmem:[%s7694_s2 + $0x140] sm:$0xff]  ;;  %v434_v8 = vld [vmem:[%s7694_s2 + $0x158] sm:$0xff] }
  0x3c   : > { %v433_v9 = vld [vmem:[%s7694_s2 + $0x150] sm:$0xff]  ;;  %v5380_v11 = vld [vmem:[%s7693_s1 + $0x48] sm:$0xff]   ;;  %v435_v13 = vld [vmem:[%s7694_s2 + $0x160] sm:$0xff] }
  0x3d   : > { %v436_v12 = vld [vmem:[%s7694_s2 + $0x168] sm:$0xff]  ;;  %v438_v14 = vld [vmem:[%s7694_s2 + $0x178] sm:$0xff]  ;;  %v437_v15 = vld [vmem:[%s7694_s2 + $0x170] sm:$0xff] }
  0x3e   : > { %512 = vperm.xlu1 %5370, %v402_v32   ;;  %507 = vperm.xlu0 %5369, %v401_v33   ;;  %v5381_v16 = vld [vmem:[%s7693_s1 + $0x50] sm:$0xff]   ;;  %v440_v17 = vld [vmem:[%s7694_s2 + $0x188] sm:$0xff]  ;;  %v439_v18 = vld [vmem:[%s7694_s2 + $0x180] sm:$0xff] }
  0x3f   : > { %4874 = vmatmul.mubr.msk.bf16.gmra.mrb[4].mxu0 %vm935_vm0, %v5372_v34  ;;  %v442_v19 = vld [vmem:[%s7694_s2 + $0x198] sm:$0xff]  ;;  %v441_v20 = vld [vmem:[%s7694_s2 + $0x190] sm:$0xff]  ;;  %v444_v22 = vld [vmem:[%s7694_s2 + $0x1a8] sm:$0xff] }
  0x40   : > { %1084 = vmatprep.mubr.bf16.mxu0 %v5659_v10  ;;  %v5382_v21 = vld [vmem:[%s7693_s1 + $0x58] sm:$0xff]   ;;  %v443_v23 = vld [vmem:[%s7694_s2 + $0x1a0] sm:$0xff]  ;;  %v445_v25 = vld [vmem:[%s7694_s2 + $0x1b0] sm:$0xff] }
  0x41   : > { %v446_v24 = vld [vmem:[%s7694_s2 + $0x1b8] sm:$0xff]  ;;  %v5383_v26 = vld [vmem:[%s7693_s1 + $0x60] sm:$0xff]   ;;  %v448_v27 = vld [vmem:[%s7694_s2 + $0x1c8] sm:$0xff] }
  0x42   : > { %522 = vperm.xlu1 %5370, %v404_v35   ;;  %517 = vperm.xlu0 %5369, %v403_v36   ;;  %v447_v28 = vld [vmem:[%s7694_s2 + $0x1c0] sm:$0xff]  ;;  %v450_v29 = vld [vmem:[%s7694_s2 + $0x1d8] sm:$0xff]  ;;  %v449_v30 = vld [vmem:[%s7694_s2 + $0x1d0] sm:$0xff] }
  0x43   : > { %v5384_v31 = vld [vmem:[%s7693_s1 + $0x68] sm:$0xff]   ;;  %v451_v33 = vld [vmem:[%s7694_s2 + $0x1e0] sm:$0xff]  ;;  %v454_v34 = vld [vmem:[%s7694_s2 + $0x1f8] sm:$0xff] }
  0x44   : > { %v452_v32 = vld [vmem:[%s7694_s2 + $0x1e8] sm:$0xff]  ;;  %v453_v35 = vld [vmem:[%s7694_s2 + $0x1f0] sm:$0xff] }
  0x45   : > { %v5385_v36 = vld [vmem:[%s7693_s1 + $0x70] sm:$0xff]  }
  0x46   : > { %532 = vperm.xlu1 %5370, %v406_v37   ;;  %527 = vperm.xlu0 %5369, %v405_v38   ;;  %v1962_v37 = vld [vmem:[%s7696_s4 + $0x8] sm:$0xff]  ;;  %v1961_v38 = vld [vmem:[%s7696_s4] sm:$0xff] }
  0x47   : > { %4875 = vmatmul.mubr.msk.bf16.gmra.mrb[8].mxu0 %vm935_vm0, %v5373_v39 }
  0x48   : > { %1094 = vmatprep.mubr.bf16.mxu0 %v5659_v10 }
  0x4a   : > { %542 = vperm.xlu1 %5370, %v408_v40   ;;  %537 = vperm.xlu0 %5369, %v407_v41   ;;  %v1964_v41 = vld [vmem:[%s7696_s4 + $0x18] sm:$0xff] }
  0x4e   : > { %552 = vperm.xlu1 %5370, %v410_v42   ;;  %547 = vperm.xlu0 %5369, %v409_v43   ;;  %v1963_v42 = vld [vmem:[%s7696_s4 + $0x10] sm:$0xff]  ;;  %v5386_v43 = vld [vmem:[%s7693_s1 + $0x78] sm:$0xff]  }
  0x4f   : > { %4876 = vmatmul.mubr.msk.bf16.gmra.mrb[12].mxu0 %vm935_vm0, %v5374_v44 }
  0x50   : > { %1104 = vmatprep.mubr.bf16.mxu0 %v5659_v10 }
  0x52   : > { %562 = vperm.xlu1 %5370, %v412_v45   ;;  %557 = vperm.xlu0 %5369, %v411_v46   ;;  %v1966_v46 = vld [vmem:[%s7696_s4 + $0x28] sm:$0xff] }
  0x56   : > { %572 = vperm.xlu1 %5370, %v414_v47   ;;  %567 = vperm.xlu0 %5369, %v413_v48   ;;  %v1965_v47 = vld [vmem:[%s7696_s4 + $0x20] sm:$0xff] }
  0x57   : > { %4877 = vmatmul.mubr.msk.bf16.gmra.mrb[16].mxu0 %vm935_vm0, %v5375_v49 }
  0x58   : > { %1114 = vmatprep.mubr.bf16.mxu0 %v5659_v10 }
  0x5a   : > { %582 = vperm.xlu1 %5370, %v416_v50   ;;  %577 = vperm.xlu0 %5369, %v415_v51   ;;  %v1968_v50 = vld [vmem:[%s7696_s4 + $0x38] sm:$0xff]  ;;  %v1967_v51 = vld [vmem:[%s7696_s4 + $0x30] sm:$0xff] }
  0x5e   : > { %592 = vperm.xlu1 %5370, %v418_v52   ;;  %587 = vperm.xlu0 %5369, %v417_v53   ;;  %v5387_v52 = vld [vmem:[%s7693_s1 + $0x80] sm:$0xff]  }
  0x5f   : > { %4878 = vmatmul.mubr.msk.bf16.gmra.mrb[20].mxu0 %vm935_vm0, %v5376_v54 }
  0x60   : > { %1124 = vmatprep.mubr.bf16.mxu0 %v5659_v10 }
  0x62   : > { %602 = vperm.xlu1 %5370, %v420_v55   ;;  %597 = vperm.xlu0 %5369, %v419_v56   ;;  %v1970_v55 = vld [vmem:[%s7696_s4 + $0x48] sm:$0xff]  ;;  %v1969_v56 = vld [vmem:[%s7696_s4 + $0x40] sm:$0xff] }
  0x66   : > { %612 = vperm.xlu1 %5370, %v422_v57   ;;  %607 = vperm.xlu0 %5369, %v421_v58  }
  0x67   : > { %4879 = vmatmul.mubr.msk.bf16.gmra.mrb[24].mxu0 %vm935_vm0, %v5377_v59  ;;  %v1972_v59 = vld [vmem:[%s7696_s4 + $0x58] sm:$0xff] }
  0x68   : > { %1134 = vmatprep.mubr.bf16.mxu0 %v5659_v10 }
  0x6a   : > { %622 = vperm.xlu1 %5370, %v424_v60   ;;  %617 = vperm.xlu0 %5369, %v423_v61   ;;  %v1971_v60 = vld [vmem:[%s7696_s4 + $0x50] sm:$0xff]  ;;  %v5388_v61 = vld [vmem:[%s7693_s1 + $0x88] sm:$0xff]  }
  0x6e   : > { %632 = vperm.xlu1 %5370, %v426_v62   ;;  %627 = vperm.xlu0 %5369, %v425_v63  }
  0x6f   : > { %4880 = vmatmul.mubr.msk.bf16.gmra.mrb[28].mxu0 %vm935_vm0, %v5378_v0  ;;  %v1974_v0 = vld [vmem:[%s7696_s4 + $0x68] sm:$0xff] }
  0x70   : > { %1144 = vmatprep.mubr.bf16.mxu0 %v5659_v10 }
  0x72   : > { %642 = vperm.xlu1 %5370, %v428_v1   ;;  %637 = vperm.xlu0 %5369, %v427_v2   ;;  %v1973_v1 = vld [vmem:[%s7696_s4 + $0x60] sm:$0xff] }
  0x76   : > { %652 = vperm.xlu1 %5370, %v430_v3   ;;  %647 = vperm.xlu0 %5369, %v429_v4   ;;  %v1976_v4 = vld [vmem:[%s7696_s4 + $0x78] sm:$0xff] }
  0x77   : > { %4881 = vmatmul.mubr.msk.bf16.gmra.mrb[32].mxu0 %vm935_vm0, %v5379_v5  ;;  %v1975_v5 = vld [vmem:[%s7696_s4 + $0x70] sm:$0xff] }
  0x78   : > { %1154 = vmatprep.mubr.bf16.mxu0 %v5659_v10 }
  0x7a   : > { %662 = vperm.xlu1 %5370, %v432_v6   ;;  %657 = vperm.xlu0 %5369, %v431_v7   ;;  %v5389_v6 = vld [vmem:[%s7693_s1 + $0x90] sm:$0xff]  }
  0x7e   : > { %672 = vperm.xlu1 %5370, %v434_v8   ;;  %667 = vperm.xlu0 %5369, %v433_v9   ;;  %v1978_v9 = vld [vmem:[%s7696_s4 + $0x88] sm:$0xff] }
  0x7f   : > { %4882 = vmatmul.mubr.msk.bf16.gmra.mrb[36].mxu0 %vm935_vm0, %v5380_v11  ;;  %v1977_v11 = vld [vmem:[%s7696_s4 + $0x80] sm:$0xff] }
  0x80   : > { %1164 = vmatprep.mubr.bf16.mxu0 %v5659_v10 }
  0x82   : > { %682 = vperm.xlu1 %5370, %v436_v12   ;;  %677 = vperm.xlu0 %5369, %v435_v13  }
  0x86   : > { %692 = vperm.xlu1 %5370, %v438_v14   ;;  %687 = vperm.xlu0 %5369, %v437_v15   ;;  %v1980_v14 = vld [vmem:[%s7696_s4 + $0x98] sm:$0xff]  ;;  %v1979_v15 = vld [vmem:[%s7696_s4 + $0x90] sm:$0xff] }
  0x87   : > { %4883 = vmatmul.mubr.msk.bf16.gmra.mrb[40].mxu0 %vm935_vm0, %v5381_v16  ;;  %v5390_v16 = vld [vmem:[%s7693_s1 + $0x98] sm:$0xff]  }
  0x88   : > { %1174 = vmatprep.mubr.bf16.mxu0 %v5659_v10 }
  0x8a   : > { %702 = vperm.xlu1 %5370, %v440_v17   ;;  %697 = vperm.xlu0 %5369, %v439_v18  }
  0x8e   : > { %712 = vperm.xlu1 %5370, %v442_v19   ;;  %707 = vperm.xlu0 %5369, %v441_v20   ;;  %v1982_v19 = vld [vmem:[%s7696_s4 + $0xa8] sm:$0xff]  ;;  %v1981_v20 = vld [vmem:[%s7696_s4 + $0xa0] sm:$0xff] }
  0x8f   : > { %4884 = vmatmul.mubr.msk.bf16.gmra.mrb[44].mxu0 %vm935_vm0, %v5382_v21 }
  0x90   : > { %1184 = vmatprep.mubr.bf16.mxu0 %v5659_v10 }
  0x92   : > { %722 = vperm.xlu1 %5370, %v444_v22   ;;  %717 = vperm.xlu0 %5369, %v443_v23   ;;  %v1984_v23 = vld [vmem:[%s7696_s4 + $0xb8] sm:$0xff] }
  0x96   : > { %732 = vperm.xlu1 %5370, %v446_v24   ;;  %727 = vperm.xlu0 %5369, %v445_v25   ;;  %v1983_v24 = vld [vmem:[%s7696_s4 + $0xb0] sm:$0xff]  ;;  %v5391_v25 = vld [vmem:[%s7693_s1 + $0xa0] sm:$0xff]  }
  0x97   : > { %4885 = vmatmul.mubr.msk.bf16.gmra.mrb[48].mxu0 %vm935_vm0, %v5383_v26 }
  0x98   : > { %1194 = vmatprep.mubr.bf16.mxu0 %v5659_v10 }
  0x9a   : > { %742 = vperm.xlu1 %5370, %v448_v27   ;;  %737 = vperm.xlu0 %5369, %v447_v28   ;;  %v1986_v28 = vld [vmem:[%s7696_s4 + $0xc8] sm:$0xff] }
  0x9e   : > { %752 = vperm.xlu1 %5370, %v450_v29   ;;  %747 = vperm.xlu0 %5369, %v449_v30   ;;  %v1985_v29 = vld [vmem:[%s7696_s4 + $0xc0] sm:$0xff] }
  0x9f   : > { %4886 = vmatmul.mubr.msk.bf16.gmra.mrb[52].mxu0 %vm935_vm0, %v5384_v31  ;;  %v1988_v31 = vld [vmem:[%s7696_s4 + $0xd8] sm:$0xff] }
  0xa0   : > { %1204 = vmatprep.mubr.bf16.mxu0 %v5659_v10 }
  0xa2   : > { %762 = vperm.xlu1 %5370, %v452_v32   ;;  %757 = vperm.xlu0 %5369, %v451_v33   ;;  %v1987_v32 = vld [vmem:[%s7696_s4 + $0xd0] sm:$0xff]  ;;  %v5392_v33 = vld [vmem:[%s7693_s1 + $0xa8] sm:$0xff]  }
  0xa6   : > { %772 = vperm.xlu1 %5370, %v454_v34   ;;  %767 = vperm.xlu0 %5369, %v453_v35   ;;  %v1990_v35 = vld [vmem:[%s7696_s4 + $0xe8] sm:$0xff] }
  0xa7   : > { %4887 = vmatmul.mubr.msk.bf16.gmra.mrb[56].mxu0 %vm935_vm0, %v5385_v36  ;;  %v1989_v36 = vld [vmem:[%s7696_s4 + $0xe0] sm:$0xff] }
  0xa8   : > { %1214 = vmatprep.mubr.bf16.mxu0 %v5659_v10 }
  0xa9   : > { %v6041_v39 = vpop.permute.xlu1 %467  ;;  %v6043_v40 = vpop.permute.xlu0 %457 }
  0xaa   : > { %2032 = vperm.xlu1 %5370, %v1962_v37   ;;  %2027 = vperm.xlu0 %5369, %v1961_v38  }
  0xad   : > { %v6054_v44 = vpop.permute.xlu1 %472  ;;  %v6056_v45 = vpop.permute.xlu0 %462 }
  0xae   : > { %2042 = vperm.xlu1 %5370, %v1964_v41   ;;  %2037 = vperm.xlu0 %5369, %v1963_v42   ;;  %v1992_v41 = vld [vmem:[%s7696_s4 + $0xf8] sm:$0xff]  ;;  %v1991_v42 = vld [vmem:[%s7696_s4 + $0xf0] sm:$0xff] }
  0xaf   : > { %4888 = vmatmul.mubr.msk.bf16.gmra.mrb[60].mxu0 %vm935_vm0, %v5386_v43  ;;  %v5393_v43 = vld [vmem:[%s7693_s1 + $0xb0] sm:$0xff]  }
  0xb0   : > { %1224 = vmatprep.mubr.bf16.mxu0 %v5659_v10 }
  0xb1   : > { %v6066_v48 = vpop.permute.xlu1 %482  ;;  %v6068_v49 = vpop.permute.xlu0 %477 }
  0xb2   : > { %2052 = vperm.xlu1 %5370, %v1966_v46   ;;  %2047 = vperm.xlu0 %5369, %v1965_v47   ;;  %v1994_v47 = vld [vmem:[%s7696_s4 + $0x108] sm:$0xff] }
  0xb5   : > { %v6079_v53 = vpop.permute.xlu1 %492  ;;  %v6081_v54 = vpop.permute.xlu0 %487 }
  0xb6   : > { %2062 = vperm.xlu1 %5370, %v1968_v50   ;;  %2057 = vperm.xlu0 %5369, %v1967_v51   ;;  %v1993_v50 = vld [vmem:[%s7696_s4 + $0x100] sm:$0xff] }
  0xb7   : > { %4889 = vmatmul.mubr.msk.bf16.gmra.mrb[64].mxu0 %vm935_vm0, %v5387_v52  ;;  %v1996_v52 = vld [vmem:[%s7696_s4 + $0x118] sm:$0xff] }
  0xb8   : > { %1234 = vmatprep.mubr.bf16.mxu0 %v5659_v10 }
  0xb9   : > { %v6091_v57 = vpop.permute.xlu1 %502  ;;  %v6093_v58 = vpop.permute.xlu0 %497 }
  0xba   : > { %2072 = vperm.xlu1 %5370, %v1970_v55   ;;  %2067 = vperm.xlu0 %5369, %v1969_v56   ;;  %v1995_v55 = vld [vmem:[%s7696_s4 + $0x110] sm:$0xff]  ;;  %v5394_v56 = vld [vmem:[%s7693_s1 + $0xb8] sm:$0xff]  }
  0xbd   : > { %v6104_v62 = vpop.permute.xlu1 %512  ;;  %v6106_v63 = vpop.permute.xlu0 %507 }
  0xbe   : > { %2082 = vperm.xlu1 %5370, %v1972_v59   ;;  %2077 = vperm.xlu0 %5369, %v1971_v60  }
  0xbf   : > { %4890 = vmatmul.mubr.msk.bf16.gmra.mrb[68].mxu0 %vm935_vm0, %v5388_v61  ;;  %v1998_v61 = vld [vmem:[%s7696_s4 + $0x128] sm:$0xff] }
  0xc0   : > { %1244 = vmatprep.mubr.bf16.mxu0 %v5659_v10 }
  0xc1   : > { %v6116_v2 = vpop.permute.xlu1 %522  ;;  %v6118_v3 = vpop.permute.xlu0 %517 }
  0xc2   : > { %2092 = vperm.xlu1 %5370, %v1974_v0   ;;  %2087 = vperm.xlu0 %5369, %v1973_v1   ;;  %v1997_v0 = vld [vmem:[%s7696_s4 + $0x120] sm:$0xff] }
  0xc5   : > { %v6129_v7 = vpop.permute.xlu1 %532  ;;  %v6131_v8 = vpop.permute.xlu0 %527 }
  0xc6   : > { %2102 = vperm.xlu1 %5370, %v1976_v4   ;;  %2097 = vperm.xlu0 %5369, %v1975_v5   ;;  %v2000_v4 = vld [vmem:[%s7696_s4 + $0x138] sm:$0xff]  ;;  %v1999_v5 = vld [vmem:[%s7696_s4 + $0x130] sm:$0xff] }
  0xc7   : > { %4891 = vmatmul.mubr.msk.bf16.gmra.mrb[72].mxu0 %vm935_vm0, %v5389_v6  ;;  %v5395_v6 = vld [vmem:[%s7693_s1 + $0xc0] sm:$0xff]  }
  0xc8   : > { %1254 = vmatprep.mubr.bf16.mxu0 %v5659_v10 }
  0xc9   : > { %v6141_v12 = vpop.permute.xlu1 %542  ;;  %v6143_v13 = vpop.permute.xlu0 %537 }
  0xca   : > { %2112 = vperm.xlu1 %5370, %v1978_v9   ;;  %2107 = vperm.xlu0 %5369, %v1977_v11   ;;  %v2002_v11 = vld [vmem:[%s7696_s4 + $0x148] sm:$0xff] }
  0xcd   : > { %v6154_v17 = vpop.permute.xlu1 %552  ;;  %v6156_v18 = vpop.permute.xlu0 %547 }
  0xce   : > { %2122 = vperm.xlu1 %5370, %v1980_v14   ;;  %2117 = vperm.xlu0 %5369, %v1979_v15   ;;  %v2001_v14 = vld [vmem:[%s7696_s4 + $0x140] sm:$0xff] }
  0xcf   : > { %4892 = vmatmul.mubr.msk.bf16.gmra.mrb[76].mxu0 %vm935_vm0, %v5390_v16 }
  0xd0   : > { %1264 = vmatprep.mubr.bf16.mxu0 %v5659_v10 }
  0xd1   : > { %v6166_v21 = vpop.permute.xlu1 %562  ;;  %v6168_v22 = vpop.permute.xlu0 %557 }
  0xd2   : > { %2132 = vperm.xlu1 %5370, %v1982_v19   ;;  %2127 = vperm.xlu0 %5369, %v1981_v20   ;;  %v2004_v19 = vld [vmem:[%s7696_s4 + $0x158] sm:$0xff]  ;;  %v2003_v20 = vld [vmem:[%s7696_s4 + $0x150] sm:$0xff] }
  0xd5   : > { %v6179_v26 = vpop.permute.xlu1 %572  ;;  %v6181_v27 = vpop.permute.xlu0 %567 }
  0xd6   : > { %2142 = vperm.xlu1 %5370, %v1984_v23   ;;  %2137 = vperm.xlu0 %5369, %v1983_v24   ;;  %v5396_v23 = vld [vmem:[%s7693_s1 + $0xc8] sm:$0xff]  }
  0xd7   : > { %4893 = vmatmul.mubr.msk.bf16.gmra.mrb[80].mxu0 %vm935_vm0, %v5391_v25  ;;  %v2006_v25 = vld [vmem:[%s7696_s4 + $0x168] sm:$0xff] }
  0xd8   : > { %1274 = vmatprep.mubr.bf16.mxu0 %v5659_v10 }
  0xd9   : > { %v6191_v30 = vpop.permute.xlu1 %582  ;;  %v6202_v34 = vpop.permute.xlu0 %577 }
  0xda   : > { %2152 = vperm.xlu1 %5370, %v1986_v28   ;;  %2147 = vperm.xlu0 %5369, %v1985_v29   ;;  %v2005_v28 = vld [vmem:[%s7696_s4 + $0x160] sm:$0xff] }
  0xdd   : > { %v6212_v37 = vpop.permute.xlu1 %592  ;;  %v6214_v38 = vpop.permute.xlu0 %587 }
  0xde   : > { %2162 = vperm.xlu1 %5370, %v1988_v31   ;;  %2157 = vperm.xlu0 %5369, %v1987_v32   ;;  %v2008_v31 = vld [vmem:[%s7696_s4 + $0x178] sm:$0xff]  ;;  %v2007_v32 = vld [vmem:[%s7696_s4 + $0x170] sm:$0xff] }
  0xdf   : > { %4894 = vmatmul.mubr.msk.bf16.gmra.mrb[84].mxu0 %vm935_vm0, %v5392_v33  ;;  %v5397_v33 = vld [vmem:[%s7693_s1 + $0xd0] sm:$0xff]  }
  0xe0   : > { %1284 = vmatprep.mubr.bf16.mxu0 %v5659_v10 }
  0xe1   : > { %v6225_v46 = vpop.permute.xlu1 %602  ;;  %v6234_v51 = vpop.permute.xlu0 %597 }
  0xe2   : > { %2172 = vperm.xlu1 %5370, %v1990_v35   ;;  %2167 = vperm.xlu0 %5369, %v1989_v36  }
  0xe5   : > { %v6246_v59 = vpop.permute.xlu1 %612  ;;  %v6248_v60 = vpop.permute.xlu0 %607 }
  0xe6   : > { %2182 = vperm.xlu1 %5370, %v1992_v41   ;;  %2177 = vperm.xlu0 %5369, %v1991_v42   ;;  %v2010_v41 = vld [vmem:[%s7696_s4 + $0x188] sm:$0xff]  ;;  %v2009_v42 = vld [vmem:[%s7696_s4 + $0x180] sm:$0xff] }
  0xe7   : > { %4895 = vmatmul.mubr.msk.bf16.gmra.mrb[88].mxu0 %vm935_vm0, %v5393_v43 }
  0xe8   : > { %1294 = vmatprep.mubr.bf16.mxu0 %v5659_v10 }
  0xe9   : > { %v6258_v1 = vpop.permute.xlu1 %622  ;;  %v6269_v9 = vpop.permute.xlu0 %617 }
  0xea   : > { %2192 = vperm.xlu1 %5370, %v1994_v47   ;;  %2187 = vperm.xlu0 %5369, %v1993_v50  }
  0xed   : > { %v6279_v15 = vpop.permute.xlu1 %632  ;;  %v6281_v16 = vpop.permute.xlu0 %627 }
  0xee   : > { %2202 = vperm.xlu1 %5370, %v1996_v52   ;;  %2197 = vperm.xlu0 %5369, %v1995_v55   ;;  %v2012_v55 = vld [vmem:[%s7696_s4 + $0x198] sm:$0xff] }
  0xef   : > { %4896 = vmatmul.mubr.msk.bf16.gmra.mrb[92].mxu0 %vm935_vm0, %v5394_v56  ;;  %v2011_v56 = vld [vmem:[%s7696_s4 + $0x190] sm:$0xff] }
  0xf0   : > { %1304 = vmatprep.mubr.bf16.mxu0 %v5659_v10 }
  0xf1   : > { %v6292_v24 = vpop.permute.xlu1 %642  ;;  %v6301_v29 = vpop.permute.xlu0 %637 }
  0xf2   : > { %2212 = vperm.xlu1 %5370, %v1998_v61   ;;  %2207 = vperm.xlu0 %5369, %v1997_v0   ;;  %v5398_v61 = vld [vmem:[%s7693_s1 + $0xd8] sm:$0xff]  }
  0xf5   : > { %v6313_v35 = vpop.permute.xlu1 %652  ;;  %v6315_v36 = vpop.permute.xlu0 %647 }
  0xf6   : > { %2222 = vperm.xlu1 %5370, %v2000_v4   ;;  %2217 = vperm.xlu0 %5369, %v1999_v5  }
  0xf7   : > { %4897 = vmatmul.mubr.msk.bf16.gmra.mrb[96].mxu0 %vm935_vm0, %v5395_v6 }
  0xf8   : > { %1314 = vmatprep.mubr.bf16.mxu0 %v5659_v10 }
  0xf9   : > { %v6325_v47 = vpop.permute.xlu1 %662  ;;  %v6337_v0 = vpop.permute.xlu0 %657 }
  0xfa   : > { %2232 = vperm.xlu1 %5370, %v2002_v11   ;;  %2227 = vperm.xlu0 %5369, %v2001_v14  }
  0xfe   : > { %2242 = vperm.xlu1 %5370, %v2004_v19   ;;  %2237 = vperm.xlu0 %5369, %v2003_v20  }
  0xff   : > { %4898 = vmatmul.mubr.msk.bf16.gmra.mrb[100].mxu0 %vm935_vm0, %v5396_v23 }
 0x100   : > { %1324 = vmatprep.mubr.bf16.mxu0 %v5659_v10 }
 0x102   : > { %2252 = vperm.xlu1 %5370, %v2006_v25   ;;  %2247 = vperm.xlu0 %5369, %v2005_v28   ;;  %v2013_v25 = vld [vmem:[%s7696_s4 + $0x1a0] sm:$0xff] }
 0x106   : > { %2262 = vperm.xlu1 %5370, %v2008_v31   ;;  %2257 = vperm.xlu0 %5369, %v2007_v32  }
 0x107   : > { %4899 = vmatmul.mubr.msk.bf16.gmra.mrb[104].mxu0 %vm935_vm0, %v5397_v33  ;;  %v6352_v33 = vpop.permute.xlu0 %667 }
 0x108   : > { %1334 = vmatprep.mubr.bf16.mxu0 %v5659_v10 }
 0x10a   : > { %v1066_v43 = vpop.f32.mrb[0].mxu0  ;;  %2272 = vperm.xlu1 %5370, %v2010_v41   ;;  %2267 = vperm.xlu0 %5369, %v2009_v42  }
 0x10b   : > { %v1067_v50 = vadd.f32 %v1066_v43, %v6043_v40  ;;  %v1068_v52 = vpop.f32.mrb[1].mxu0 }
 0x10c   : > { %v1069_v4 = vadd.f32 %v1068_v52, %v6043_v40  ;;  %v1070_v5 = vpop.f32.mrb[2].mxu0  ;;  %v2014_v40 = vld [vmem:[%s7696_s4 + $0x1a8] sm:$0xff] }
 0x10d   : > { %v1513_v6 = vmul.f32 0.01, %v1067_v50  ;;  %v1071_v11 = vadd.f32 %v1070_v5, %v6056_v45  ;;  %v1072_v14 = vpop.f32.mrb[3].mxu0  ;;  %vm1385_vm1 = vcmp.gt.f32.partialorder %v1067_v50, 0.0  ;;  %v5399_v5 = vld [vmem:[%s7693_s1 + $0xe0] sm:$0xff]  }
 0x10e   : > { %v1514_v19 = vmul.f32 0.01, %v1069_v4  ;;  %v1073_v20 = vadd.f32 %v1072_v14, %v6056_v45  ;;  %2282 = vperm.xlu1 %5370, %v2012_v55   ;;  %2277 = vperm.xlu0 %5369, %v2011_v56   ;;  %vm1386_vm2 = vcmp.gt.f32.partialorder %v1069_v4, 0.0  ;;  %v6350_v45 = vpop.permute.xlu1 %672  ;;  %v5408_v14 = vld [vmem:[%s7695_s3 + $0x264] ss:$16 sps:$4 sm:$0xff]  }
 0x10f   : > { %vm1387_vm3 = vcmp.gt.f32.partialorder %v1071_v11, 0.0  ;;  %v1515_v23 = vmul.f32 0.01, %v1071_v11  ;;  %4900 = vmatmul.mubr.msk.bf16.gmra.mrb[108].mxu0 %vm935_vm0, %v5398_v61  ;;  %v1641_v31 = vsel %vm1385_vm1, %v1067_v50, %v1513_v6  ;;  %3207 = vmatprep.mubr.bf16.mxu1 %v5408_v14  ;;  %v2019_v14 = vld [vmem:[%s7696_s4 + $0x1d0] sm:$0xff] }
 0x110   : > { %vm1388_vm4 = vcmp.gt.f32.partialorder %v1073_v20, 0.0  ;;  %v1516_v28 = vmul.f32 0.01, %v1073_v20  ;;  %1344 = vmatprep.mubr.bf16.mxu0 %v5659_v10  ;;  %v1642_v43 = vsel %vm1386_vm2, %v1069_v4, %v1514_v19  ;;  %v2015_v4 = vld [vmem:[%s7696_s4 + $0x1b0] sm:$0xff] }
 0x111   : > { %v1643_v32 = vsel %vm1387_vm3, %v1071_v11, %v1515_v23  ;;  %v2016_v11 = vld [vmem:[%s7696_s4 + $0x1b8] sm:$0xff] }
 0x112   : > { %v1897_v41 = vpack.c.bf16 %v1643_v32, %v1641_v31  ;;  %v1076_v42 = vpop.f32.mrb[4].mxu0  ;;  %2292 = vperm.xlu1 %5370, %v2014_v40   ;;  %2287 = vperm.xlu0 %5369, %v2013_v25   ;;  %v1644_v52 = vsel %vm1388_vm4, %v1073_v20, %v1516_v28  ;;  %v6371_v25 = vpop.permute.xlu1 %682 }
 0x113   : > { %v1077_v55 = vadd.f32 %v1076_v42, %v6041_v39  ;;  %v1078_v56 = vpop.f32.mrb[5].mxu0  ;;  %v1898_v61 = vpack.c.bf16 %v1644_v52, %v1642_v43  ;;  %7757 = vst [vmem:[#allocation7_spill] sm:$0xff] %v6371_v25  ;;  %v6373_v31 = vpop.permute.xlu0 %677  ;;  %v2018_v42 = vld [vmem:[%s7696_s4 + $0x1c8] sm:$0xff] }
 0x114   : > { %v1079_v50 = vadd.f32 %v1078_v56, %v6041_v39  ;;  %v1080_v6 = vpop.f32.mrb[6].mxu0 }
 0x115   : > { %v1517_v19 = vmul.f32 0.01, %v1077_v55  ;;  %v1081_v20 = vadd.f32 %v1080_v6, %v6054_v44  ;;  %v1082_v23 = vpop.f32.mrb[7].mxu0  ;;  %2985 = vmatprep.subr.bf16.mxu0 %v1898_v61  ;;  %5040 = vmatprep.subr.bf16.mxu1 %v1898_v61  ;;  %vm1389_vm5 = vcmp.gt.f32.partialorder %v1077_v55, 0.0 }
 0x116   : > { %v1518_v39 = vmul.f32 0.01, %v1079_v50  ;;  %v1083_v40 = vadd.f32 %v1082_v23, %v6054_v44  ;;  %2986 = vmatpush1.bf16.msra.mxu0 %v1897_v41  ;;  %5056 = vmatpush1.bf16.msra.mxu1 %v1897_v41  ;;  %vm1390_vm6 = vcmp.gt.f32.partialorder %v1079_v50, 0.0  ;;  %v2017_v44 = vld [vmem:[%s7696_s4 + $0x1c0] sm:$0xff] }
 0x117   : > { %vm1391_vm7 = vcmp.gt.f32.partialorder %v1081_v20, 0.0  ;;  %v1519_v28 = vmul.f32 0.01, %v1081_v20  ;;  %2302 = vperm.xlu1 %5370, %v2016_v11   ;;  %2297 = vperm.xlu0 %5369, %v2015_v4   ;;  %v1645_v41 = vsel %vm1389_vm5, %v1077_v55, %v1517_v19  ;;  %v2020_v55 = vld [vmem:[%s7696_s4 + $0x1d8] sm:$0xff]  ;;  %v6396_v19 = vpop.permute.xlu1 %692 }
 0x118   : > { %vm1392_vm8 = vcmp.gt.f32.partialorder %v1083_v40, 0.0  ;;  %v1520_v32 = vmul.f32 0.01, %v1083_v40  ;;  %4901 = vmatmul.mubr.msk.bf16.gmra.mrb[112].mxu0 %vm935_vm0, %v5399_v5  ;;  %v1646_v61 = vsel %vm1390_vm6, %v1079_v50, %v1518_v39  ;;  %v5400_v50 = vld [vmem:[%s7693_s1 + $0xe8] sm:$0xff]  }
 0x119   : > { %v1647_v43 = vsel %vm1391_vm7, %v1081_v20, %v1519_v28  ;;  %1354 = vmatprep.mubr.bf16.mxu0 %v5659_v10 }
 0x11a   : > { %v1899_v52 = vpack.c.bf16 %v1647_v43, %v1645_v41  ;;  %v1086_v56 = vpop.f32.mrb[8].mxu0  ;;  %v1648_v6 = vsel %vm1392_vm8, %v1083_v40, %v1520_v32  ;;  %v2021_v41 = vld [vmem:[%s7696_s4 + $0x1e0] sm:$0xff] }
 0x11b   : > { %v1087_v5 = vadd.f32 %v1086_v56, %v6068_v49  ;;  %2312 = vperm.xlu1 %5370, %v2018_v42   ;;  %2307 = vperm.xlu0 %5369, %v2017_v44   ;;  %v1088_v11 = vpop.f32.mrb[9].mxu0  ;;  %v1900_v4 = vpack.c.bf16 %v1648_v6, %v1646_v61 }
 0x11c   : > { %v1089_v23 = vadd.f32 %v1088_v11, %v6068_v49  ;;  %v1090_v25 = vpop.f32.mrb[10].mxu0  ;;  %v6399_v49 = vpop.permute.xlu0 %687 }
 0x11d   : > { %v1521_v20 = vmul.f32 0.01, %v1087_v5  ;;  %v1091_v39 = vadd.f32 %v1090_v25, %v6066_v48  ;;  %v1092_v40 = vpop.f32.mrb[11].mxu0  ;;  %2987 = vmatprep.subr.bf16.mxu0 %v1900_v4  ;;  %5041 = vmatprep.subr.bf16.mxu1 %v1900_v4  ;;  %vm1393_vm9 = vcmp.gt.f32.partialorder %v1087_v5, 0.0  ;;  %v2022_v25 = vld [vmem:[%s7696_s4 + $0x1e8] sm:$0xff]  ;;  %v6410_v11 = vpop.permute.xlu1 %702 }
 0x11e   : > { %v1522_v28 = vmul.f32 0.01, %v1089_v23  ;;  %v1093_v32 = vadd.f32 %v1092_v40, %v6066_v48  ;;  %2988 = vmatpush1.bf16.msra.mxu0 %v1899_v52  ;;  %5057 = vmatpush1.bf16.msra.mxu1 %v1899_v52  ;;  %vm1394_vm10 = vcmp.gt.f32.partialorder %v1089_v23, 0.0 }
 0x11f   : > { %vm1395_vm11 = vcmp.gt.f32.partialorder %v1091_v39, 0.0  ;;  %v1523_v42 = vmul.f32 0.01, %v1091_v39  ;;  %2322 = vperm.xlu1 %5370, %v2020_v55   ;;  %2317 = vperm.xlu0 %5369, %v2019_v14   ;;  %v1649_v48 = vsel %vm1393_vm9, %v1087_v5, %v1521_v20  ;;  %v2024_v20 = vld [vmem:[%s7696_s4 + $0x1f8] sm:$0xff] }
 0x120   : > { %vm1396_vm12 = vcmp.gt.f32.partialorder %v1093_v32, 0.0  ;;  %v1524_v44 = vmul.f32 0.01, %v1093_v32  ;;  %4902 = vmatmul.mubr.msk.bf16.gmra.mrb[116].mxu0 %vm935_vm0, %v5400_v50  ;;  %v1650_v61 = vsel %vm1394_vm10, %v1089_v23, %v1522_v28  ;;  %v6413_v50 = vpop.permute.xlu0 %697  ;;  %v2023_v23 = vld [vmem:[%s7696_s4 + $0x1f0] sm:$0xff] }
 0x121   : > { %v1651_v43 = vsel %vm1395_vm11, %v1091_v39, %v1523_v42  ;;  %1364 = vmatprep.mubr.bf16.mxu0 %v5659_v10  ;;  %v5401_v39 = vld [vmem:[%s7693_s1 + $0xf0] sm:$0xff]  }
 0x122   : > { %v1901_v52 = vpack.c.bf16 %v1651_v43, %v1649_v48  ;;  %v1096_v56 = vpop.f32.mrb[12].mxu0  ;;  %v1652_v6 = vsel %vm1396_vm12, %v1093_v32, %v1524_v44  ;;  %v4076_v48 = vld [vmem:[%s7697_s5 + $0x8] sm:$0xff]  ;;  %v4075_v43 = vld [vmem:[%s7697_s5] sm:$0xff] }
 0x123   : > { %v1097_v4 = vadd.f32 %v1096_v56, %v6081_v54  ;;  %2332 = vperm.xlu1 %5370, %v2022_v25   ;;  %2327 = vperm.xlu0 %5369, %v2021_v41   ;;  %v1098_v55 = vpop.f32.mrb[13].mxu0  ;;  %v1902_v14 = vpack.c.bf16 %v1652_v6, %v1650_v61 }
 0x124   : > { %v1099_v40 = vadd.f32 %v1098_v55, %v6081_v54  ;;  %v1100_v5 = vpop.f32.mrb[14].mxu0  ;;  %v6438_v61 = vpop.permute.xlu0 %707 }
 0x125   : > { %v1525_v28 = vmul.f32 0.01, %v1097_v4  ;;  %v1101_v32 = vadd.f32 %v1100_v5, %v6079_v53  ;;  %v1102_v42 = vpop.f32.mrb[15].mxu0  ;;  %2989 = vmatprep.subr.bf16.mxu0 %v1902_v14  ;;  %5042 = vmatprep.subr.bf16.mxu1 %v1902_v14  ;;  %vm1397_vm13 = vcmp.gt.f32.partialorder %v1097_v4, 0.0 }
 0x126   : > { %v1526_v54 = vmul.f32 0.01, %v1099_v40  ;;  %v1103_v44 = vadd.f32 %v1102_v42, %v6079_v53  ;;  %2990 = vmatpush1.bf16.msra.mxu0 %v1901_v52  ;;  %5058 = vmatpush1.bf16.msra.mxu1 %v1901_v52  ;;  %vm1398_vm14 = vcmp.gt.f32.partialorder %v1099_v40, 0.0  ;;  %v6434_v53 = vpop.permute.xlu1 %712 }
 0x127   : > { %vm1399_vm15 = vcmp.gt.f32.partialorder %v1101_v32, 0.0  ;;  %v1527_v25 = vmul.f32 0.01, %v1101_v32  ;;  %2342 = vperm.xlu1 %5370, %v2024_v20   ;;  %2337 = vperm.xlu0 %5369, %v2023_v23   ;;  %7758 = vst [vmem:[#allocation8_spill] sm:$0xff] %v6434_v53  ;;  %v1653_v52 = vsel %vm1397_vm13, %v1097_v4, %v1525_v28  ;;  %v4077_v4 = vld [vmem:[%s7697_s5 + $0x10] sm:$0xff] }
 0x128   : > { %vm1400_vm1 = vcmp.gt.f32.partialorder %v1103_v44, 0.0  ;;  %v1528_v41 = vmul.f32 0.01, %v1103_v44  ;;  %4903 = vmatmul.mubr.msk.bf16.gmra.mrb[120].mxu0 %vm935_vm0, %v5401_v39  ;;  %v1654_v14 = vsel %vm1398_vm14, %v1099_v40, %v1526_v54  ;;  %v5402_v40 = vld [vmem:[%s7693_s1 + $0xf8] sm:$0xff]  }
 0x129   : > { %v1655_v56 = vsel %vm1399_vm15, %v1101_v32, %v1527_v25  ;;  %1374 = vmatprep.mubr.bf16.mxu0 %v5659_v10  ;;  %v4078_v10 = vld [vmem:[%s7697_s5 + $0x18] sm:$0xff] }
 0x12a   : > { %v1903_v6 = vpack.c.bf16 %v1655_v56, %v1653_v52  ;;  %v1106_v55 = vpop.f32.mrb[16].mxu0  ;;  %v1656_v5 = vsel %vm1400_vm1, %v1103_v44, %v1528_v41  ;;  %v6457_v41 = vpop.permute.xlu1 %722  ;;  %v4080_v52 = vld [vmem:[%s7697_s5 + $0x28] sm:$0xff] }
 0x12b   : > { %v1107_v20 = vadd.f32 %v1106_v55, %v6093_v58  ;;  %4146 = vperm.xlu1 %5370, %v4076_v48   ;;  %4141 = vperm.xlu0 %5369, %v4075_v43   ;;  %v1108_v23 = vpop.f32.mrb[17].mxu0  ;;  %v1904_v39 = vpack.c.bf16 %v1656_v5, %v1654_v14  ;;  %v6459_v43 = vpop.permute.xlu0 %717 }
 0x12c   : > { %v1109_v42 = vadd.f32 %v1108_v23, %v6093_v58  ;;  %v1110_v53 = vpop.f32.mrb[18].mxu0  ;;  %v5405_v58 = vld [vmem:[%s7695_s3 + $0x4] ss:$16 sps:$4 sm:$0xff]  }
 0x12d   : > { %v1529_v28 = vmul.f32 0.01, %v1107_v20  ;;  %v1111_v32 = vadd.f32 %v1110_v53, %v6091_v57  ;;  %v1112_v54 = vpop.f32.mrb[19].mxu0  ;;  %2991 = vmatprep.subr.bf16.mxu0 %v1904_v39  ;;  %5043 = vmatprep.subr.bf16.mxu1 %v1904_v39  ;;  %vm1401_vm2 = vcmp.gt.f32.partialorder %v1107_v20, 0.0 }
 0x12e   : > { %v1530_v44 = vmul.f32 0.01, %v1109_v42  ;;  %v1113_v25 = vadd.f32 %v1112_v54, %v6091_v57  ;;  %2992 = vmatpush1.bf16.msra.mxu0 %v1903_v6  ;;  %5059 = vmatpush1.bf16.msra.mxu1 %v1903_v6  ;;  %vm1402_vm3 = vcmp.gt.f32.partialorder %v1109_v42, 0.0  ;;  %v4079_v57 = vld [vmem:[%s7697_s5 + $0x20] sm:$0xff] }
 0x12f   : > { %vm1403_vm4 = vcmp.gt.f32.partialorder %v1111_v32, 0.0  ;;  %v1531_v48 = vmul.f32 0.01, %v1111_v32  ;;  %4156 = vperm.xlu1 %5370, %v4078_v10   ;;  %4151 = vperm.xlu0 %5369, %v4077_v4   ;;  %v1657_v56 = vsel %vm1401_vm2, %v1107_v20, %v1529_v28  ;;  %v4082_v20 = vld [vmem:[%s7697_s5 + $0x38] sm:$0xff]  ;;  %v4081_v28 = vld [vmem:[%s7697_s5 + $0x30] sm:$0xff] }
 0x130   : > { %vm1404_vm5 = vcmp.gt.f32.partialorder %v1113_v25, 0.0  ;;  %v1532_v53 = vmul.f32 0.01, %v1113_v25  ;;  %4904 = vmatmul.mubr.msk.bf16.gmra.mrb[124].mxu0 %vm935_vm0, %v5402_v40  ;;  %v1658_v5 = vsel %vm1402_vm3, %v1109_v42, %v1530_v44 }
 0x131   : > { %v1659_v6 = vsel %vm1403_vm4, %v1111_v32, %v1531_v48  ;;  %3017 = vmatprep.mubr.bf16.mxu0 %v5405_v58  ;;  %v6478_v32 = vpop.permute.xlu1 %732 }
 0x132   : > { %v1905_v55 = vpack.c.bf16 %v1659_v6, %v1657_v56  ;;  %v1116_v14 = vpop.f32.mrb[20].mxu0  ;;  %v1660_v23 = vsel %vm1404_vm5, %v1113_v25, %v1532_v53  ;;  %7759 = vst [vmem:[#allocation9_spill] sm:$0xff] %v6478_v32  ;;  %v6481_v25 = vpop.permute.xlu0 %727  ;;  %v4083_v56 = vld [vmem:[%s7697_s5 + $0x40] sm:$0xff] }
 0x133   : > { %v1117_v39 = vadd.f32 %v1116_v14, %v6106_v63  ;;  %4166 = vperm.xlu1 %5370, %v4080_v52   ;;  %4161 = vperm.xlu0 %5369, %v4079_v57   ;;  %v1118_v10 = vpop.f32.mrb[21].mxu0  ;;  %v1906_v4 = vpack.c.bf16 %v1660_v23, %v1658_v5  ;;  %v4084_v57 = vld [vmem:[%s7697_s5 + $0x48] sm:$0xff] }
 0x134   : > { %v1119_v40 = vadd.f32 %v1118_v10, %v6106_v63  ;;  %v1120_v54 = vpop.f32.mrb[22].mxu0 }
 0x135   : > { %v1533_v42 = vmul.f32 0.01, %v1117_v39  ;;  %v1121_v58 = vadd.f32 %v1120_v54, %v6104_v62  ;;  %v1122_v44 = vpop.f32.mrb[23].mxu0  ;;  %2993 = vmatprep.subr.bf16.mxu0 %v1906_v4  ;;  %5044 = vmatprep.subr.bf16.mxu1 %v1906_v4  ;;  %vm1405_vm0 = vcmp.gt.f32.partialorder %v1117_v39, 0.0  ;;  %v6490_v10 = vpop.permute.xlu1 %742 }
 0x136   : > { %v1534_v63 = vmul.f32 0.01, %v1119_v40  ;;  %v1123_v48 = vadd.f32 %v1122_v44, %v6104_v62  ;;  %2994 = vmatpush1.bf16.msra.mxu0 %v1905_v55  ;;  %5060 = vmatpush1.bf16.msra.mxu1 %v1905_v55  ;;  %vm1406_vm6 = vcmp.gt.f32.partialorder %v1119_v40, 0.0 }
 0x137   : > { %vm1407_vm7 = vcmp.gt.f32.partialorder %v1121_v58, 0.0  ;;  %v1535_v53 = vmul.f32 0.01, %v1121_v58  ;;  %4176 = vperm.xlu1 %5370, %v4082_v20   ;;  %4171 = vperm.xlu0 %5369, %v4081_v28   ;;  %v1661_v6 = vsel %vm1405_vm0, %v1117_v39, %v1533_v42  ;;  %v6493_v28 = vpop.permute.xlu0 %737  ;;  %v4086_v39 = vld [vmem:[%s7697_s5 + $0x58] sm:$0xff] }
 0x138   : > { %vm1408_vm8 = vcmp.gt.f32.partialorder %v1123_v48, 0.0  ;;  %v1536_v52 = vmul.f32 0.01, %v1123_v48  ;;  %v1662_v55 = vsel %vm1406_vm6, %v1119_v40, %v1534_v63  ;;  %v4085_v40 = vld [vmem:[%s7697_s5 + $0x50] sm:$0xff] }
 0x139   : > { %v1663_v14 = vsel %vm1407_vm7, %v1121_v58, %v1535_v53 }
 0x13a   : > { %v1907_v62 = vpack.c.bf16 %v1663_v14, %v1661_v6  ;;  %v1126_v5 = vpop.f32.mrb[24].mxu0  ;;  %v1664_v23 = vsel %vm1408_vm8, %v1123_v48, %v1536_v52 }
 0x13b   : > { %v1127_v4 = vadd.f32 %v1126_v5, %v6118_v3  ;;  %4186 = vperm.xlu1 %5370, %v4084_v57   ;;  %4181 = vperm.xlu0 %5369, %v4083_v56   ;;  %v1128_v54 = vpop.f32.mrb[25].mxu0  ;;  %v1908_v20 = vpack.c.bf16 %v1664_v23, %v1662_v55  ;;  %v4087_v57 = vld [vmem:[%s7697_s5 + $0x60] sm:$0xff]  ;;  %v6510_v56 = vpop.permute.xlu1 %752 }
 0x13c   : > { %v1129_v44 = vadd.f32 %v1128_v54, %v6118_v3  ;;  %v1130_v32 = vpop.f32.mrb[26].mxu0  ;;  %v6512_v14 = vpop.permute.xlu0 %747 }
 0x13d   : > { %v1537_v42 = vmul.f32 0.01, %v1127_v4  ;;  %v1131_v58 = vadd.f32 %v1130_v32, %v6116_v2  ;;  %v1132_v63 = vpop.f32.mrb[27].mxu0  ;;  %2995 = vmatprep.subr.bf16.mxu0 %v1908_v20  ;;  %5045 = vmatprep.subr.bf16.mxu1 %v1908_v20  ;;  %vm1409_vm9 = vcmp.gt.f32.partialorder %v1127_v4, 0.0  ;;  %v4088_v32 = vld [vmem:[%s7697_s5 + $0x68] sm:$0xff] }
 0x13e   : > { %v1538_v48 = vmul.f32 0.01, %v1129_v44  ;;  %v1133_v53 = vadd.f32 %v1132_v63, %v6116_v2  ;;  %2996 = vmatpush1.bf16.msra.mxu0 %v1907_v62  ;;  %5061 = vmatpush1.bf16.msra.mxu1 %v1907_v62  ;;  %vm1410_vm10 = vcmp.gt.f32.partialorder %v1129_v44, 0.0 }
 0x13f   : > { %vm1411_vm11 = vcmp.gt.f32.partialorder %v1131_v58, 0.0  ;;  %v1539_v3 = vmul.f32 0.01, %v1131_v58  ;;  %4196 = vperm.xlu1 %5370, %v4086_v39   ;;  %4191 = vperm.xlu0 %5369, %v4085_v40   ;;  %v1665_v2 = vsel %vm1409_vm9, %v1127_v4, %v1537_v42  ;;  %v4090_v4 = vld [vmem:[%s7697_s5 + $0x78] sm:$0xff]  ;;  %v4089_v42 = vld [vmem:[%s7697_s5 + $0x70] sm:$0xff] }
 0x140   : > { %vm1412_vm12 = vcmp.gt.f32.partialorder %v1133_v53, 0.0  ;;  %v1540_v52 = vmul.f32 0.01, %v1133_v53  ;;  %v1666_v55 = vsel %vm1410_vm10, %v1129_v44, %v1538_v48 }
 0x141   : > { %v1667_v6 = vsel %vm1411_vm11, %v1131_v58, %v1539_v3 }
 0x142   : > { %v1909_v62 = vpack.c.bf16 %v1667_v6, %v1665_v2  ;;  %v1136_v5 = vpop.f32.mrb[28].mxu0  ;;  %v1668_v23 = vsel %vm1412_vm12, %v1133_v53, %v1540_v52  ;;  %v4092_v2 = vld [vmem:[%s7697_s5 + $0x88] sm:$0xff] }
 0x143   : > { %v1137_v54 = vadd.f32 %v1136_v5, %v6131_v8  ;;  %4206 = vperm.xlu1 %5370, %v4088_v32   ;;  %4201 = vperm.xlu0 %5369, %v4087_v57   ;;  %v1138_v20 = vpop.f32.mrb[29].mxu0  ;;  %v1910_v39 = vpack.c.bf16 %v1668_v23, %v1666_v55  ;;  %v6526_v32 = vpop.permute.xlu0 %757 }
 0x144   : > { %v1139_v40 = vadd.f32 %v1138_v20, %v6131_v8  ;;  %v1140_v63 = vpop.f32.mrb[30].mxu0  ;;  %v6524_v8 = vpop.permute.xlu1 %762 }
 0x145   : > { %v1541_v58 = vmul.f32 0.01, %v1137_v54  ;;  %v1141_v44 = vadd.f32 %v1140_v63, %v6129_v7  ;;  %v1142_v48 = vpop.f32.mrb[31].mxu0  ;;  %2997 = vmatprep.subr.bf16.mxu0 %v1910_v39  ;;  %5046 = vmatprep.subr.bf16.mxu1 %v1910_v39  ;;  %vm1413_vm13 = vcmp.gt.f32.partialorder %v1137_v54, 0.0  ;;  %7760 = vst [vmem:[#allocation10_spill] sm:$0xff] %v6524_v8  ;;  %v4094_v8 = vld [vmem:[%s7697_s5 + $0x98] sm:$0xff] }
 0x146   : > { %v1542_v53 = vmul.f32 0.01, %v1139_v40  ;;  %v1143_v3 = vadd.f32 %v1142_v48, %v6129_v7  ;;  %2998 = vmatpush1.bf16.msra.mxu0 %v1909_v62  ;;  %5062 = vmatpush1.bf16.msra.mxu1 %v1909_v62  ;;  %vm1414_vm14 = vcmp.gt.f32.partialorder %v1139_v40, 0.0  ;;  %v4091_v7 = vld [vmem:[%s7697_s5 + $0x80] sm:$0xff] }
 0x147   : > { %vm1415_vm15 = vcmp.gt.f32.partialorder %v1141_v44, 0.0  ;;  %v1543_v52 = vmul.f32 0.01, %v1141_v44  ;;  %4216 = vperm.xlu1 %5370, %v4090_v4   ;;  %4211 = vperm.xlu0 %5369, %v4089_v42   ;;  %v1669_v6 = vsel %vm1413_vm13, %v1137_v54, %v1541_v58  ;;  %v4093_v54 = vld [vmem:[%s7697_s5 + $0x90] sm:$0xff] }
 0x148   : > { %vm1416_vm1 = vcmp.gt.f32.partialorder %v1143_v3, 0.0  ;;  %v1544_v57 = vmul.f32 0.01, %v1143_v3  ;;  %v1670_v23 = vsel %vm1414_vm14, %v1139_v40, %v1542_v53  ;;  %v6543_v58 = vpop.permute.xlu1 %772 }
 0x149   : > { %v1671_v62 = vsel %vm1415_vm15, %v1141_v44, %v1543_v52  ;;  %7761 = vst [vmem:[#allocation11_spill] sm:$0xff] %v6543_v58 }
 0x14a   : > { %v1911_v5 = vpack.c.bf16 %v1671_v62, %v1669_v6  ;;  %v1146_v55 = vpop.f32.mrb[32].mxu0  ;;  %v1672_v20 = vsel %vm1416_vm1, %v1143_v3, %v1544_v57  ;;  %v6546_v3 = vpop.permute.xlu0 %767  ;;  %v4095_v6 = vld [vmem:[%s7697_s5 + $0xa0] sm:$0xff] }
 0x14b   : > { %v1147_v39 = vadd.f32 %v1146_v55, %v6143_v13  ;;  %4226 = vperm.xlu1 %5370, %v4092_v2   ;;  %4221 = vperm.xlu0 %5369, %v4091_v7   ;;  %v1148_v63 = vpop.f32.mrb[33].mxu0  ;;  %v1912_v4 = vpack.c.bf16 %v1672_v20, %v1670_v23  ;;  %v4096_v7 = vld [vmem:[%s7697_s5 + $0xa8] sm:$0xff] }
 0x14c   : > { %v1149_v42 = vadd.f32 %v1148_v63, %v6143_v13  ;;  %v1150_v48 = vpop.f32.mrb[34].mxu0  ;;  %v6555_v63 = vpop.permute.xlu1 %2032 }
 0x14d   : > { %v1545_v40 = vmul.f32 0.01, %v1147_v39  ;;  %v1151_v44 = vadd.f32 %v1150_v48, %v6141_v12  ;;  %v1152_v53 = vpop.f32.mrb[35].mxu0  ;;  %2999 = vmatprep.subr.bf16.mxu0 %v1912_v4  ;;  %5047 = vmatprep.subr.bf16.mxu1 %v1912_v4  ;;  %vm1417_vm2 = vcmp.gt.f32.partialorder %v1147_v39, 0.0 }
 0x14e   : > { %v1546_v13 = vmul.f32 0.01, %v1149_v42  ;;  %v1153_v52 = vadd.f32 %v1152_v53, %v6141_v12  ;;  %3000 = vmatpush1.bf16.msra.mxu0 %v1911_v5  ;;  %5063 = vmatpush1.bf16.msra.mxu1 %v1911_v5  ;;  %vm1418_vm3 = vcmp.gt.f32.partialorder %v1149_v42, 0.0 }
 0x14f   : > { %vm1419_vm4 = vcmp.gt.f32.partialorder %v1151_v44, 0.0  ;;  %v1547_v57 = vmul.f32 0.01, %v1151_v44  ;;  %4236 = vperm.xlu1 %5370, %v4094_v8   ;;  %4231 = vperm.xlu0 %5369, %v4093_v54   ;;  %v1673_v62 = vsel %vm1417_vm2, %v1147_v39, %v1545_v40  ;;  %v6558_v54 = vpop.permute.xlu0 %2027  ;;  %v4098_v39 = vld [vmem:[%s7697_s5 + $0xb8] sm:$0xff] }
 0x150   : > { %vm1420_vm5 = vcmp.gt.f32.partialorder %v1153_v52, 0.0  ;;  %v1548_v2 = vmul.f32 0.01, %v1153_v52  ;;  %v1674_v5 = vsel %vm1418_vm3, %v1149_v42, %v1546_v13  ;;  %v4097_v42 = vld [vmem:[%s7697_s5 + $0xb0] sm:$0xff] }
 0x151   : > { %v1675_v55 = vsel %vm1419_vm4, %v1151_v44, %v1547_v57 }
 0x152   : > { %v1913_v12 = vpack.c.bf16 %v1675_v55, %v1673_v62  ;;  %v1156_v23 = vpop.f32.mrb[36].mxu0  ;;  %v1676_v20 = vsel %vm1420_vm5, %v1153_v52, %v1548_v2 }
 0x153   : > { %v1157_v8 = vadd.f32 %v1156_v23, %v6156_v18  ;;  %4246 = vperm.xlu1 %5370, %v4096_v7   ;;  %4241 = vperm.xlu0 %5369, %v4095_v6   ;;  %v1158_v4 = vpop.f32.mrb[37].mxu0  ;;  %v1914_v48 = vpack.c.bf16 %v1676_v20, %v1674_v5  ;;  %v4099_v7 = vld [vmem:[%s7697_s5 + $0xc0] sm:$0xff]  ;;  %v6575_v6 = vpop.permute.xlu1 %2042 }
 0x154   : > { %v1159_v53 = vadd.f32 %v1158_v4, %v6156_v18  ;;  %v1160_v58 = vpop.f32.mrb[38].mxu0  ;;  %v6577_v55 = vpop.permute.xlu0 %2037 }
 0x155   : > { %v1549_v40 = vmul.f32 0.01, %v1157_v8  ;;  %v1161_v44 = vadd.f32 %v1160_v58, %v6154_v17  ;;  %v1162_v13 = vpop.f32.mrb[39].mxu0  ;;  %3001 = vmatprep.subr.bf16.mxu0 %v1914_v48  ;;  %5048 = vmatprep.subr.bf16.mxu1 %v1914_v48  ;;  %vm1421_vm0 = vcmp.gt.f32.partialorder %v1157_v8, 0.0  ;;  %v4100_v58 = vld [vmem:[%s7697_s5 + $0xc8] sm:$0xff] }
 0x156   : > { %v1550_v52 = vmul.f32 0.01, %v1159_v53  ;;  %v1163_v57 = vadd.f32 %v1162_v13, %v6154_v17  ;;  %3002 = vmatpush1.bf16.msra.mxu0 %v1913_v12  ;;  %5064 = vmatpush1.bf16.msra.mxu1 %v1913_v12  ;;  %vm1422_vm6 = vcmp.gt.f32.partialorder %v1159_v53, 0.0 }
 0x157   : > { %vm1423_vm7 = vcmp.gt.f32.partialorder %v1161_v44, 0.0  ;;  %v1551_v18 = vmul.f32 0.01, %v1161_v44  ;;  %4256 = vperm.xlu1 %5370, %v4098_v39   ;;  %4251 = vperm.xlu0 %5369, %v4097_v42   ;;  %v1677_v17 = vsel %vm1421_vm0, %v1157_v8, %v1549_v40  ;;  %v4102_v8 = vld [vmem:[%s7697_s5 + $0xd8] sm:$0xff]  ;;  %v4101_v40 = vld [vmem:[%s7697_s5 + $0xd0] sm:$0xff] }
 0x158   : > { %vm1424_vm8 = vcmp.gt.f32.partialorder %v1163_v57, 0.0  ;;  %v1552_v2 = vmul.f32 0.01, %v1163_v57  ;;  %v1678_v5 = vsel %vm1422_vm6, %v1159_v53, %v1550_v52 }
 0x159   : > { %v1679_v62 = vsel %vm1423_vm7, %v1161_v44, %v1551_v18 }
 0x15a   : > { %v1915_v12 = vpack.c.bf16 %v1679_v62, %v1677_v17  ;;  %v1166_v23 = vpop.f32.mrb[40].mxu0  ;;  %v1680_v20 = vsel %vm1424_vm8, %v1163_v57, %v1552_v2  ;;  %v4104_v17 = vld [vmem:[%s7697_s5 + $0xe8] sm:$0xff] }
 0x15b   : > { %v1167_v4 = vadd.f32 %v1166_v23, %v6168_v22  ;;  %4266 = vperm.xlu1 %5370, %v4100_v58   ;;  %4261 = vperm.xlu0 %5369, %v4099_v7   ;;  %v1168_v48 = vpop.f32.mrb[41].mxu0  ;;  %v1916_v39 = vpack.c.bf16 %v1680_v20, %v1678_v5  ;;  %v6591_v58 = vpop.permute.xlu0 %2047 }
 0x15c   : > { %v1169_v42 = vadd.f32 %v1168_v48, %v6168_v22  ;;  %v1170_v13 = vpop.f32.mrb[42].mxu0  ;;  %v6589_v22 = vpop.permute.xlu1 %2052 }
 0x15d   : > { %v1553_v44 = vmul.f32 0.01, %v1167_v4  ;;  %v1171_v53 = vadd.f32 %v1170_v13, %v6166_v21  ;;  %v1172_v52 = vpop.f32.mrb[43].mxu0  ;;  %3003 = vmatprep.subr.bf16.mxu0 %v1916_v39  ;;  %5049 = vmatprep.subr.bf16.mxu1 %v1916_v39  ;;  %vm1425_vm9 = vcmp.gt.f32.partialorder %v1167_v4, 0.0  ;;  %7762 = vst [vmem:[#allocation12_spill] sm:$0xff] %v6589_v22  ;;  %v4106_v22 = vld [vmem:[%s7697_s5 + $0xf8] sm:$0xff] }
 0x15e   : > { %v1554_v57 = vmul.f32 0.01, %v1169_v42  ;;  %v1173_v18 = vadd.f32 %v1172_v52, %v6166_v21  ;;  %3004 = vmatpush1.bf16.msra.mxu0 %v1915_v12  ;;  %5065 = vmatpush1.bf16.msra.mxu1 %v1915_v12  ;;  %vm1426_vm10 = vcmp.gt.f32.partialorder %v1169_v42, 0.0  ;;  %v4103_v21 = vld [vmem:[%s7697_s5 + $0xe0] sm:$0xff] }
 0x15f   : > { %vm1427_vm11 = vcmp.gt.f32.partialorder %v1171_v53, 0.0  ;;  %v1555_v2 = vmul.f32 0.01, %v1171_v53  ;;  %4276 = vperm.xlu1 %5370, %v4102_v8   ;;  %4271 = vperm.xlu0 %5369, %v4101_v40   ;;  %v1681_v62 = vsel %vm1425_vm9, %v1167_v4, %v1553_v44  ;;  %v4105_v4 = vld [vmem:[%s7697_s5 + $0xf0] sm:$0xff] }
 0x160   : > { %vm1428_vm12 = vcmp.gt.f32.partialorder %v1173_v18, 0.0  ;;  %v1556_v7 = vmul.f32 0.01, %v1173_v18  ;;  %v1682_v20 = vsel %vm1426_vm10, %v1169_v42, %v1554_v57  ;;  %v6608_v44 = vpop.permute.xlu1 %2062 }
 0x161   : > { %v1683_v12 = vsel %vm1427_vm11, %v1171_v53, %v1555_v2  ;;  %7763 = vst [vmem:[#allocation13_spill] sm:$0xff] %v6608_v44 }
 0x162   : > { %v1917_v23 = vpack.c.bf16 %v1683_v12, %v1681_v62  ;;  %v1176_v5 = vpop.f32.mrb[44].mxu0  ;;  %v1684_v48 = vsel %vm1428_vm12, %v1173_v18, %v1556_v7  ;;  %v6611_v18 = vpop.permute.xlu0 %2057  ;;  %v4107_v62 = vld [vmem:[%s7697_s5 + $0x100] sm:$0xff] }
 0x163   : > { %v1177_v39 = vadd.f32 %v1176_v5, %v6181_v27  ;;  %4286 = vperm.xlu1 %5370, %v4104_v17   ;;  %4281 = vperm.xlu0 %5369, %v4103_v21   ;;  %v1178_v13 = vpop.f32.mrb[45].mxu0  ;;  %v1918_v8 = vpack.c.bf16 %v1684_v48, %v1682_v20  ;;  %v4108_v21 = vld [vmem:[%s7697_s5 + $0x108] sm:$0xff] }
 0x164   : > { %v1179_v40 = vadd.f32 %v1178_v13, %v6181_v27  ;;  %v1180_v52 = vpop.f32.mrb[46].mxu0  ;;  %v6620_v13 = vpop.permute.xlu1 %2072 }
 0x165   : > { %v1557_v42 = vmul.f32 0.01, %v1177_v39  ;;  %v1181_v53 = vadd.f32 %v1180_v52, %v6179_v26  ;;  %v1182_v57 = vpop.f32.mrb[47].mxu0  ;;  %3005 = vmatprep.subr.bf16.mxu0 %v1918_v8  ;;  %5050 = vmatprep.subr.bf16.mxu1 %v1918_v8  ;;  %vm1429_vm13 = vcmp.gt.f32.partialorder %v1177_v39, 0.0 }
 0x166   : > { %v1558_v27 = vmul.f32 0.01, %v1179_v40  ;;  %v1183_v2 = vadd.f32 %v1182_v57, %v6179_v26  ;;  %3006 = vmatpush1.bf16.msra.mxu0 %v1917_v23  ;;  %5066 = vmatpush1.bf16.msra.mxu1 %v1917_v23  ;;  %vm1430_vm14 = vcmp.gt.f32.partialorder %v1179_v40, 0.0 }
 0x167   : > { %vm1431_vm15 = vcmp.gt.f32.partialorder %v1181_v53, 0.0  ;;  %v1559_v7 = vmul.f32 0.01, %v1181_v53  ;;  %4296 = vperm.xlu1 %5370, %v4106_v22   ;;  %4291 = vperm.xlu0 %5369, %v4105_v4   ;;  %v1685_v12 = vsel %vm1429_vm13, %v1177_v39, %v1557_v42  ;;  %v6623_v4 = vpop.permute.xlu0 %2067  ;;  %v4110_v39 = vld [vmem:[%s7697_s5 + $0x118] sm:$0xff] }
 0x168   : > { %vm1432_vm1 = vcmp.gt.f32.partialorder %v1183_v2, 0.0  ;;  %v1560_v17 = vmul.f32 0.01, %v1183_v2  ;;  %v1686_v23 = vsel %vm1430_vm14, %v1179_v40, %v1558_v27  ;;  %v4109_v40 = vld [vmem:[%s7697_s5 + $0x110] sm:$0xff] }
 0x169   : > { %v1687_v5 = vsel %vm1431_vm15, %v1181_v53, %v1559_v7 }
 0x16a   : > { %v1919_v26 = vpack.c.bf16 %v1687_v5, %v1685_v12  ;;  %v1186_v20 = vpop.f32.mrb[48].mxu0  ;;  %v1688_v48 = vsel %vm1432_vm1, %v1183_v2, %v1560_v17 }
 0x16b   : > { %v1187_v22 = vadd.f32 %v1186_v20, %v6202_v34  ;;  %4306 = vperm.xlu1 %5370, %v4108_v21   ;;  %4301 = vperm.xlu0 %5369, %v4107_v62   ;;  %v1188_v8 = vpop.f32.mrb[49].mxu0  ;;  %v1920_v52 = vpack.c.bf16 %v1688_v48, %v1686_v23  ;;  %v4111_v21 = vld [vmem:[%s7697_s5 + $0x120] sm:$0xff]  ;;  %v6640_v62 = vpop.permute.xlu1 %2082 }
 0x16c   : > { %v1189_v57 = vadd.f32 %v1188_v8, %v6202_v34  ;;  %v1190_v44 = vpop.f32.mrb[50].mxu0  ;;  %v6642_v5 = vpop.permute.xlu0 %2077 }
 0x16d   : > { %v1561_v42 = vmul.f32 0.01, %v1187_v22  ;;  %v1191_v53 = vadd.f32 %v1190_v44, %v6191_v30  ;;  %v1192_v27 = vpop.f32.mrb[51].mxu0  ;;  %3007 = vmatprep.subr.bf16.mxu0 %v1920_v52  ;;  %5051 = vmatprep.subr.bf16.mxu1 %v1920_v52  ;;  %vm1433_vm2 = vcmp.gt.f32.partialorder %v1187_v22, 0.0  ;;  %v4112_v44 = vld [vmem:[%s7697_s5 + $0x128] sm:$0xff] }
 0x16e   : > { %v1562_v2 = vmul.f32 0.01, %v1189_v57  ;;  %v1193_v7 = vadd.f32 %v1192_v27, %v6191_v30  ;;  %3008 = vmatpush1.bf16.msra.mxu0 %v1919_v26  ;;  %5067 = vmatpush1.bf16.msra.mxu1 %v1919_v26  ;;  %vm1434_vm3 = vcmp.gt.f32.partialorder %v1189_v57, 0.0 }
 0x16f   : > { %vm1435_vm4 = vcmp.gt.f32.partialorder %v1191_v53, 0.0  ;;  %v1563_v34 = vmul.f32 0.01, %v1191_v53  ;;  %4316 = vperm.xlu1 %5370, %v4110_v39   ;;  %4311 = vperm.xlu0 %5369, %v4109_v40   ;;  %v1689_v30 = vsel %vm1433_vm2, %v1187_v22, %v1561_v42  ;;  %v4114_v22 = vld [vmem:[%s7697_s5 + $0x138] sm:$0xff]  ;;  %v4113_v42 = vld [vmem:[%s7697_s5 + $0x130] sm:$0xff] }
 0x170   : > { %vm1436_vm5 = vcmp.gt.f32.partialorder %v1193_v7, 0.0  ;;  %v1564_v17 = vmul.f32 0.01, %v1193_v7  ;;  %v1690_v23 = vsel %vm1434_vm3, %v1189_v57, %v1562_v2 }
 0x171   : > { %v1691_v12 = vsel %vm1435_vm4, %v1191_v53, %v1563_v34 }
 0x172   : > { %v1921_v26 = vpack.c.bf16 %v1691_v12, %v1689_v30  ;;  %v1196_v20 = vpop.f32.mrb[52].mxu0  ;;  %v1692_v48 = vsel %vm1436_vm5, %v1193_v7, %v1564_v17  ;;  %v4116_v30 = vld [vmem:[%s7697_s5 + $0x148] sm:$0xff] }
 0x173   : > { %v1197_v8 = vadd.f32 %v1196_v20, %v6214_v38  ;;  %4326 = vperm.xlu1 %5370, %v4112_v44   ;;  %4321 = vperm.xlu0 %5369, %v4111_v21   ;;  %v1198_v52 = vpop.f32.mrb[53].mxu0  ;;  %v1922_v39 = vpack.c.bf16 %v1692_v48, %v1690_v23  ;;  %v6656_v44 = vpop.permute.xlu0 %2087 }
 0x174   : > { %v1199_v40 = vadd.f32 %v1198_v52, %v6214_v38  ;;  %v1200_v27 = vpop.f32.mrb[54].mxu0  ;;  %v6654_v38 = vpop.permute.xlu1 %2092 }
 0x175   : > { %v1565_v53 = vmul.f32 0.01, %v1197_v8  ;;  %v1201_v57 = vadd.f32 %v1200_v27, %v6212_v37  ;;  %v1202_v2 = vpop.f32.mrb[55].mxu0  ;;  %3009 = vmatprep.subr.bf16.mxu0 %v1922_v39  ;;  %5052 = vmatprep.subr.bf16.mxu1 %v1922_v39  ;;  %vm1437_vm0 = vcmp.gt.f32.partialorder %v1197_v8, 0.0  ;;  %7764 = vst [vmem:[#allocation14_spill] sm:$0xff] %v6654_v38  ;;  %v4118_v38 = vld [vmem:[%s7697_s5 + $0x158] sm:$0xff] }
 0x176   : > { %v1566_v7 = vmul.f32 0.01, %v1199_v40  ;;  %v1203_v34 = vadd.f32 %v1202_v2, %v6212_v37  ;;  %3010 = vmatpush1.bf16.msra.mxu0 %v1921_v26  ;;  %5068 = vmatpush1.bf16.msra.mxu1 %v1921_v26  ;;  %vm1438_vm6 = vcmp.gt.f32.partialorder %v1199_v40, 0.0  ;;  %v4115_v37 = vld [vmem:[%s7697_s5 + $0x140] sm:$0xff] }
 0x177   : > { %vm1439_vm7 = vcmp.gt.f32.partialorder %v1201_v57, 0.0  ;;  %v1567_v17 = vmul.f32 0.01, %v1201_v57  ;;  %4336 = vperm.xlu1 %5370, %v4114_v22   ;;  %4331 = vperm.xlu0 %5369, %v4113_v42   ;;  %v1693_v12 = vsel %vm1437_vm0, %v1197_v8, %v1565_v53  ;;  %v4117_v8 = vld [vmem:[%s7697_s5 + $0x150] sm:$0xff] }
 0x178   : > { %vm1440_vm8 = vcmp.gt.f32.partialorder %v1203_v34, 0.0  ;;  %v1568_v21 = vmul.f32 0.01, %v1203_v34  ;;  %v1694_v48 = vsel %vm1438_vm6, %v1199_v40, %v1566_v7  ;;  %v6673_v53 = vpop.permute.xlu1 %2102 }
 0x179   : > { %v1695_v26 = vsel %vm1439_vm7, %v1201_v57, %v1567_v17  ;;  %7765 = vst [vmem:[#allocation15_spill] sm:$0xff] %v6673_v53 }
 0x17a   : > { %v1923_v20 = vpack.c.bf16 %v1695_v26, %v1693_v12  ;;  %v1206_v23 = vpop.f32.mrb[56].mxu0  ;;  %v1696_v52 = vsel %vm1440_vm8, %v1203_v34, %v1568_v21  ;;  %v6676_v34 = vpop.permute.xlu0 %2097  ;;  %v4119_v12 = vld [vmem:[%s7697_s5 + $0x160] sm:$0xff] }
 0x17b   : > { %v1207_v39 = vadd.f32 %v1206_v23, %v6234_v51  ;;  %4346 = vperm.xlu1 %5370, %v4116_v30   ;;  %4341 = vperm.xlu0 %5369, %v4115_v37   ;;  %v1208_v27 = vpop.f32.mrb[57].mxu0  ;;  %v1924_v22 = vpack.c.bf16 %v1696_v52, %v1694_v48  ;;  %v4120_v37 = vld [vmem:[%s7697_s5 + $0x168] sm:$0xff] }
 0x17c   : > { %v1209_v42 = vadd.f32 %v1208_v27, %v6234_v51  ;;  %v1210_v2 = vpop.f32.mrb[58].mxu0  ;;  %v6685_v27 = vpop.permute.xlu1 %2112 }
 0x17d   : > { %v1569_v40 = vmul.f32 0.01, %v1207_v39  ;;  %v1211_v57 = vadd.f32 %v1210_v2, %v6225_v46  ;;  %v1212_v7 = vpop.f32.mrb[59].mxu0  ;;  %3011 = vmatprep.subr.bf16.mxu0 %v1924_v22  ;;  %5053 = vmatprep.subr.bf16.mxu1 %v1924_v22  ;;  %vm1441_vm9 = vcmp.gt.f32.partialorder %v1207_v39, 0.0 }
 0x17e   : > { %v1570_v51 = vmul.f32 0.01, %v1209_v42  ;;  %v1213_v17 = vadd.f32 %v1212_v7, %v6225_v46  ;;  %3012 = vmatpush1.bf16.msra.mxu0 %v1923_v20  ;;  %5069 = vmatpush1.bf16.msra.mxu1 %v1923_v20  ;;  %vm1442_vm10 = vcmp.gt.f32.partialorder %v1209_v42, 0.0 }
 0x17f   : > { %vm1443_vm11 = vcmp.gt.f32.partialorder %v1211_v57, 0.0  ;;  %v1571_v21 = vmul.f32 0.01, %v1211_v57  ;;  %4356 = vperm.xlu1 %5370, %v4118_v38   ;;  %4351 = vperm.xlu0 %5369, %v4117_v8   ;;  %v1697_v26 = vsel %vm1441_vm9, %v1207_v39, %v1569_v40  ;;  %v6688_v8 = vpop.permute.xlu0 %2107  ;;  %v4122_v39 = vld [vmem:[%s7697_s5 + $0x178] sm:$0xff] }
 0x180   : > { %vm1444_vm12 = vcmp.gt.f32.partialorder %v1213_v17, 0.0  ;;  %v1572_v30 = vmul.f32 0.01, %v1213_v17  ;;  %v1698_v20 = vsel %vm1442_vm10, %v1209_v42, %v1570_v51  ;;  %v4121_v42 = vld [vmem:[%s7697_s5 + $0x170] sm:$0xff] }
 0x181   : > { %v1699_v23 = vsel %vm1443_vm11, %v1211_v57, %v1571_v21 }
 0x182   : > { %v1925_v46 = vpack.c.bf16 %v1699_v23, %v1697_v26  ;;  %v1216_v48 = vpop.f32.mrb[60].mxu0  ;;  %v1700_v52 = vsel %vm1444_vm12, %v1213_v17, %v1572_v30 }
 0x183   : > { %v1217_v38 = vadd.f32 %v1216_v48, %v6248_v60  ;;  %4366 = vperm.xlu1 %5370, %v4120_v37   ;;  %4361 = vperm.xlu0 %5369, %v4119_v12   ;;  %v1218_v22 = vpop.f32.mrb[61].mxu0  ;;  %v1926_v2 = vpack.c.bf16 %v1700_v52, %v1698_v20  ;;  %v4123_v37 = vld [vmem:[%s7697_s5 + $0x180] sm:$0xff]  ;;  %v6705_v12 = vpop.permute.xlu1 %2122 }
 0x184   : > { %v1219_v7 = vadd.f32 %v1218_v22, %v6248_v60  ;;  %v1220_v53 = vpop.f32.mrb[62].mxu0  ;;  %7766 = vst [vmem:[#allocation16_spill] sm:$0xff] %v6705_v12  ;;  %v6707_v23 = vpop.permute.xlu0 %2117 }
 0x185   : > { %v1573_v40 = vmul.f32 0.01, %v1217_v38  ;;  %v1221_v57 = vadd.f32 %v1220_v53, %v6246_v59  ;;  %v1222_v51 = vpop.f32.mrb[63].mxu0  ;;  %3013 = vmatprep.subr.bf16.mxu0 %v1926_v2  ;;  %5054 = vmatprep.subr.bf16.mxu1 %v1926_v2  ;;  %vm1445_vm13 = vcmp.gt.f32.partialorder %v1217_v38, 0.0  ;;  %v4124_v53 = vld [vmem:[%s7697_s5 + $0x188] sm:$0xff]  ;;  %7767 = vst [vmem:[#allocation17_spill] sm:$0xff] %v6707_v23 }
 0x186   : > { %v1574_v17 = vmul.f32 0.01, %v1219_v7  ;;  %v1223_v21 = vadd.f32 %v1222_v51, %v6246_v59  ;;  %3014 = vmatpush1.bf16.msra.mxu0 %v1925_v46  ;;  %5070 = vmatpush1.bf16.msra.mxu1 %v1925_v46  ;;  %vm1446_vm14 = vcmp.gt.f32.partialorder %v1219_v7, 0.0 }
 0x187   : > { %vm1447_vm15 = vcmp.gt.f32.partialorder %v1221_v57, 0.0  ;;  %v1575_v60 = vmul.f32 0.01, %v1221_v57  ;;  %4376 = vperm.xlu1 %5370, %v4122_v39   ;;  %4371 = vperm.xlu0 %5369, %v4121_v42   ;;  %v1701_v59 = vsel %vm1445_vm13, %v1217_v38, %v1573_v40  ;;  %v4126_v42 = vld [vmem:[%s7697_s5 + $0x198] sm:$0xff]  ;;  %v4125_v40 = vld [vmem:[%s7697_s5 + $0x190] sm:$0xff] }
 0x188   : > { %vm1448_vm1 = vcmp.gt.f32.partialorder %v1223_v21, 0.0  ;;  %v1576_v30 = vmul.f32 0.01, %v1223_v21  ;;  %v1702_v20 = vsel %vm1446_vm14, %v1219_v7, %v1574_v17  ;;  %v5403_v7 = vld [vmem:[%s7695_s3] ss:$16 sps:$4 sm:$0xff]  }
 0x189   : > { %v1703_v26 = vsel %vm1447_vm15, %v1221_v57, %v1575_v60  ;;  %v5406_v57 = vld [vmem:[%s7695_s3 + $0x260] ss:$16 sps:$4 sm:$0xff]  }
 0x18a   : > { %v1927_v46 = vpack.c.bf16 %v1703_v26, %v1701_v59  ;;  %v1226_v48 = vpop.f32.mrb[64].mxu0  ;;  %v1704_v52 = vsel %vm1448_vm1, %v1223_v21, %v1576_v30  ;;  %v6731_v59 = vpop.permute.xlu1 %2132 }
 0x18b   : > { %v1227_v22 = vadd.f32 %v1226_v48, %v6269_v9  ;;  %4386 = vperm.xlu1 %5370, %v4124_v53   ;;  %4381 = vperm.xlu0 %5369, %v4123_v37   ;;  %v1228_v2 = vpop.f32.mrb[65].mxu0  ;;  %v1928_v39 = vpack.c.bf16 %v1704_v52, %v1702_v20  ;;  %v5420_v37 = vld [vmem:[%s7695_s3 + $0x284] ss:$16 sps:$4 sm:$0xff]   ;;  %7768 = vst [vmem:[#allocation18_spill] sm:$0xff] %v6731_v59  ;;  %v6733_v48 = vpop.permute.xlu0 %2127 }
 0x18c   : > { %v1229_v51 = vadd.f32 %v1228_v2, %v6269_v9  ;;  %v1230_v38 = vpop.f32.mrb[66].mxu0  ;;  %v5409_v9 = vld [vmem:[%s7695_s3 + $0x24] ss:$16 sps:$4 sm:$0xff]   ;;  %7769 = vst [vmem:[#allocation19_spill] sm:$0xff] %v6733_v48 }
 0x18d   : > { %v1577_v17 = vmul.f32 0.01, %v1227_v22  ;;  %v1231_v21 = vadd.f32 %v1230_v38, %v6258_v1  ;;  %v1232_v60 = vpop.f32.mrb[67].mxu0  ;;  %3015 = vmatprep.subr.bf16.mxu0 %v1928_v39  ;;  %5055 = vmatprep.subr.bf16.mxu1 %v1928_v39  ;;  %vm1449_vm2 = vcmp.gt.f32.partialorder %v1227_v22, 0.0 }
 0x18e   : > { %v1578_v30 = vmul.f32 0.01, %v1229_v51  ;;  %v1233_v53 = vadd.f32 %v1232_v60, %v6258_v1  ;;  %3016 = vmatpush1.bf16.msra.mxu0 %v1927_v46  ;;  %5071 = vmatpush1.bf16.msra.mxu1 %v1927_v46  ;;  %vm1450_vm3 = vcmp.gt.f32.partialorder %v1229_v51, 0.0  ;;  %v4128_v1 = vld [vmem:[%s7697_s5 + $0x1a8] sm:$0xff]  ;;  %v4127_v46 = vld [vmem:[%s7697_s5 + $0x1a0] sm:$0xff] }
 0x18f   : > { %vm1451_vm4 = vcmp.gt.f32.partialorder %v1231_v21, 0.0  ;;  %v1579_v26 = vmul.f32 0.01, %v1231_v21  ;;  %4396 = vperm.xlu1 %5370, %v4126_v42   ;;  %4391 = vperm.xlu0 %5369, %v4125_v40   ;;  %v1705_v52 = vsel %vm1449_vm2, %v1227_v22, %v1577_v17  ;;  %v4130_v22 = vld [vmem:[%s7697_s5 + $0x1b8] sm:$0xff]  ;;  %v5411_v17 = vld [vmem:[%s7695_s3 + $0x20] ss:$16 sps:$4 sm:$0xff]  }
 0x190   : > { %vm1452_vm5 = vcmp.gt.f32.partialorder %v1233_v53, 0.0  ;;  %v1580_v20 = vmul.f32 0.01, %v1233_v53  ;;  %v1706_v38 = vsel %vm1450_vm3, %v1229_v51, %v1578_v30  ;;  %v4129_v51 = vld [vmem:[%s7697_s5 + $0x1b0] sm:$0xff] }
 0x191   : > { %v1707_v2 = vsel %vm1451_vm4, %v1231_v21, %v1579_v26  ;;  %3018 = vmatmul.mubr.bf16.vlgmr.msra.gmra.mrb[128].mxu0 %v5403_v7  ;;  %3208 = vmatmul.mubr.bf16.vlgmr.msra.gmra.mrb[0].mxu1 %v5406_v57  ;;  %v5412_v21 = vld [vmem:[%s7695_s3 + $0x44] ss:$16 sps:$4 sm:$0xff]  }
 0x192   : > { %v1929_v39 = vpack.c.bf16 %v1707_v2, %v1705_v52  ;;  %v1236_v42 = vpop.f32.mrb[68].mxu0  ;;  %v1708_v40 = vsel %vm1452_vm5, %v1233_v53, %v1580_v20  ;;  %3027 = vmatprep.mubr.bf16.mxu0 %v5409_v9  ;;  %3217 = vmatprep.mubr.bf16.mxu1 %v5420_v37  ;;  %v6757_v9 = vpop.permute.xlu1 %2142  ;;  %v4132_v52 = vld [vmem:[%s7697_s5 + $0x1c8] sm:$0xff] }
 0x193   : > { %v1237_v60 = vadd.f32 %v1236_v42, %v6281_v16  ;;  %4406 = vperm.xlu1 %5370, %v4128_v1   ;;  %4401 = vperm.xlu0 %5369, %v4127_v46   ;;  %v1238_v59 = vpop.f32.mrb[69].mxu0  ;;  %v1930_v48 = vpack.c.bf16 %v1708_v40, %v1706_v38  ;;  %7770 = vst [vmem:[#allocation20_spill] sm:$0xff] %v6757_v9  ;;  %v5426_v1 = vld [vmem:[%s7695_s3 + $0x2a4] ss:$16 sps:$4 sm:$0xff]  }
 0x194   : > { %v1239_v7 = vadd.f32 %v1238_v59, %v6281_v16  ;;  %v1240_v57 = vpop.f32.mrb[70].mxu0  ;;  %v5423_v16 = vld [vmem:[%s7695_s3 + $0x280] ss:$16 sps:$4 sm:$0xff]   ;;  %v6763_v59 = vpop.permute.xlu0 %2137 }
 0x195   : > { %v1581_v30 = vmul.f32 0.01, %v1237_v60  ;;  %v1241_v53 = vadd.f32 %v1240_v57, %v6279_v15  ;;  %v1242_v37 = vpop.f32.mrb[71].mxu0  ;;  %3338 = vmatprep.subr.bf16.mxu1 %v1930_v48  ;;  %7771 = vst [vmem:[#allocation21_spill] sm:$0xff] %v6763_v59  ;;  %vm1453_vm0 = vcmp.gt.f32.partialorder %v1237_v60, 0.0 }
 0x196   : > { %v1582_v26 = vmul.f32 0.01, %v1239_v7  ;;  %v1243_v20 = vadd.f32 %v1242_v37, %v6279_v15  ;;  %3339 = vmatpush1.bf16.msra.mxu1 %v1929_v39  ;;  %vm1454_vm6 = vcmp.gt.f32.partialorder %v1239_v7, 0.0  ;;  %v4131_v15 = vld [vmem:[%s7697_s5 + $0x1c0] sm:$0xff] }
 0x197   : > { %vm1455_vm7 = vcmp.gt.f32.partialorder %v1241_v53, 0.0  ;;  %v1583_v46 = vmul.f32 0.01, %v1241_v53  ;;  %4416 = vperm.xlu1 %5370, %v4130_v22   ;;  %4411 = vperm.xlu0 %5369, %v4129_v51   ;;  %v1709_v2 = vsel %vm1453_vm0, %v1237_v60, %v1581_v30  ;;  %v6775_v22 = vpop.permute.xlu1 %2152  ;;  %v4134_v60 = vld [vmem:[%s7697_s5 + $0x1d8] sm:$0xff] }
 0x198   : > { %vm1456_vm8 = vcmp.gt.f32.partialorder %v1243_v20, 0.0  ;;  %v1584_v48 = vmul.f32 0.01, %v1243_v20  ;;  %v1710_v38 = vsel %vm1454_vm6, %v1239_v7, %v1582_v26  ;;  %7772 = vst [vmem:[#allocation22_spill] sm:$0xff] %v6775_v22  ;;  %v6777_v37 = vpop.permute.xlu0 %2147  ;;  %v4133_v7 = vld [vmem:[%s7697_s5 + $0x1d0] sm:$0xff] }
 0x199   : > { %v1711_v39 = vsel %vm1455_vm7, %v1241_v53, %v1583_v46  ;;  %3028 = vmatmul.mubr.bf16.gmra.mrb[132].mxu0 %v5411_v17  ;;  %3218 = vmatmul.mubr.bf16.gmra.mrb[4].mxu1 %v5423_v16  ;;  %7773 = vst [vmem:[#allocation23_spill] sm:$0xff] %v6777_v37  ;;  %v5414_v17 = vld [vmem:[%s7695_s3 + $0x40] ss:$16 sps:$4 sm:$0xff]   ;;  %v5415_v53 = vld [vmem:[%s7695_s3 + $0x64] ss:$16 sps:$4 sm:$0xff]  }
 0x19a   : > { %v1931_v42 = vpack.c.bf16 %v1711_v39, %v1709_v2  ;;  %v1712_v40 = vsel %vm1456_vm8, %v1243_v20, %v1584_v48  ;;  %3037 = vmatprep.mubr.bf16.mxu0 %v5412_v21  ;;  %3227 = vmatprep.mubr.bf16.mxu1 %v5426_v1  ;;  %v1246_v57 = vpop.f32.mrb[72].mxu0  ;;  %v5429_v16 = vld [vmem:[%s7695_s3 + $0x2a0] ss:$16 sps:$4 sm:$0xff]   ;;  %v5432_v46 = vld [vmem:[%s7695_s3 + $0x2c4] ss:$16 sps:$4 sm:$0xff]  }
 0x19b   : > { %4426 = vperm.xlu1 %5370, %v4132_v52   ;;  %4421 = vperm.xlu0 %5369, %v4131_v15   ;;  %v1932_v51 = vpack.c.bf16 %v1712_v40, %v1710_v38  ;;  %v1247_v9 = vadd.f32 %v1246_v57, %v6301_v29  ;;  %v1248_v59 = vpop.f32.mrb[73].mxu0  ;;  %v4136_v52 = vld [vmem:[%s7697_s5 + $0x1e8] sm:$0xff]  ;;  %v4135_v15 = vld [vmem:[%s7697_s5 + $0x1e0] sm:$0xff]  ;;  %v6807_v2 = vpop.permute.xlu1 %2162 }
 0x19c   : > { %v1249_v21 = vadd.f32 %v1248_v59, %v6301_v29  ;;  %v1250_v30 = vpop.f32.mrb[74].mxu0  ;;  %7774 = vst [vmem:[#allocation24_spill] sm:$0xff] %v6807_v2  ;;  %v5564_v37 = vld [vmem:[%s7695_s3 + $0x2a8] ss:$16 sps:$4 sm:$0xff]  }
 0x19d   : > { %3340 = vmatprep.subr.bf16.mxu1 %v1932_v51  ;;  %v1585_v26 = vmul.f32 0.01, %v1247_v9  ;;  %v1251_v20 = vadd.f32 %v1250_v30, %v6292_v24  ;;  %v1252_v1 = vpop.f32.mrb[75].mxu0  ;;  %vm1457_vm9 = vcmp.gt.f32.partialorder %v1247_v9, 0.0 }
 0x19e   : > { %3341 = vmatpush1.bf16.msra.mxu1 %v1931_v42  ;;  %vm1458_vm10 = vcmp.gt.f32.partialorder %v1249_v21, 0.0  ;;  %v1586_v29 = vmul.f32 0.01, %v1249_v21  ;;  %v1253_v59 = vadd.f32 %v1252_v1, %v6292_v24  ;;  %v6809_v42 = vpop.permute.xlu0 %2157 }
 0x19f   : > { %4436 = vperm.xlu1 %5370, %v4134_v60   ;;  %4431 = vperm.xlu0 %5369, %v4133_v7   ;;  %vm1459_vm11 = vcmp.gt.f32.partialorder %v1251_v20, 0.0  ;;  %v1587_v48 = vmul.f32 0.01, %v1251_v20  ;;  %7775 = vst [vmem:[#allocation25_spill] sm:$0xff] %v6809_v42  ;;  %v1713_v24 = vsel %vm1457_vm9, %v1247_v9, %v1585_v26  ;;  %v4138_v9 = vld [vmem:[%s7697_s5 + $0x1f8] sm:$0xff] }
 0x1a0   : > { %vm1460_vm12 = vcmp.gt.f32.partialorder %v1253_v59, 0.0  ;;  %v1588_v39 = vmul.f32 0.01, %v1253_v59  ;;  %v1714_v57 = vsel %vm1458_vm10, %v1249_v21, %v1586_v29  ;;  %v5417_v21 = vld [vmem:[%s7695_s3 + $0x60] ss:$16 sps:$4 sm:$0xff]  }
 0x1a1   : > { %3038 = vmatmul.mubr.bf16.gmra.mrb[136].mxu0 %v5414_v17  ;;  %3228 = vmatmul.mubr.bf16.gmra.mrb[8].mxu1 %v5429_v16  ;;  %v1715_v38 = vsel %vm1459_vm11, %v1251_v20, %v1587_v48  ;;  %v5435_v29 = vld [vmem:[%s7695_s3 + $0x2c0] ss:$16 sps:$4 sm:$0xff]  }
 0x1a2   : > { %v1256_v40 = vpop.f32.mrb[76].mxu0  ;;  %3047 = vmatprep.mubr.bf16.mxu0 %v5415_v53  ;;  %3237 = vmatprep.mubr.bf16.mxu1 %v5432_v46  ;;  %v1933_v51 = vpack.c.bf16 %v1715_v38, %v1713_v24  ;;  %v1716_v30 = vsel %vm1460_vm12, %v1253_v59, %v1588_v39  ;;  %v5418_v53 = vld [vmem:[%s7695_s3 + $0x84] ss:$16 sps:$4 sm:$0xff]   ;;  %v6838_v24 = vpop.permute.xlu0 %2167 }
 0x1a3   : > { %v1257_v60 = vadd.f32 %v1256_v40, %v6315_v36  ;;  %4446 = vperm.xlu1 %5370, %v4136_v52   ;;  %4441 = vperm.xlu0 %5369, %v4135_v15   ;;  %v1258_v7 = vpop.f32.mrb[77].mxu0  ;;  %v1934_v1 = vpack.c.bf16 %v1716_v30, %v1714_v57  ;;  %v5438_v52 = vld [vmem:[%s7695_s3 + $0x2e4] ss:$16 sps:$4 sm:$0xff]   ;;  %v6836_v15 = vpop.permute.xlu1 %2172  ;;  %7777 = vst [vmem:[#allocation27_spill] sm:$0xff] %v6838_v24 }
 0x1a4   : > { %v1259_v17 = vadd.f32 %v1258_v7, %v6315_v36  ;;  %v1260_v16 = vpop.f32.mrb[78].mxu0  ;;  %v4137_v36 = vld [vmem:[%s7697_s5 + $0x1f0] sm:$0xff]  ;;  %7776 = vst [vmem:[#allocation26_spill] sm:$0xff] %v6836_v15 }
 0x1a5   : > { %v1589_v26 = vmul.f32 0.01, %v1257_v60  ;;  %v1261_v20 = vadd.f32 %v1260_v16, %v6313_v35  ;;  %v1262_v46 = vpop.f32.mrb[79].mxu0  ;;  %vm1461_vm13 = vcmp.gt.f32.partialorder %v1257_v60, 0.0  ;;  %3342 = vmatprep.subr.bf16.mxu1 %v1934_v1 }
 0x1a6   : > { %v1590_v59 = vmul.f32 0.01, %v1259_v17  ;;  %v1263_v48 = vadd.f32 %v1262_v46, %v6313_v35  ;;  %vm1462_vm14 = vcmp.gt.f32.partialorder %v1259_v17, 0.0  ;;  %3343 = vmatpush1.bf16.msra.mxu1 %v1933_v51 }
 0x1a7   : > { %vm1463_vm15 = vcmp.gt.f32.partialorder %v1261_v20, 0.0  ;;  %v1591_v39 = vmul.f32 0.01, %v1261_v20  ;;  %4456 = vperm.xlu1 %5370, %v4138_v9   ;;  %4451 = vperm.xlu0 %5369, %v4137_v36   ;;  %v1717_v40 = vsel %vm1461_vm13, %v1257_v60, %v1589_v26  ;;  %v5422_v60 = vld [vmem:[%s7695_s3 + $0x80] ss:$16 sps:$4 sm:$0xff]  }
 0x1a8   : > { %vm1464_vm1 = vcmp.gt.f32.partialorder %v1263_v48, 0.0  ;;  %v1592_v38 = vmul.f32 0.01, %v1263_v48  ;;  %v1718_v30 = vsel %vm1462_vm14, %v1259_v17, %v1590_v59 }
 0x1a9   : > { %v1719_v57 = vsel %vm1463_vm15, %v1261_v20, %v1591_v39  ;;  %3048 = vmatmul.mubr.bf16.gmra.mrb[140].mxu0 %v5417_v21  ;;  %3238 = vmatmul.mubr.bf16.gmra.mrb[12].mxu1 %v5435_v29  ;;  %v5424_v21 = vld [vmem:[%s7695_s3 + $0xa4] ss:$16 sps:$4 sm:$0xff]   ;;  %v5441_v20 = vld [vmem:[%s7695_s3 + $0x2e0] ss:$16 sps:$4 sm:$0xff]  }
 0x1aa   : > { %v1935_v35 = vpack.c.bf16 %v1719_v57, %v1717_v40  ;;  %v1266_v7 = vpop.f32.mrb[80].mxu0  ;;  %v1720_v16 = vsel %vm1464_vm1, %v1263_v48, %v1592_v38  ;;  %3057 = vmatprep.mubr.bf16.mxu0 %v5418_v53  ;;  %3247 = vmatprep.mubr.bf16.mxu1 %v5438_v52  ;;  %v5444_v29 = vld [vmem:[%s7695_s3 + $0x304] ss:$16 sps:$4 sm:$0xff]  }
 0x1ab   : > { %v1267_v1 = vadd.f32 %v1266_v7, %v6337_v0  ;;  %v1268_v46 = vpop.f32.mrb[81].mxu0  ;;  %v1936_v51 = vpack.c.bf16 %v1720_v16, %v1718_v30 }
 0x1ac   : > { %v1269_v9 = vadd.f32 %v1268_v46, %v6337_v0  ;;  %v1270_v15 = vpop.f32.mrb[82].mxu0  ;;  %v5430_v46 = vld [vmem:[%s7695_s3 + $0xc4] ss:$16 sps:$4 sm:$0xff]  }
 0x1ad   : > { %v1593_v26 = vmul.f32 0.01, %v1267_v1  ;;  %v1271_v17 = vadd.f32 %v1270_v15, %v6325_v47  ;;  %v1272_v53 = vpop.f32.mrb[83].mxu0  ;;  %3344 = vmatprep.subr.bf16.mxu1 %v1936_v51  ;;  %vm1465_vm2 = vcmp.gt.f32.partialorder %v1267_v1, 0.0 }
 0x1ae   : > { %v1594_v0 = vmul.f32 0.01, %v1269_v9  ;;  %v1273_v36 = vadd.f32 %v1272_v53, %v6325_v47  ;;  %3345 = vmatpush1.bf16.msra.mxu1 %v1935_v35  ;;  %vm1466_vm3 = vcmp.gt.f32.partialorder %v1269_v9, 0.0 }
 0x1af   : > { %vm1467_vm4 = vcmp.gt.f32.partialorder %v1271_v17, 0.0  ;;  %v1595_v59 = vmul.f32 0.01, %v1271_v17  ;;  %v1721_v52 = vsel %vm1465_vm2, %v1267_v1, %v1593_v26  ;;  %v5428_v1 = vld [vmem:[%s7695_s3 + $0xa0] ss:$16 sps:$4 sm:$0xff]  }
 0x1b0   : > { %vm1468_vm5 = vcmp.gt.f32.partialorder %v1273_v36, 0.0  ;;  %v1596_v48 = vmul.f32 0.01, %v1273_v36  ;;  %v1722_v40 = vsel %vm1466_vm3, %v1269_v9, %v1594_v0 }
 0x1b1   : > { %v1723_v15 = vsel %vm1467_vm4, %v1271_v17, %v1595_v59  ;;  %3058 = vmatmul.mubr.bf16.gmra.mrb[144].mxu0 %v5422_v60  ;;  %3248 = vmatmul.mubr.bf16.gmra.mrb[16].mxu1 %v5441_v20  ;;  %v5450_v17 = vld [vmem:[%s7695_s3 + $0x324] ss:$16 sps:$4 sm:$0xff]  }
 0x1b2   : > { %v1937_v39 = vpack.c.bf16 %v1723_v15, %v1721_v52  ;;  %v1276_v38 = vpop.f32.mrb[84].mxu0  ;;  %v1724_v57 = vsel %vm1468_vm5, %v1273_v36, %v1596_v48  ;;  %3067 = vmatprep.mubr.bf16.mxu0 %v5424_v21  ;;  %3257 = vmatprep.mubr.bf16.mxu1 %v5444_v29  ;;  %v5447_v21 = vld [vmem:[%s7695_s3 + $0x300] ss:$16 sps:$4 sm:$0xff]  }
 0x1b3   : > { %v1277_v47 = vadd.f32 %v1276_v38, %v6352_v33  ;;  %v1278_v35 = vpop.f32.mrb[85].mxu0  ;;  %v1938_v7 = vpack.c.bf16 %v1724_v57, %v1722_v40  ;;  %v5434_v57 = vld [vmem:[%s7695_s3 + $0xc0] ss:$16 sps:$4 sm:$0xff]  }
 0x1b4   : > { %v1279_v30 = vadd.f32 %v1278_v35, %v6352_v33  ;;  %v1280_v16 = vpop.f32.mrb[86].mxu0 }
 0x1b5   : > { %v1597_v51 = vmul.f32 0.01, %v1277_v47  ;;  %v1281_v9 = vadd.f32 %v1280_v16, %v6350_v45  ;;  %v1282_v60 = vpop.f32.mrb[87].mxu0  ;;  %3346 = vmatprep.subr.bf16.mxu1 %v1938_v7  ;;  %vm1469_vm0 = vcmp.gt.f32.partialorder %v1277_v47, 0.0  ;;  %v7778_v7 = vld [vmem:[#allocation7_spill] sm:$0xff] }
 0x1b6   : > { %v1598_v33 = vmul.f32 0.01, %v1279_v30  ;;  %v1283_v26 = vadd.f32 %v1282_v60, %v6350_v45  ;;  %3347 = vmatpush1.bf16.msra.mxu1 %v1937_v39  ;;  %vm1470_vm6 = vcmp.gt.f32.partialorder %v1279_v30, 0.0 }
 0x1b7   : > { %vm1471_vm7 = vcmp.gt.f32.partialorder %v1281_v9, 0.0  ;;  %v1599_v53 = vmul.f32 0.01, %v1281_v9  ;;  %v1725_v0 = vsel %vm1469_vm0, %v1277_v47, %v1597_v51  ;;  %v5436_v47 = vld [vmem:[%s7695_s3 + $0xe4] ss:$16 sps:$4 sm:$0xff]  }
 0x1b8   : > { %vm1472_vm8 = vcmp.gt.f32.partialorder %v1283_v26, 0.0  ;;  %v1600_v20 = vmul.f32 0.01, %v1283_v26  ;;  %v1726_v48 = vsel %vm1470_vm6, %v1279_v30, %v1598_v33  ;;  %v5456_v51 = vld [vmem:[%s7695_s3 + $0x344] ss:$16 sps:$4 sm:$0xff]  }
 0x1b9   : > { %v1727_v36 = vsel %vm1471_vm7, %v1281_v9, %v1599_v53  ;;  %3068 = vmatmul.mubr.bf16.gmra.mrb[148].mxu0 %v5428_v1  ;;  %3258 = vmatmul.mubr.bf16.gmra.mrb[20].mxu1 %v5447_v21  ;;  %v5453_v1 = vld [vmem:[%s7695_s3 + $0x320] ss:$16 sps:$4 sm:$0xff]  }
 0x1ba   : > { %v1939_v29 = vpack.c.bf16 %v1727_v36, %v1725_v0  ;;  %v1286_v59 = vpop.f32.mrb[88].mxu0  ;;  %v1728_v52 = vsel %vm1472_vm8, %v1283_v26, %v1600_v20  ;;  %3077 = vmatprep.mubr.bf16.mxu0 %v5430_v46  ;;  %3267 = vmatprep.mubr.bf16.mxu1 %v5450_v17 }
 0x1bb   : > { %v1287_v45 = vadd.f32 %v1286_v59, %v6373_v31  ;;  %v1288_v15 = vpop.f32.mrb[89].mxu0  ;;  %v1940_v39 = vpack.c.bf16 %v1728_v52, %v1726_v48  ;;  %v5440_v52 = vld [vmem:[%s7695_s3 + $0xe0] ss:$16 sps:$4 sm:$0xff]  }
 0x1bc   : > { %v1289_v38 = vadd.f32 %v1288_v15, %v6373_v31  ;;  %v1290_v40 = vpop.f32.mrb[90].mxu0 }
 0x1bd   : > { %v1601_v35 = vmul.f32 0.01, %v1287_v45  ;;  %v1291_v30 = vadd.f32 %v1290_v40, %v7778_v7  ;;  %v1292_v16 = vpop.f32.mrb[91].mxu0  ;;  %3348 = vmatprep.subr.bf16.mxu1 %v1940_v39  ;;  %vm1473_vm9 = vcmp.gt.f32.partialorder %v1287_v45, 0.0  ;;  %v5459_v40 = vld [vmem:[%s7695_s3 + $0x340] ss:$16 sps:$4 sm:$0xff]  }
 0x1be   : > { %v1602_v31 = vmul.f32 0.01, %v1289_v38  ;;  %v1293_v46 = vadd.f32 %v1292_v16, %v7778_v7  ;;  %3349 = vmatpush1.bf16.msra.mxu1 %v1939_v29  ;;  %vm1474_vm10 = vcmp.gt.f32.partialorder %v1289_v38, 0.0 }
 0x1bf   : > { %vm1475_vm11 = vcmp.gt.f32.partialorder %v1291_v30, 0.0  ;;  %v1603_v9 = vmul.f32 0.01, %v1291_v30  ;;  %v1729_v21 = vsel %vm1473_vm9, %v1287_v45, %v1601_v35  ;;  %v5442_v45 = vld [vmem:[%s7695_s3 + $0x104] ss:$16 sps:$4 sm:$0xff]  }
 0x1c0   : > { %vm1476_vm12 = vcmp.gt.f32.partialorder %v1293_v46, 0.0  ;;  %v1604_v60 = vmul.f32 0.01, %v1293_v46  ;;  %v1730_v53 = vsel %vm1474_vm10, %v1289_v38, %v1602_v31 }
 0x1c1   : > { %v1731_v33 = vsel %vm1475_vm11, %v1291_v30, %v1603_v9  ;;  %3078 = vmatmul.mubr.bf16.gmra.mrb[152].mxu0 %v5434_v57  ;;  %3268 = vmatmul.mubr.bf16.gmra.mrb[24].mxu1 %v5453_v1 }
 0x1c2   : > { %v1941_v26 = vpack.c.bf16 %v1731_v33, %v1729_v21  ;;  %v1296_v17 = vpop.f32.mrb[92].mxu0  ;;  %v1732_v20 = vsel %vm1476_vm12, %v1293_v46, %v1604_v60  ;;  %3087 = vmatprep.mubr.bf16.mxu0 %v5436_v47  ;;  %3277 = vmatprep.mubr.bf16.mxu1 %v5456_v51  ;;  %v5462_v47 = vld [vmem:[%s7695_s3 + $0x364] ss:$16 sps:$4 sm:$0xff]  }
 0x1c3   : > { %v1297_v0 = vadd.f32 %v1296_v17, %v6399_v49  ;;  %v1298_v36 = vpop.f32.mrb[93].mxu0  ;;  %v1942_v29 = vpack.c.bf16 %v1732_v20, %v1730_v53  ;;  %v5448_v17 = vld [vmem:[%s7695_s3 + $0x124] ss:$16 sps:$4 sm:$0xff]  }
 0x1c4   : > { %v1299_v59 = vadd.f32 %v1298_v36, %v6399_v49  ;;  %v1300_v48 = vpop.f32.mrb[94].mxu0  ;;  %v5465_v36 = vld [vmem:[%s7695_s3 + $0x360] ss:$16 sps:$4 sm:$0xff]  }
 0x1c5   : > { %v1605_v15 = vmul.f32 0.01, %v1297_v0  ;;  %v1301_v39 = vadd.f32 %v1300_v48, %v6396_v19  ;;  %v1302_v38 = vpop.f32.mrb[95].mxu0  ;;  %3350 = vmatprep.subr.bf16.mxu1 %v1942_v29  ;;  %vm1477_vm13 = vcmp.gt.f32.partialorder %v1297_v0, 0.0 }
 0x1c6   : > { %v1606_v49 = vmul.f32 0.01, %v1299_v59  ;;  %v1303_v57 = vadd.f32 %v1302_v38, %v6396_v19  ;;  %3351 = vmatpush1.bf16.msra.mxu1 %v1941_v26  ;;  %vm1478_vm14 = vcmp.gt.f32.partialorder %v1299_v59, 0.0  ;;  %v5446_v26 = vld [vmem:[%s7695_s3 + $0x100] ss:$16 sps:$4 sm:$0xff]  }
 0x1c7   : > { %vm1479_vm15 = vcmp.gt.f32.partialorder %v1301_v39, 0.0  ;;  %v1607_v35 = vmul.f32 0.01, %v1301_v39  ;;  %v1733_v30 = vsel %vm1477_vm13, %v1297_v0, %v1605_v15 }
 0x1c8   : > { %vm1480_vm1 = vcmp.gt.f32.partialorder %v1303_v57, 0.0  ;;  %v1608_v7 = vmul.f32 0.01, %v1303_v57  ;;  %v1734_v46 = vsel %vm1478_vm14, %v1299_v59, %v1606_v49  ;;  %v5468_v59 = vld [vmem:[%s7695_s3 + $0x384] ss:$16 sps:$4 sm:$0xff]  }
 0x1c9   : > { %v1735_v16 = vsel %vm1479_vm15, %v1301_v39, %v1607_v35  ;;  %3088 = vmatmul.mubr.bf16.gmra.mrb[156].mxu0 %v5440_v52  ;;  %3278 = vmatmul.mubr.bf16.gmra.mrb[28].mxu1 %v5459_v40 }
 0x1ca   : > { %v1943_v1 = vpack.c.bf16 %v1735_v16, %v1733_v30  ;;  %v1306_v31 = vpop.f32.mrb[96].mxu0  ;;  %v1736_v51 = vsel %vm1480_vm1, %v1303_v57, %v1608_v7  ;;  %3097 = vmatprep.mubr.bf16.mxu0 %v5442_v45  ;;  %3287 = vmatprep.mubr.bf16.mxu1 %v5462_v47  ;;  %v5452_v30 = vld [vmem:[%s7695_s3 + $0x120] ss:$16 sps:$4 sm:$0xff]   ;;  %v5454_v16 = vld [vmem:[%s7695_s3 + $0x144] ss:$16 sps:$4 sm:$0xff]  }
 0x1cb   : > { %v1307_v19 = vadd.f32 %v1306_v31, %v6413_v50  ;;  %v1308_v9 = vpop.f32.mrb[97].mxu0  ;;  %v1944_v60 = vpack.c.bf16 %v1736_v51, %v1734_v46  ;;  %v7779_v31 = vld [vmem:[#allocation8_spill] sm:$0xff] }
 0x1cc   : > { %v1309_v21 = vadd.f32 %v1308_v9, %v6413_v50  ;;  %v1310_v33 = vpop.f32.mrb[98].mxu0 }
 0x1cd   : > { %v1609_v53 = vmul.f32 0.01, %v1307_v19  ;;  %v1311_v20 = vadd.f32 %v1310_v33, %v6410_v11  ;;  %v1312_v0 = vpop.f32.mrb[99].mxu0  ;;  %3352 = vmatprep.subr.bf16.mxu1 %v1944_v60  ;;  %vm1481_vm2 = vcmp.gt.f32.partialorder %v1307_v19, 0.0  ;;  %v5474_v60 = vld [vmem:[%s7695_s3 + $0x3a4] ss:$16 sps:$4 sm:$0xff]  }
 0x1ce   : > { %v1610_v50 = vmul.f32 0.01, %v1309_v21  ;;  %v1313_v29 = vadd.f32 %v1312_v0, %v6410_v11  ;;  %3353 = vmatpush1.bf16.msra.mxu1 %v1943_v1  ;;  %vm1482_vm3 = vcmp.gt.f32.partialorder %v1309_v21, 0.0 }
 0x1cf   : > { %vm1483_vm4 = vcmp.gt.f32.partialorder %v1311_v20, 0.0  ;;  %v1611_v48 = vmul.f32 0.01, %v1311_v20  ;;  %v1737_v45 = vsel %vm1481_vm2, %v1307_v19, %v1609_v53  ;;  %v5471_v19 = vld [vmem:[%s7695_s3 + $0x380] ss:$16 sps:$4 sm:$0xff]  }
 0x1d0   : > { %vm1484_vm5 = vcmp.gt.f32.partialorder %v1313_v29, 0.0  ;;  %v1612_v52 = vmul.f32 0.01, %v1313_v29  ;;  %v1738_v40 = vsel %vm1482_vm3, %v1309_v21, %v1610_v50 }
 0x1d1   : > { %v1739_v15 = vsel %vm1483_vm4, %v1311_v20, %v1611_v48  ;;  %3098 = vmatmul.mubr.bf16.gmra.mrb[160].mxu0 %v5446_v26  ;;  %3288 = vmatmul.mubr.bf16.gmra.mrb[32].mxu1 %v5465_v36 }
 0x1d2   : > { %v1945_v39 = vpack.c.bf16 %v1739_v15, %v1737_v45  ;;  %v1316_v38 = vpop.f32.mrb[100].mxu0  ;;  %v1740_v49 = vsel %vm1484_vm5, %v1313_v29, %v1612_v52  ;;  %3107 = vmatprep.mubr.bf16.mxu0 %v5448_v17  ;;  %3297 = vmatprep.mubr.bf16.mxu1 %v5468_v59  ;;  %v5458_v45 = vld [vmem:[%s7695_s3 + $0x140] ss:$16 sps:$4 sm:$0xff]   ;;  %v5460_v15 = vld [vmem:[%s7695_s3 + $0x164] ss:$16 sps:$4 sm:$0xff]  }
 0x1d3   : > { %v1317_v11 = vadd.f32 %v1316_v38, %v6438_v61  ;;  %v1318_v57 = vpop.f32.mrb[101].mxu0  ;;  %v1946_v47 = vpack.c.bf16 %v1740_v49, %v1738_v40  ;;  %v5477_v49 = vld [vmem:[%s7695_s3 + $0x3a0] ss:$16 sps:$4 sm:$0xff]  }
 0x1d4   : > { %v1319_v35 = vadd.f32 %v1318_v57, %v6438_v61  ;;  %v1320_v7 = vpop.f32.mrb[102].mxu0  ;;  %v5480_v57 = vld [vmem:[%s7695_s3 + $0x3c4] ss:$16 sps:$4 sm:$0xff]  }
 0x1d5   : > { %v1613_v1 = vmul.f32 0.01, %v1317_v11  ;;  %v1321_v46 = vadd.f32 %v1320_v7, %v7779_v31  ;;  %v1322_v51 = vpop.f32.mrb[103].mxu0  ;;  %3354 = vmatprep.subr.bf16.mxu1 %v1946_v47  ;;  %vm1485_vm0 = vcmp.gt.f32.partialorder %v1317_v11, 0.0 }
 0x1d6   : > { %v1614_v61 = vmul.f32 0.01, %v1319_v35  ;;  %v1323_v9 = vadd.f32 %v1322_v51, %v7779_v31  ;;  %3355 = vmatpush1.bf16.msra.mxu1 %v1945_v39  ;;  %vm1486_vm6 = vcmp.gt.f32.partialorder %v1319_v35, 0.0 }
 0x1d7   : > { %vm1487_vm7 = vcmp.gt.f32.partialorder %v1321_v46, 0.0  ;;  %v1615_v21 = vmul.f32 0.01, %v1321_v46  ;;  %v1741_v26 = vsel %vm1485_vm0, %v1317_v11, %v1613_v1 }
 0x1d8   : > { %vm1488_vm8 = vcmp.gt.f32.partialorder %v1323_v9, 0.0  ;;  %v1616_v33 = vmul.f32 0.01, %v1323_v9  ;;  %v1742_v0 = vsel %vm1486_vm6, %v1319_v35, %v1614_v61 }
 0x1d9   : > { %v1743_v17 = vsel %vm1487_vm7, %v1321_v46, %v1615_v21  ;;  %3108 = vmatmul.mubr.bf16.gmra.mrb[164].mxu0 %v5452_v30  ;;  %3298 = vmatmul.mubr.bf16.gmra.mrb[36].mxu1 %v5471_v19  ;;  %v5466_v21 = vld [vmem:[%s7695_s3 + $0x184] ss:$16 sps:$4 sm:$0xff]  }
 0x1da   : > { %v1947_v53 = vpack.c.bf16 %v1743_v17, %v1741_v26  ;;  %v1326_v20 = vpop.f32.mrb[104].mxu0  ;;  %v1744_v36 = vsel %vm1488_vm8, %v1323_v9, %v1616_v33  ;;  %3117 = vmatprep.mubr.bf16.mxu0 %v5454_v16  ;;  %3307 = vmatprep.mubr.bf16.mxu1 %v5474_v60  ;;  %v5464_v60 = vld [vmem:[%s7695_s3 + $0x160] ss:$16 sps:$4 sm:$0xff]   ;;  %v7780_v26 = vld [vmem:[#allocation9_spill] sm:$0xff] }
 0x1db   : > { %v1327_v50 = vadd.f32 %v1326_v20, %v6459_v43  ;;  %v1328_v29 = vpop.f32.mrb[105].mxu0  ;;  %v1948_v59 = vpack.c.bf16 %v1744_v36, %v1742_v0  ;;  %v5483_v20 = vld [vmem:[%s7695_s3 + $0x3c0] ss:$16 sps:$4 sm:$0xff]   ;;  %v5486_v36 = vld [vmem:[%s7695_s3 + $0x3e4] ss:$16 sps:$4 sm:$0xff]  }
 0x1dc   : > { %v1329_v48 = vadd.f32 %v1328_v29, %v6459_v43  ;;  %v1330_v52 = vpop.f32.mrb[106].mxu0 }
 0x1dd   : > { %v1617_v39 = vmul.f32 0.01, %v1327_v50  ;;  %v1331_v38 = vadd.f32 %v1330_v52, %v6457_v41  ;;  %v1332_v40 = vpop.f32.mrb[107].mxu0  ;;  %3356 = vmatprep.subr.bf16.mxu1 %v1948_v59  ;;  %vm1489_vm9 = vcmp.gt.f32.partialorder %v1327_v50, 0.0 }
 0x1de   : > { %v1618_v43 = vmul.f32 0.01, %v1329_v48  ;;  %v1333_v11 = vadd.f32 %v1332_v40, %v6457_v41  ;;  %3357 = vmatpush1.bf16.msra.mxu1 %v1947_v53  ;;  %vm1490_vm10 = vcmp.gt.f32.partialorder %v1329_v48, 0.0 }
 0x1df   : > { %vm1491_vm11 = vcmp.gt.f32.partialorder %v1331_v38, 0.0  ;;  %v1619_v47 = vmul.f32 0.01, %v1331_v38  ;;  %v1745_v7 = vsel %vm1489_vm9, %v1327_v50, %v1617_v39 }
 0x1e0   : > { %vm1492_vm12 = vcmp.gt.f32.partialorder %v1333_v11, 0.0  ;;  %v1620_v35 = vmul.f32 0.01, %v1333_v11  ;;  %v1746_v31 = vsel %vm1490_vm10, %v1329_v48, %v1618_v43  ;;  %v5470_v43 = vld [vmem:[%s7695_s3 + $0x180] ss:$16 sps:$4 sm:$0xff]  }
 0x1e1   : > { %v1747_v30 = vsel %vm1491_vm11, %v1331_v38, %v1619_v47  ;;  %3118 = vmatmul.mubr.bf16.gmra.mrb[168].mxu0 %v5458_v45  ;;  %3308 = vmatmul.mubr.bf16.gmra.mrb[40].mxu1 %v5477_v49  ;;  %v5472_v47 = vld [vmem:[%s7695_s3 + $0x1a4] ss:$16 sps:$4 sm:$0xff]  }
 0x1e2   : > { %v1949_v16 = vpack.c.bf16 %v1747_v30, %v1745_v7  ;;  %v1336_v1 = vpop.f32.mrb[108].mxu0  ;;  %v1748_v46 = vsel %vm1492_vm12, %v1333_v11, %v1620_v35  ;;  %3127 = vmatprep.mubr.bf16.mxu0 %v5460_v15  ;;  %3317 = vmatprep.mubr.bf16.mxu1 %v5480_v57  ;;  %v5489_v35 = vld [vmem:[%s7695_s3 + $0x3e0] ss:$16 sps:$4 sm:$0xff]  }
 0x1e3   : > { %v1337_v41 = vadd.f32 %v1336_v1, %v6481_v25  ;;  %v1338_v51 = vpop.f32.mrb[109].mxu0  ;;  %v1950_v19 = vpack.c.bf16 %v1748_v46, %v1746_v31  ;;  %v5494_v1 = vld [vmem:[%s7695_s3 + $0xc] ss:$16 sps:$4 sm:$0xff]  }
 0x1e4   : > { %v1339_v61 = vadd.f32 %v1338_v51, %v6481_v25  ;;  %v1340_v9 = vpop.f32.mrb[110].mxu0 }
 0x1e5   : > { %v1621_v33 = vmul.f32 0.01, %v1337_v41  ;;  %v1341_v17 = vadd.f32 %v1340_v9, %v7780_v26  ;;  %v1342_v53 = vpop.f32.mrb[111].mxu0  ;;  %3358 = vmatprep.subr.bf16.mxu1 %v1950_v19  ;;  %vm1493_vm13 = vcmp.gt.f32.partialorder %v1337_v41, 0.0 }
 0x1e6   : > { %v1622_v25 = vmul.f32 0.01, %v1339_v61  ;;  %v1343_v0 = vadd.f32 %v1342_v53, %v7780_v26  ;;  %3359 = vmatpush1.bf16.msra.mxu1 %v1949_v16  ;;  %vm1494_vm14 = vcmp.gt.f32.partialorder %v1339_v61, 0.0 }
 0x1e7   : > { %vm1495_vm15 = vcmp.gt.f32.partialorder %v1341_v17, 0.0  ;;  %v1623_v50 = vmul.f32 0.01, %v1341_v17  ;;  %v1749_v59 = vsel %vm1493_vm13, %v1337_v41, %v1621_v33 }
 0x1e8   : > { %vm1496_vm1 = vcmp.gt.f32.partialorder %v1343_v0, 0.0  ;;  %v1624_v29 = vmul.f32 0.01, %v1343_v0  ;;  %v1750_v45 = vsel %vm1494_vm14, %v1339_v61, %v1622_v25 }
 0x1e9   : > { %v1751_v48 = vsel %vm1495_vm15, %v1341_v17, %v1623_v50  ;;  %3128 = vmatmul.mubr.bf16.gmra.mrb[172].mxu0 %v5464_v60  ;;  %3318 = vmatmul.mubr.bf16.gmra.mrb[44].mxu1 %v5483_v20  ;;  %v5476_v20 = vld [vmem:[%s7695_s3 + $0x1a0] ss:$16 sps:$4 sm:$0xff]   ;;  %v5478_v50 = vld [vmem:[%s7695_s3 + $0x1c4] ss:$16 sps:$4 sm:$0xff]  }
 0x1ea   : > { %v1951_v52 = vpack.c.bf16 %v1751_v48, %v1749_v59  ;;  %v1752_v15 = vsel %vm1496_vm1, %v1343_v0, %v1624_v29  ;;  %3137 = vmatprep.mubr.bf16.mxu0 %v5466_v21  ;;  %3327 = vmatprep.mubr.bf16.mxu1 %v5486_v36 }
 0x1eb   : > { %v1346_v39 = vpop.f32.mrb[112].mxu0  ;;  %v1952_v38 = vpack.c.bf16 %v1752_v15, %v1750_v45 }
 0x1ec   : > { %v1347_v40 = vadd.f32 %v1346_v39, %v6493_v28  ;;  %v1348_v49 = vpop.f32.mrb[113].mxu0 }
 0x1ed   : > { %v1349_v11 = vadd.f32 %v1348_v49, %v6493_v28  ;;  %v1350_v57 = vpop.f32.mrb[114].mxu0  ;;  %3360 = vmatprep.subr.bf16.mxu1 %v1952_v38 }
 0x1ee   : > { %v1625_v7 = vmul.f32 0.01, %v1347_v40  ;;  %v1351_v30 = vadd.f32 %v1350_v57, %v6490_v10  ;;  %v1352_v16 = vpop.f32.mrb[115].mxu0  ;;  %3361 = vmatpush1.bf16.msra.mxu1 %v1951_v52  ;;  %vm1497_vm2 = vcmp.gt.f32.partialorder %v1347_v40, 0.0 }
 0x1ef   : > { %v1626_v28 = vmul.f32 0.01, %v1349_v11  ;;  %v1353_v31 = vadd.f32 %v1352_v16, %v6490_v10  ;;  %vm1498_vm3 = vcmp.gt.f32.partialorder %v1349_v11, 0.0 }
 0x1f0   : > { %vm1499_vm4 = vcmp.gt.f32.partialorder %v1351_v30, 0.0  ;;  %v1627_v46 = vmul.f32 0.01, %v1351_v30  ;;  %v1753_v51 = vsel %vm1497_vm2, %v1347_v40, %v1625_v7  ;;  %v7781_v7 = vld [vmem:[#allocation10_spill] sm:$0xff] }
 0x1f1   : > { %vm1500_vm5 = vcmp.gt.f32.partialorder %v1353_v31, 0.0  ;;  %v1628_v41 = vmul.f32 0.01, %v1353_v31  ;;  %3138 = vmatmul.mubr.bf16.gmra.mrb[176].mxu0 %v5470_v43  ;;  %3328 = vmatmul.mubr.bf16.gmra.mrb[48].mxu1 %v5489_v35  ;;  %v1754_v60 = vsel %vm1498_vm3, %v1349_v11, %v1626_v28 }
 0x1f2   : > { %v1755_v19 = vsel %vm1499_vm4, %v1351_v30, %v1627_v46  ;;  %3147 = vmatprep.mubr.bf16.mxu0 %v5472_v47  ;;  %3370 = vmatprep.mubr.bf16.mxu1 %v5494_v1  ;;  %v5482_v47 = vld [vmem:[%s7695_s3 + $0x1c0] ss:$16 sps:$4 sm:$0xff]   ;;  %v5484_v1 = vld [vmem:[%s7695_s3 + $0x1e4] ss:$16 sps:$4 sm:$0xff]  }
 0x1f3   : > { %v1953_v61 = vpack.c.bf16 %v1755_v19, %v1753_v51  ;;  %v1356_v9 = vpop.f32.mrb[116].mxu0  ;;  %v1756_v21 = vsel %vm1500_vm5, %v1353_v31, %v1628_v41 }
 0x1f4   : > { %v1357_v33 = vadd.f32 %v1356_v9, %v6512_v14  ;;  %v1358_v26 = vpop.f32.mrb[117].mxu0  ;;  %v1954_v17 = vpack.c.bf16 %v1756_v21, %v1754_v60 }
 0x1f5   : > { %v1359_v10 = vadd.f32 %v1358_v26, %v6512_v14  ;;  %v1360_v53 = vpop.f32.mrb[118].mxu0 }
 0x1f6   : > { %v1629_v25 = vmul.f32 0.01, %v1357_v33  ;;  %v1361_v0 = vadd.f32 %v1360_v53, %v6510_v56  ;;  %v1362_v36 = vpop.f32.mrb[119].mxu0  ;;  %3362 = vmatprep.subr.bf16.mxu1 %v1954_v17  ;;  %vm1501_vm0 = vcmp.gt.f32.partialorder %v1357_v33, 0.0  ;;  %v5488_v53 = vld [vmem:[%s7695_s3 + $0x1e0] ss:$16 sps:$4 sm:$0xff]  }
 0x1f7   : > { %v1630_v29 = vmul.f32 0.01, %v1359_v10  ;;  %v1363_v59 = vadd.f32 %v1362_v36, %v6510_v56  ;;  %3363 = vmatpush1.bf16.msra.mxu1 %v1953_v61  ;;  %vm1502_vm6 = vcmp.gt.f32.partialorder %v1359_v10, 0.0 }
 0x1f8   : > { %vm1503_vm7 = vcmp.gt.f32.partialorder %v1361_v0, 0.0  ;;  %v1631_v14 = vmul.f32 0.01, %v1361_v0  ;;  %v1757_v52 = vsel %vm1501_vm0, %v1357_v33, %v1629_v25  ;;  %v7782_v25 = vld [vmem:[#allocation11_spill] sm:$0xff] }
 0x1f9   : > { %vm1504_vm8 = vcmp.gt.f32.partialorder %v1363_v59, 0.0  ;;  %v1632_v48 = vmul.f32 0.01, %v1363_v59  ;;  %3148 = vmatmul.mubr.bf16.gmra.mrb[180].mxu0 %v5476_v20  ;;  %v1758_v38 = vsel %vm1502_vm6, %v1359_v10, %v1630_v29 }
 0x1fa   : > { %v1759_v45 = vsel %vm1503_vm7, %v1361_v0, %v1631_v14  ;;  %3157 = vmatprep.mubr.bf16.mxu0 %v5478_v50  ;;  %v5490_v50 = vld [vmem:[%s7695_s3 + $0x204] ss:$16 sps:$4 sm:$0xff]  }
 0x1fb   : > { %v1955_v15 = vpack.c.bf16 %v1759_v45, %v1757_v52  ;;  %v1366_v39 = vpop.f32.mrb[120].mxu0  ;;  %v1760_v40 = vsel %vm1504_vm8, %v1363_v59, %v1632_v48 }
 0x1fc   : > { %v1367_v49 = vadd.f32 %v1366_v39, %v6526_v32  ;;  %v1368_v43 = vpop.f32.mrb[121].mxu0  ;;  %v1956_v11 = vpack.c.bf16 %v1760_v40, %v1758_v38  ;;  %v5495_v40 = vld [vmem:[%s7695_s3 + $0x200] ss:$16 sps:$4 sm:$0xff]  }
 0x1fd   : > { %v1369_v56 = vadd.f32 %v1368_v43, %v6526_v32  ;;  %v1370_v57 = vpop.f32.mrb[122].mxu0  ;;  %v5496_v43 = vld [vmem:[%s7695_s3 + $0x224] ss:$16 sps:$4 sm:$0xff]  }
 0x1fe   : > { %v1633_v35 = vmul.f32 0.01, %v1367_v49  ;;  %v1371_v30 = vadd.f32 %v1370_v57, %v7781_v7  ;;  %v1372_v16 = vpop.f32.mrb[123].mxu0  ;;  %3364 = vmatprep.subr.bf16.mxu1 %v1956_v11  ;;  %vm1505_vm9 = vcmp.gt.f32.partialorder %v1367_v49, 0.0  ;;  %v5498_v11 = vld [vmem:[%s7695_s3 + $0x2c] ss:$16 sps:$4 sm:$0xff]  }
 0x1ff   : > { %v1634_v28 = vmul.f32 0.01, %v1369_v56  ;;  %v1373_v31 = vadd.f32 %v1372_v16, %v7781_v7  ;;  %3365 = vmatpush1.bf16.msra.mxu1 %v1955_v15  ;;  %vm1506_vm10 = vcmp.gt.f32.partialorder %v1369_v56, 0.0  ;;  %v5501_v57 = vld [vmem:[%s7695_s3 + $0x28] ss:$16 sps:$4 sm:$0xff]  }
 0x200   : > { %vm1507_vm11 = vcmp.gt.f32.partialorder %v1371_v30, 0.0  ;;  %v1635_v32 = vmul.f32 0.01, %v1371_v30  ;;  %v1761_v41 = vsel %vm1505_vm9, %v1367_v49, %v1633_v35  ;;  %v5492_v49 = vld [vmem:[%s7695_s3 + $0x8] ss:$16 sps:$4 sm:$0xff]  }
 0x201   : > { %vm1508_vm12 = vcmp.gt.f32.partialorder %v1373_v31, 0.0  ;;  %v1636_v46 = vmul.f32 0.01, %v1373_v31  ;;  %3158 = vmatmul.mubr.bf16.gmra.mrb[184].mxu0 %v5482_v47  ;;  %v1762_v9 = vsel %vm1506_vm10, %v1369_v56, %v1634_v28  ;;  %v5500_v56 = vld [vmem:[%s7695_s3 + $0x220] ss:$16 sps:$4 sm:$0xff]  }
 0x202   : > { %v1763_v51 = vsel %vm1507_vm11, %v1371_v30, %v1635_v32  ;;  %3167 = vmatprep.mubr.bf16.mxu0 %v5484_v1  ;;  %v5502_v47 = vld [vmem:[%s7695_s3 + $0x244] ss:$16 sps:$4 sm:$0xff]   ;;  %v5504_v35 = vld [vmem:[%s7695_s3 + $0x4c] ss:$16 sps:$4 sm:$0xff]   ;;  %v5506_v7 = vld [vmem:[%s7695_s3 + $0x240] ss:$16 sps:$4 sm:$0xff]  }
 0x203   : > { %v1957_v19 = vpack.c.bf16 %v1763_v51, %v1761_v41  ;;  %v1376_v61 = vpop.f32.mrb[124].mxu0  ;;  %v1764_v60 = vsel %vm1508_vm12, %v1373_v31, %v1636_v46  ;;  %v5507_v30 = vld [vmem:[%s7695_s3 + $0x48] ss:$16 sps:$4 sm:$0xff]   ;;  %v5508_v16 = vld [vmem:[%s7695_s3 + $0x6c] ss:$16 sps:$4 sm:$0xff]  }
 0x204   : > { %v1377_v21 = vadd.f32 %v1376_v61, %v6546_v3  ;;  %v1378_v33 = vpop.f32.mrb[125].mxu0  ;;  %v1958_v26 = vpack.c.bf16 %v1764_v60, %v1762_v9  ;;  %v5510_v1 = vld [vmem:[%s7695_s3 + $0x68] ss:$16 sps:$4 sm:$0xff]   ;;  %v5511_v28 = vld [vmem:[%s7695_s3 + $0x8c] ss:$16 sps:$4 sm:$0xff]  }
 0x205   : > { %v1379_v17 = vadd.f32 %v1378_v33, %v6546_v3  ;;  %v1380_v10 = vpop.f32.mrb[126].mxu0  ;;  %v5513_v31 = vld [vmem:[%s7695_s3 + $0x88] ss:$16 sps:$4 sm:$0xff]   ;;  %v5514_v32 = vld [vmem:[%s7695_s3 + $0xac] ss:$16 sps:$4 sm:$0xff]  }
 0x206   : > { %v1637_v20 = vmul.f32 0.01, %v1377_v21  ;;  %v1381_v0 = vadd.f32 %v1380_v10, %v7782_v25  ;;  %v1382_v36 = vpop.f32.mrb[127].mxu0  ;;  %3366 = vmatprep.subr.bf16.mxu1 %v1958_v26  ;;  %vm1509_vm13 = vcmp.gt.f32.partialorder %v1377_v21, 0.0  ;;  %v5516_v46 = vld [vmem:[%s7695_s3 + $0xa8] ss:$16 sps:$4 sm:$0xff]  }
 0x207   : > { %v1638_v29 = vmul.f32 0.01, %v1379_v17  ;;  %v1383_v59 = vadd.f32 %v1382_v36, %v7782_v25  ;;  %3367 = vmatpush1.bf16.msra.mxu1 %v1957_v19  ;;  %vm1510_vm14 = vcmp.gt.f32.partialorder %v1379_v17, 0.0  ;;  %v5517_v41 = vld [vmem:[%s7695_s3 + $0xcc] ss:$16 sps:$4 sm:$0xff]  }
 0x208   : > { %vm1511_vm15 = vcmp.gt.f32.partialorder %v1381_v0, 0.0  ;;  %v1639_v3 = vmul.f32 0.01, %v1381_v0  ;;  %v1765_v48 = vsel %vm1509_vm13, %v1377_v21, %v1637_v20  ;;  %v5519_v51 = vld [vmem:[%s7695_s3 + $0xc8] ss:$16 sps:$4 sm:$0xff]  }
 0x209   : > { %vm1512_vm1 = vcmp.gt.f32.partialorder %v1383_v59, 0.0  ;;  %v1640_v14 = vmul.f32 0.01, %v1383_v59  ;;  %3168 = vmatmul.mubr.bf16.gmra.mrb[188].mxu0 %v5488_v53  ;;  %v1766_v15 = vsel %vm1510_vm14, %v1379_v17, %v1638_v29  ;;  %v5520_v19 = vld [vmem:[%s7695_s3 + $0xec] ss:$16 sps:$4 sm:$0xff]  }
 0x20a   : > { %v1767_v52 = vsel %vm1511_vm15, %v1381_v0, %v1639_v3  ;;  %3177 = vmatprep.mubr.bf16.mxu0 %v5490_v50  ;;  %v5522_v61 = vld [vmem:[%s7695_s3 + $0xe8] ss:$16 sps:$4 sm:$0xff]   ;;  %v5523_v9 = vld [vmem:[%s7695_s3 + $0x10c] ss:$16 sps:$4 sm:$0xff]  }
 0x20b   : > { %v1959_v45 = vpack.c.bf16 %v1767_v52, %v1765_v48  ;;  %v1768_v39 = vsel %vm1512_vm1, %v1383_v59, %v1640_v14  ;;  %v5525_v60 = vld [vmem:[%s7695_s3 + $0x108] ss:$16 sps:$4 sm:$0xff]   ;;  %v5526_v21 = vld [vmem:[%s7695_s3 + $0x12c] ss:$16 sps:$4 sm:$0xff]  }
 0x20c   : > { %v1960_v38 = vpack.c.bf16 %v1768_v39, %v1766_v15  ;;  %v5528_v33 = vld [vmem:[%s7695_s3 + $0x128] ss:$16 sps:$4 sm:$0xff]   ;;  %v5529_v26 = vld [vmem:[%s7695_s3 + $0x14c] ss:$16 sps:$4 sm:$0xff]  }
 0x20d   : > { %v5531_v17 = vld [vmem:[%s7695_s3 + $0x148] ss:$16 sps:$4 sm:$0xff]   ;;  %v5532_v10 = vld [vmem:[%s7695_s3 + $0x16c] ss:$16 sps:$4 sm:$0xff]  }
 0x20e   : > { %3368 = vmatprep.subr.bf16.mxu1 %v1960_v38  ;;  %v5534_v0 = vld [vmem:[%s7695_s3 + $0x168] ss:$16 sps:$4 sm:$0xff]   ;;  %v5535_v50 = vld [vmem:[%s7695_s3 + $0x18c] ss:$16 sps:$4 sm:$0xff]  }
 0x20f   : > { %3369 = vmatpush1.bf16.msra.mxu1 %v1959_v45  ;;  %v5537_v14 = vld [vmem:[%s7695_s3 + $0x188] ss:$16 sps:$4 sm:$0xff]   ;;  %v5538_v52 = vld [vmem:[%s7695_s3 + $0x1ac] ss:$16 sps:$4 sm:$0xff]  }
 0x210   : > { %v5540_v38 = vld [vmem:[%s7695_s3 + $0x1a8] ss:$16 sps:$4 sm:$0xff]  }
 0x211   : > { %3178 = vmatmul.mubr.bf16.gmra.mrb[192].mxu0 %v5495_v40 }
 0x212   : > { %3371 = vmatmul.mubr.bf16.vlgmr.msra.gmra.mrb[52].mxu1 %v5492_v49  ;;  %3187 = vmatprep.mubr.bf16.mxu0 %v5496_v43  ;;  %v5541_v49 = vld [vmem:[%s7695_s3 + $0x1cc] ss:$16 sps:$4 sm:$0xff]  }
 0x213   : > { %3380 = vmatprep.mubr.bf16.mxu1 %v5498_v11 }
 0x219   : > { %3188 = vmatmul.mubr.bf16.gmra.mrb[196].mxu0 %v5500_v56 }
 0x21a   : > { %3381 = vmatmul.mubr.bf16.gmra.mrb[56].mxu1 %v5501_v57  ;;  %3197 = vmatprep.mubr.bf16.mxu0 %v5502_v47  ;;  %v5543_v57 = vld [vmem:[%s7695_s3 + $0x1c8] ss:$16 sps:$4 sm:$0xff]  }
 0x21b   : > { %3390 = vmatprep.mubr.bf16.mxu1 %v5504_v35  ;;  %v5544_v35 = vld [vmem:[%s7695_s3 + $0x1ec] ss:$16 sps:$4 sm:$0xff]  }
 0x221   : > { %3198 = vmatmul.mubr.bf16.gmra.mrb[200].mxu0 %v5506_v7  ;;  %v7151_v7 = vpop.permute.xlu1 %2182 }
 0x222   : > { %3391 = vmatmul.mubr.bf16.gmra.mrb[60].mxu1 %v5507_v30  ;;  %7783 = vst [vmem:[#allocation7_spill] sm:$0xff] %v7151_v7  ;;  %v7153_v30 = vpop.permute.xlu0 %2177 }
 0x223   : > { %3400 = vmatprep.mubr.bf16.mxu1 %v5508_v16  ;;  %7784 = vst [vmem:[#allocation8_spill] sm:$0xff] %v7153_v30 }
 0x22a   : > { %3401 = vmatmul.mubr.bf16.gmra.mrb[64].mxu1 %v5510_v1 }
 0x22b   : > { %3410 = vmatprep.mubr.bf16.mxu1 %v5511_v28 }
 0x232   : > { %3411 = vmatmul.mubr.bf16.gmra.mrb[68].mxu1 %v5513_v31  ;;  %v5546_v31 = vld [vmem:[%s7695_s3 + $0x1e8] ss:$16 sps:$4 sm:$0xff]  }
 0x233   : > { %3420 = vmatprep.mubr.bf16.mxu1 %v5514_v32 }
 0x23a   : > { %3421 = vmatmul.mubr.bf16.gmra.mrb[72].mxu1 %v5516_v46  ;;  %v5547_v46 = vld [vmem:[%s7695_s3 + $0x20c] ss:$16 sps:$4 sm:$0xff]  }
 0x23b   : > { %3430 = vmatprep.mubr.bf16.mxu1 %v5517_v41  ;;  %v7169_v41 = vpop.permute.xlu1 %2192 }
 0x23c   : > { %7785 = vst [vmem:[#allocation9_spill] sm:$0xff] %v7169_v41  ;;  %v5558_v41 = vld [vmem:[%s7695_s3 + $0x268] ss:$16 sps:$4 sm:$0xff]  }
 0x242   : > { %3431 = vmatmul.mubr.bf16.gmra.mrb[76].mxu1 %v5519_v51  ;;  %v7171_v51 = vpop.permute.xlu0 %2187 }
 0x243   : > { %3440 = vmatprep.mubr.bf16.mxu1 %v5520_v19  ;;  %7786 = vst [vmem:[#allocation10_spill] sm:$0xff] %v7171_v51 }
 0x24a   : > { %3441 = vmatmul.mubr.bf16.gmra.mrb[80].mxu1 %v5522_v61 }
 0x24b   : > { %3450 = vmatprep.mubr.bf16.mxu1 %v5523_v9 }
 0x252   : > { %3451 = vmatmul.mubr.bf16.gmra.mrb[84].mxu1 %v5525_v60  ;;  %v5549_v60 = vld [vmem:[%s7695_s3 + $0x208] ss:$16 sps:$4 sm:$0xff]  }
 0x253   : > { %3460 = vmatprep.mubr.bf16.mxu1 %v5526_v21  ;;  %v7182_v21 = vpop.permute.xlu1 %2202 }
 0x254   : > { %7787 = vst [vmem:[#allocation11_spill] sm:$0xff] %v7182_v21 }
 0x25a   : > { %3461 = vmatmul.mubr.bf16.gmra.mrb[88].mxu1 %v5528_v33 }
 0x25b   : > { %3470 = vmatprep.mubr.bf16.mxu1 %v5529_v26  ;;  %v5550_v26 = vld [vmem:[%s7695_s3 + $0x22c] ss:$16 sps:$4 sm:$0xff]  }
 0x262   : > { %3471 = vmatmul.mubr.bf16.gmra.mrb[92].mxu1 %v5531_v17  ;;  %v7189_v17 = vpop.permute.xlu0 %2197 }
 0x263   : > { %3480 = vmatprep.mubr.bf16.mxu1 %v5532_v10  ;;  %7788 = vst [vmem:[#allocation28_spill] sm:$0xff] %v7189_v17 }
 0x264   : > { %v7095_v53 = vpop.f32.mrb[128].mxu0 }
 0x265   : > { %v7097_v20 = vpop.f32.mrb[129].mxu0 }
 0x266   : > { %v7099_v25 = vpop.f32.mrb[130].mxu0 }
 0x267   : > { %v7104_v36 = vpop.f32.mrb[131].mxu0 }
 0x26a   : > { %3481 = vmatmul.mubr.bf16.gmra.mrb[96].mxu1 %v5534_v0  ;;  %v7193_v0 = vpop.permute.xlu1 %2212 }
 0x26b   : > { %3490 = vmatprep.mubr.bf16.mxu1 %v5535_v50  ;;  %7789 = vst [vmem:[#allocation29_spill] sm:$0xff] %v7193_v0  ;;  %v5555_v0 = vld [vmem:[%s7695_s3 + $0x248] ss:$16 sps:$4 sm:$0xff]  }
 0x26c   : > { %v7109_v29 = vpop.f32.mrb[132].mxu0 }
 0x26d   : > { %v7111_v59 = vpop.f32.mrb[133].mxu0 }
 0x26e   : > { %v7113_v3 = vpop.f32.mrb[134].mxu0 }
 0x26f   : > { %v7118_v48 = vpop.f32.mrb[135].mxu0 }
 0x272   : > { %3491 = vmatmul.mubr.bf16.gmra.mrb[100].mxu1 %v5537_v14  ;;  %v7197_v14 = vpop.permute.xlu0 %2207 }
 0x273   : > { %3500 = vmatprep.mubr.bf16.mxu1 %v5538_v52  ;;  %7790 = vst [vmem:[#allocation30_spill] sm:$0xff] %v7197_v14 }
 0x274   : > { %v7123_v45 = vpop.f32.mrb[136].mxu0 }
 0x275   : > { %v7125_v15 = vpop.f32.mrb[137].mxu0 }
 0x276   : > { %v7127_v39 = vpop.f32.mrb[138].mxu0 }
 0x277   : > { %v7132_v40 = vpop.f32.mrb[139].mxu0 }
 0x27a   : > { %3501 = vmatmul.mubr.bf16.gmra.mrb[104].mxu1 %v5540_v38  ;;  %v5552_v38 = vld [vmem:[%s7695_s3 + $0x228] ss:$16 sps:$4 sm:$0xff]  }
 0x27b   : > { %3510 = vmatprep.mubr.bf16.mxu1 %v5541_v49 }
 0x27c   : > { %v7137_v43 = vpop.f32.mrb[140].mxu0 }
 0x27d   : > { %v7139_v11 = vpop.f32.mrb[141].mxu0 }
 0x27e   : > { %v7141_v56 = vpop.f32.mrb[142].mxu0 }
 0x27f   : > { %v7146_v47 = vpop.f32.mrb[143].mxu0 }
 0x282   : > { %3511 = vmatmul.mubr.bf16.gmra.mrb[108].mxu1 %v5543_v57  ;;  %v5553_v57 = vld [vmem:[%s7695_s3 + $0x24c] ss:$16 sps:$4 sm:$0xff]  }
 0x283   : > { %3520 = vmatprep.mubr.bf16.mxu1 %v5544_v35  ;;  %v7209_v35 = vpop.permute.xlu1 %2222 }
 0x284   : > { %v7155_v16 = vpop.f32.mrb[144].mxu0  ;;  %7791 = vst [vmem:[#allocation31_spill] sm:$0xff] %v7209_v35 }
 0x285   : > { %v7157_v1 = vpop.f32.mrb[145].mxu0 }
 0x286   : > { %v7159_v28 = vpop.f32.mrb[146].mxu0 }
 0x287   : > { %v7164_v32 = vpop.f32.mrb[147].mxu0  ;;  %v7227_v35 = vpop.permute.xlu1 %2232 }
 0x288   : > { %7793 = vst [vmem:[#allocation33_spill] sm:$0xff] %v7227_v35  ;;  %v5559_v35 = vld [vmem:[%s7695_s3 + $0x28c] ss:$16 sps:$4 sm:$0xff]  }
 0x28a   : > { %3521 = vmatmul.mubr.bf16.gmra.mrb[112].mxu1 %v5546_v31  ;;  %v7211_v31 = vpop.permute.xlu0 %2217 }
 0x28b   : > { %3530 = vmatprep.mubr.bf16.mxu1 %v5547_v46  ;;  %7792 = vst [vmem:[#allocation32_spill] sm:$0xff] %v7211_v31  ;;  %v7240_v51 = vpop.permute.xlu1 %2242 }
 0x28c   : > { %v7173_v19 = vpop.f32.mrb[148].mxu0  ;;  %7796 = vst [vmem:[#allocation36_spill] sm:$0xff] %v7240_v51  ;;  %v5561_v51 = vld [vmem:[%s7695_s3 + $0x288] ss:$16 sps:$4 sm:$0xff]  }
 0x28d   : > { %v7175_v61 = vpop.f32.mrb[149].mxu0 }
 0x28e   : > { %v7177_v9 = vpop.f32.mrb[150].mxu0 }
 0x28f   : > { %v7184_v33 = vpop.f32.mrb[151].mxu0 }
 0x292   : > { %3531 = vmatmul.mubr.bf16.gmra.mrb[116].mxu1 %v5549_v60 }
 0x293   : > { %3540 = vmatprep.mubr.bf16.mxu1 %v5550_v26 }
 0x294   : > { %v7191_v10 = vpop.f32.mrb[152].mxu0 }
 0x295   : > { %v7195_v50 = vpop.f32.mrb[153].mxu0 }
 0x296   : > { %v7199_v52 = vpop.f32.mrb[154].mxu0 }
 0x297   : > { %v7204_v49 = vpop.f32.mrb[155].mxu0 }
 0x29a   : > { %3541 = vmatmul.mubr.bf16.gmra.mrb[120].mxu1 %v5552_v38  ;;  %v5556_v38 = vld [vmem:[%s7695_s3 + $0x26c] ss:$16 sps:$4 sm:$0xff]  }
 0x29b   : > { %3550 = vmatprep.mubr.bf16.mxu1 %v5553_v57  ;;  %v7229_v57 = vpop.permute.xlu0 %2227 }
 0x29c   : > { %v7213_v46 = vpop.f32.mrb[156].mxu0  ;;  %7794 = vst [vmem:[#allocation34_spill] sm:$0xff] %v7229_v57  ;;  %v7251_v57 = vpop.permute.xlu1 %2252 }
 0x29d   : > { %v7215_v60 = vpop.f32.mrb[157].mxu0  ;;  %7800 = vst [vmem:[#allocation40_spill] sm:$0xff] %v7251_v57 }
 0x29e   : > { %v7217_v26 = vpop.f32.mrb[158].mxu0 }
 0x29f   : > { %v7222_v14 = vpop.f32.mrb[159].mxu0 }
 0x2a2   : > { %3551 = vmatmul.mubr.bf16.gmra.mrb[124].mxu1 %v5555_v0  ;;  %v7247_v0 = vpop.permute.xlu0 %2237 }
 0x2a3   : > { %3560 = vmatprep.mubr.bf16.mxu1 %v5556_v38  ;;  %7798 = vst [vmem:[#allocation38_spill] sm:$0xff] %v7247_v0 }
 0x2a4   : > { %v7231_v31 = vpop.f32.mrb[160].mxu0 }
 0x2a5   : > { %v7233_v21 = vpop.f32.mrb[161].mxu0 }
 0x2a6   : > { %v7235_v17 = vpop.f32.mrb[162].mxu0  ;;  %v7255_v24 = vpop.permute.xlu0 %2247 }
 0x2a7   : > { %7795 = vst [vmem:[#allocation35_spill] sm:$0xff] %v7235_v17  ;;  %v7242_v7 = vpop.f32.mrb[163].mxu0  ;;  %7802 = vst [vmem:[#allocation42_spill] sm:$0xff] %v7255_v24 }
 0x2a8   : > { %7797 = vst [vmem:[#allocation37_spill] sm:$0xff] %v7242_v7 }
 0x2aa   : > { %3561 = vmatmul.mubr.bf16.gmra.mrb[0].mxu1 %v5558_v41  ;;  %v5562_v41 = vld [vmem:[%s7695_s3 + $0x2ac] ss:$16 sps:$4 sm:$0xff]   ;;  %v7269_v57 = vpop.permute.xlu0 %2257 }
 0x2ab   : > { %3570 = vmatprep.mubr.bf16.mxu1 %v5559_v35  ;;  %v7267_v35 = vpop.permute.xlu1 %2262  ;;  %7806 = vst [vmem:[#allocation46_spill] sm:$0xff] %v7269_v57 }
 0x2ac   : > { %v7249_v38 = vpop.f32.mrb[164].mxu0  ;;  %7805 = vst [vmem:[#allocation45_spill] sm:$0xff] %v7267_v35 }
 0x2ad   : > { %7799 = vst [vmem:[#allocation39_spill] sm:$0xff] %v7249_v38  ;;  %v7253_v30 = vpop.f32.mrb[165].mxu0 }
 0x2ae   : > { %7801 = vst [vmem:[#allocation41_spill] sm:$0xff] %v7253_v30  ;;  %v7257_v2 = vpop.f32.mrb[166].mxu0 }
 0x2af   : > { %7803 = vst [vmem:[#allocation43_spill] sm:$0xff] %v7257_v2  ;;  %v7262_v42 = vpop.f32.mrb[167].mxu0  ;;  %v7285_v35 = vpop.permute.xlu1 %2272 }
 0x2b0   : > { %7804 = vst [vmem:[#allocation44_spill] sm:$0xff] %v7262_v42  ;;  %7811 = vst [vmem:[#allocation51_spill] sm:$0xff] %v7285_v35  ;;  %v5568_v35 = vld [vmem:[%s7695_s3 + $0x2ec] ss:$16 sps:$4 sm:$0xff]  }
 0x2b2   : > { %3571 = vmatmul.mubr.bf16.gmra.mrb[4].mxu1 %v5561_v51  ;;  %v5565_v51 = vld [vmem:[%s7695_s3 + $0x2cc] ss:$16 sps:$4 sm:$0xff]  }
 0x2b3   : > { %3580 = vmatprep.mubr.bf16.mxu1 %v5562_v41  ;;  %v7287_v41 = vpop.permute.xlu0 %2267 }
 0x2b4   : > { %v7271_v0 = vpop.f32.mrb[168].mxu0  ;;  %7812 = vst [vmem:[#allocation52_spill] sm:$0xff] %v7287_v41 }
 0x2b5   : > { %7807 = vst [vmem:[#allocation47_spill] sm:$0xff] %v7271_v0  ;;  %v7273_v24 = vpop.f32.mrb[169].mxu0  ;;  %v7298_v0 = vpop.permute.xlu1 %2282 }
 0x2b6   : > { %7808 = vst [vmem:[#allocation48_spill] sm:$0xff] %v7273_v24  ;;  %v7275_v22 = vpop.f32.mrb[170].mxu0  ;;  %7816 = vst [vmem:[#allocation56_spill] sm:$0xff] %v7298_v0  ;;  %v5570_v0 = vld [vmem:[%s7695_s3 + $0x2e8] ss:$16 sps:$4 sm:$0xff]  }
 0x2b7   : > { %7809 = vst [vmem:[#allocation49_spill] sm:$0xff] %v7275_v22  ;;  %v7280_v42 = vpop.f32.mrb[171].mxu0 }
 0x2b8   : > { %7810 = vst [vmem:[#allocation50_spill] sm:$0xff] %v7280_v42  ;;  %v5567_v42 = vld [vmem:[%s7695_s3 + $0x2c8] ss:$16 sps:$4 sm:$0xff]  }
 0x2b9   : > { %v7309_v41 = vpop.permute.xlu1 %2292 }
 0x2ba   : > { %3581 = vmatmul.mubr.bf16.gmra.mrb[8].mxu1 %v5564_v37  ;;  %v7305_v37 = vpop.permute.xlu0 %2277  ;;  %7820 = vst [vmem:[#allocation60_spill] sm:$0xff] %v7309_v41 }
 0x2bb   : > { %3590 = vmatprep.mubr.bf16.mxu1 %v5565_v51  ;;  %7818 = vst [vmem:[#allocation58_spill] sm:$0xff] %v7305_v37 }
 0x2bc   : > { %v7289_v57 = vpop.f32.mrb[172].mxu0 }
 0x2bd   : > { %7813 = vst [vmem:[#allocation53_spill] sm:$0xff] %v7289_v57  ;;  %v7291_v24 = vpop.f32.mrb[173].mxu0 }
 0x2be   : > { %7814 = vst [vmem:[#allocation54_spill] sm:$0xff] %v7291_v24  ;;  %v7293_v22 = vpop.f32.mrb[174].mxu0  ;;  %v7313_v24 = vpop.permute.xlu0 %2287 }
 0x2bf   : > { %7815 = vst [vmem:[#allocation55_spill] sm:$0xff] %v7293_v22  ;;  %v7300_v2 = vpop.f32.mrb[175].mxu0  ;;  %7822 = vst [vmem:[#allocation62_spill] sm:$0xff] %v7313_v24 }
 0x2c0   : > { %7817 = vst [vmem:[#allocation57_spill] sm:$0xff] %v7300_v2 }
 0x2c2   : > { %3591 = vmatmul.mubr.bf16.gmra.mrb[12].mxu1 %v5567_v42  ;;  %v5571_v42 = vld [vmem:[%s7695_s3 + $0x30c] ss:$16 sps:$4 sm:$0xff]   ;;  %v7327_v41 = vpop.permute.xlu0 %2297 }
 0x2c3   : > { %3600 = vmatprep.mubr.bf16.mxu1 %v5568_v35  ;;  %v7325_v35 = vpop.permute.xlu1 %2302  ;;  %7826 = vst [vmem:[#allocation66_spill] sm:$0xff] %v7327_v41 }
 0x2c4   : > { %v7307_v51 = vpop.f32.mrb[176].mxu0  ;;  %7825 = vst [vmem:[#allocation65_spill] sm:$0xff] %v7325_v35 }
 0x2c5   : > { %7819 = vst [vmem:[#allocation59_spill] sm:$0xff] %v7307_v51  ;;  %v7311_v22 = vpop.f32.mrb[177].mxu0 }
 0x2c6   : > { %7821 = vst [vmem:[#allocation61_spill] sm:$0xff] %v7311_v22  ;;  %v7315_v57 = vpop.f32.mrb[178].mxu0 }
 0x2c7   : > { %7823 = vst [vmem:[#allocation63_spill] sm:$0xff] %v7315_v57  ;;  %v7320_v2 = vpop.f32.mrb[179].mxu0  ;;  %v7343_v35 = vpop.permute.xlu1 %2312 }
 0x2c8   : > { %7824 = vst [vmem:[#allocation64_spill] sm:$0xff] %v7320_v2  ;;  %v5573_v2 = vld [vmem:[%s7695_s3 + $0x308] ss:$16 sps:$4 sm:$0xff]   ;;  %7831 = vst [vmem:[#allocation71_spill] sm:$0xff] %v7343_v35  ;;  %v5577_v35 = vld [vmem:[%s7695_s3 + $0x34c] ss:$16 sps:$4 sm:$0xff]  }
 0x2ca   : > { %3601 = vmatmul.mubr.bf16.gmra.mrb[16].mxu1 %v5570_v0  ;;  %v5574_v0 = vld [vmem:[%s7695_s3 + $0x32c] ss:$16 sps:$4 sm:$0xff]  }
 0x2cb   : > { %3610 = vmatprep.mubr.bf16.mxu1 %v5571_v42  ;;  %v7345_v42 = vpop.permute.xlu0 %2307 }
 0x2cc   : > { %v7329_v37 = vpop.f32.mrb[180].mxu0  ;;  %7832 = vst [vmem:[#allocation72_spill] sm:$0xff] %v7345_v42 }
 0x2cd   : > { %7827 = vst [vmem:[#allocation67_spill] sm:$0xff] %v7329_v37  ;;  %v7331_v24 = vpop.f32.mrb[181].mxu0  ;;  %v7356_v37 = vpop.permute.xlu1 %2322 }
 0x2ce   : > { %7828 = vst [vmem:[#allocation68_spill] sm:$0xff] %v7331_v24  ;;  %v7333_v57 = vpop.f32.mrb[182].mxu0  ;;  %7836 = vst [vmem:[#allocation76_spill] sm:$0xff] %v7356_v37  ;;  %v5579_v37 = vld [vmem:[%s7695_s3 + $0x348] ss:$16 sps:$4 sm:$0xff]  }
 0x2cf   : > { %7829 = vst [vmem:[#allocation69_spill] sm:$0xff] %v7333_v57  ;;  %v7338_v22 = vpop.f32.mrb[183].mxu0 }
 0x2d0   : > { %7830 = vst [vmem:[#allocation70_spill] sm:$0xff] %v7338_v22  ;;  %v5576_v22 = vld [vmem:[%s7695_s3 + $0x328] ss:$16 sps:$4 sm:$0xff]  }
 0x2d1   : > { %v7367_v42 = vpop.permute.xlu1 %2332 }
 0x2d2   : > { %3611 = vmatmul.mubr.bf16.gmra.mrb[20].mxu1 %v5573_v2  ;;  %v7363_v2 = vpop.permute.xlu0 %2317  ;;  %7840 = vst [vmem:[#allocation80_spill] sm:$0xff] %v7367_v42 }
 0x2d3   : > { %3620 = vmatprep.mubr.bf16.mxu1 %v5574_v0  ;;  %7838 = vst [vmem:[#allocation78_spill] sm:$0xff] %v7363_v2 }
 0x2d4   : > { %v7347_v41 = vpop.f32.mrb[184].mxu0 }
 0x2d5   : > { %7833 = vst [vmem:[#allocation73_spill] sm:$0xff] %v7347_v41  ;;  %v7349_v24 = vpop.f32.mrb[185].mxu0 }
 0x2d6   : > { %7834 = vst [vmem:[#allocation74_spill] sm:$0xff] %v7349_v24  ;;  %v7351_v57 = vpop.f32.mrb[186].mxu0  ;;  %v7371_v24 = vpop.permute.xlu0 %2327 }
 0x2d7   : > { %7835 = vst [vmem:[#allocation75_spill] sm:$0xff] %v7351_v57  ;;  %v7358_v51 = vpop.f32.mrb[187].mxu0  ;;  %7842 = vst [vmem:[#allocation82_spill] sm:$0xff] %v7371_v24  ;;  %v3020_v24 = vadd.f32 %v7095_v53, %v6558_v54  ;;  %v3026_v53 = vadd.f32 %v7104_v36, %v6555_v63 }
 0x2d8   : > { %7837 = vst [vmem:[#allocation77_spill] sm:$0xff] %v7358_v51 }
 0x2da   : > { %3621 = vmatmul.mubr.bf16.gmra.mrb[24].mxu1 %v5576_v22  ;;  %v5580_v22 = vld [vmem:[%s7695_s3 + $0x36c] ss:$16 sps:$4 sm:$0xff]   ;;  %v7385_v42 = vpop.permute.xlu0 %2337 }
 0x2db   : > { %3630 = vmatprep.mubr.bf16.mxu1 %v5577_v35  ;;  %v7383_v35 = vpop.permute.xlu1 %2342  ;;  %7846 = vst [vmem:[#allocation86_spill] sm:$0xff] %v7385_v42 }
 0x2dc   : > { %v7365_v0 = vpop.f32.mrb[188].mxu0  ;;  %7845 = vst [vmem:[#allocation85_spill] sm:$0xff] %v7383_v35 }
 0x2dd   : > { %7839 = vst [vmem:[#allocation79_spill] sm:$0xff] %v7365_v0  ;;  %v7369_v57 = vpop.f32.mrb[189].mxu0  ;;  %v3024_v0 = vadd.f32 %v7099_v25, %v6555_v63 }
 0x2de   : > { %7841 = vst [vmem:[#allocation81_spill] sm:$0xff] %v7369_v57  ;;  %v7373_v41 = vpop.f32.mrb[190].mxu0 }
 0x2df   : > { %7843 = vst [vmem:[#allocation83_spill] sm:$0xff] %v7373_v41  ;;  %v7378_v51 = vpop.f32.mrb[191].mxu0  ;;  %v3022_v41 = vadd.f32 %v7097_v20, %v6558_v54  ;;  %v5583_v20 = vld [vmem:[%s7695_s3 + $0x38c] ss:$16 sps:$4 sm:$0xff]   ;;  %v4147_v63 = vpop.permute.xlu1 %4146 }
 0x2e0   : > { %7844 = vst [vmem:[#allocation84_spill] sm:$0xff] %v7378_v51 }
 0x2e2   : > { %3631 = vmatmul.mubr.bf16.gmra.mrb[28].mxu1 %v5579_v37 }
 0x2e3   : > { %3640 = vmatprep.mubr.bf16.mxu1 %v5580_v22  ;;  %v5582_v22 = vld [vmem:[%s7695_s3 + $0x368] ss:$16 sps:$4 sm:$0xff]  }
 0x2e4   : > { %v7389_v2 = vpop.f32.mrb[192].mxu0 }
 0x2e5   : > { %7847 = vst [vmem:[#allocation87_spill] sm:$0xff] %v7389_v2  ;;  %v3372_v57 = vpop.f32.mrb[52].mxu1  ;;  %v7393_v51 = vpop.f32.mrb[193].mxu0 }
 0x2e6   : > { %7848 = vst [vmem:[#allocation88_spill] sm:$0xff] %v7393_v51  ;;  %v3373_v37 = vadd.f32 %v3372_v57, %v3020_v24  ;;  %v3374_v12 = vpop.f32.mrb[53].mxu1  ;;  %v7397_v35 = vpop.f32.mrb[194].mxu0 }
 0x2e7   : > { %7849 = vst [vmem:[#allocation89_spill] sm:$0xff] %v7397_v35  ;;  %v3375_v42 = vadd.f32 %v3374_v12, %v3022_v41  ;;  %v3376_v2 = vpop.f32.mrb[54].mxu1  ;;  %v7404_v54 = vpop.f32.mrb[195].mxu0 }
 0x2e8   : > { %7850 = vst [vmem:[#allocation90_spill] sm:$0xff] %v7404_v54  ;;  %vm3691_vm2 = vcmp.gt.f32.partialorder %v3373_v37, 0.0  ;;  %v3819_v24 = vmul.f32 0.01, %v3373_v37  ;;  %v3377_v25 = vadd.f32 %v3376_v2, %v3024_v0  ;;  %v3378_v57 = vpop.f32.mrb[55].mxu1  ;;  %v4142_v41 = vpop.permute.xlu0 %4141  ;;  %v3030_v54 = vadd.f32 %v7109_v29, %v6577_v55 }
 0x2e9   : > { %vm3692_vm3 = vcmp.gt.f32.partialorder %v3375_v42, 0.0  ;;  %v3820_v35 = vmul.f32 0.01, %v3375_v42  ;;  %v3379_v51 = vadd.f32 %v3378_v57, %v3026_v53  ;;  %v3032_v2 = vadd.f32 %v7111_v59, %v6577_v55 }
 0x2ea   : > { %v3947_v30 = vsel %vm3691_vm2, %v3373_v37, %v3819_v24  ;;  %vm3693_vm4 = vcmp.gt.f32.partialorder %v3377_v25, 0.0  ;;  %v3821_v38 = vmul.f32 0.01, %v3377_v25  ;;  %3641 = vmatmul.mubr.bf16.gmra.mrb[32].mxu1 %v5582_v22  ;;  %v3036_v55 = vadd.f32 %v7118_v48, %v6575_v6 }
 0x2eb   : > { %v3948_v12 = vsel %vm3692_vm3, %v3375_v42, %v3820_v35  ;;  %vm3694_vm5 = vcmp.gt.f32.partialorder %v3379_v51, 0.0  ;;  %v3822_v36 = vmul.f32 0.01, %v3379_v51  ;;  %3650 = vmatprep.mubr.bf16.mxu1 %v5583_v20  ;;  %v4459_v0 = vmul.f32 %v4142_v41, %v3947_v30 }
 0x2ec   : > { %v3949_v23 = vsel %vm3693_vm4, %v3377_v25, %v3821_v38  ;;  %v7411_v7 = vpop.f32.mrb[196].mxu0  ;;  %v3034_v42 = vadd.f32 %v7113_v3, %v6575_v6  ;;  %v4460_v35 = vmul.f32 %v4142_v41, %v3948_v12  ;;  %v5585_v38 = vld [vmem:[%s7695_s3 + $0x388] ss:$16 sps:$4 sm:$0xff]   ;;  %v5586_v3 = vld [vmem:[%s7695_s3 + $0x3ac] ss:$16 sps:$4 sm:$0xff]  }
 0x2ed   : > { %v4461_v37 = vmul.f32 %v4147_v63, %v3949_v23  ;;  %v3950_v53 = vsel %vm3694_vm5, %v3379_v51, %v3822_v36  ;;  %v3382_v24 = vpop.f32.mrb[56].mxu1  ;;  %v7415_v22 = vpop.f32.mrb[197].mxu0 }
 0x2ee   : > { %v4462_v20 = vmul.f32 %v4147_v63, %v3950_v53  ;;  %v3383_v57 = vadd.f32 %v3382_v24, %v3030_v54  ;;  %v3384_v17 = vpop.f32.mrb[57].mxu1  ;;  %v7419_v29 = vpop.f32.mrb[198].mxu0 }
 0x2ef   : > { %v4587_v23 = vadd.f32 %v4461_v37, %v4459_v0  ;;  %v3385_v59 = vadd.f32 %v3384_v17, %v3032_v2  ;;  %v3386_v30 = vpop.f32.mrb[58].mxu1  ;;  %v7426_v51 = vpop.f32.mrb[199].mxu0  ;;  %v3040_v37 = vadd.f32 %v7123_v45, %v6591_v58 }
 0x2f0   : > { %7851 = vst [vmem:[#allocation91_spill] sm:$0xff] %v7426_v51  ;;  %v4656_v54 = vadd.f32 %v4462_v20, %v4460_v35  ;;  %vm3695_vm0 = vcmp.gt.f32.partialorder %v3383_v57, 0.0  ;;  %v3823_v25 = vmul.f32 0.01, %v3383_v57  ;;  %v3387_v63 = vadd.f32 %v3386_v30, %v3034_v42  ;;  %v3388_v12 = vpop.f32.mrb[59].mxu1  ;;  %v4152_v53 = vpop.permute.xlu0 %4151 }
 0x2f1   : > { %vm3696_vm6 = vcmp.gt.f32.partialorder %v3385_v59, 0.0  ;;  %v3824_v36 = vmul.f32 0.01, %v3385_v59  ;;  %v3389_v41 = vadd.f32 %v3388_v12, %v3036_v55  ;;  %v4157_v0 = vpop.permute.xlu1 %4156  ;;  %v3042_v55 = vadd.f32 %v7125_v15, %v6591_v58 }
 0x2f2   : > { %v3951_v24 = vsel %vm3695_vm0, %v3383_v57, %v3823_v25  ;;  %vm3697_vm7 = vcmp.gt.f32.partialorder %v3387_v63, 0.0  ;;  %v3825_v6 = vmul.f32 0.01, %v3387_v63  ;;  %3651 = vmatmul.mubr.bf16.gmra.mrb[36].mxu1 %v5585_v38 }
 0x2f3   : > { %v4463_v48 = vmul.f32 %v4152_v53, %v3951_v24  ;;  %v3952_v17 = vsel %vm3696_vm6, %v3385_v59, %v3824_v36  ;;  %vm3698_vm8 = vcmp.gt.f32.partialorder %v3389_v41, 0.0  ;;  %v3826_v2 = vmul.f32 0.01, %v3389_v41  ;;  %3660 = vmatprep.mubr.bf16.mxu1 %v5586_v3  ;;  %v7852_v59 = vld [vmem:[#allocation12_spill] sm:$0xff] }
 0x2f4   : > { %v4464_v35 = vmul.f32 %v4152_v53, %v3952_v17  ;;  %v3953_v42 = vsel %vm3697_vm7, %v3387_v63, %v3825_v6  ;;  %v7433_v20 = vpop.f32.mrb[200].mxu0  ;;  %v3044_v3 = vadd.f32 %v7127_v39, %v7852_v59  ;;  %v5588_v63 = vld [vmem:[%s7695_s3 + $0x3a8] ss:$16 sps:$4 sm:$0xff]   ;;  %v3046_v58 = vadd.f32 %v7132_v40, %v7852_v59  ;;  %v5589_v39 = vld [vmem:[%s7695_s3 + $0x3cc] ss:$16 sps:$4 sm:$0xff]  }
 0x2f5   : > { %v4588_v57 = vadd.f32 %v4587_v23, %v4463_v48  ;;  %v4465_v30 = vmul.f32 %v4157_v0, %v3953_v42  ;;  %v3954_v25 = vsel %vm3698_vm8, %v3389_v41, %v3826_v2  ;;  %v3392_v38 = vpop.f32.mrb[60].mxu1  ;;  %v7437_v12 = vpop.f32.mrb[201].mxu0 }
 0x2f6   : > { %v4657_v36 = vadd.f32 %v4656_v54, %v4464_v35  ;;  %v4466_v24 = vmul.f32 %v4157_v0, %v3954_v25  ;;  %v3393_v51 = vadd.f32 %v3392_v38, %v3040_v37  ;;  %v3394_v45 = vpop.f32.mrb[61].mxu1  ;;  %v7441_v53 = vpop.f32.mrb[202].mxu0  ;;  %v3050_v38 = vadd.f32 %v7137_v43, %v6611_v18  ;;  %v5591_v43 = vld [vmem:[%s7695_s3 + $0x3c8] ss:$16 sps:$4 sm:$0xff]  }
 0x2f7   : > { %v4589_v15 = vadd.f32 %v4588_v57, %v4465_v30  ;;  %v3395_v23 = vadd.f32 %v3394_v45, %v3042_v55  ;;  %v3396_v41 = vpop.f32.mrb[62].mxu1  ;;  %v7448_v6 = vpop.f32.mrb[203].mxu0 }
 0x2f8   : > { %v4658_v54 = vadd.f32 %v4657_v36, %v4466_v24  ;;  %vm3699_vm9 = vcmp.gt.f32.partialorder %v3393_v51, 0.0  ;;  %v3827_v48 = vmul.f32 0.01, %v3393_v51  ;;  %v3397_v17 = vadd.f32 %v3396_v41, %v3044_v3  ;;  %v3398_v2 = vpop.f32.mrb[63].mxu1  ;;  %v4162_v35 = vpop.permute.xlu0 %4161  ;;  %v7853_v41 = vld [vmem:[#allocation13_spill] sm:$0xff] }
 0x2f9   : > { %vm3700_vm10 = vcmp.gt.f32.partialorder %v3395_v23, 0.0  ;;  %v3828_v0 = vmul.f32 0.01, %v3395_v23  ;;  %v3399_v37 = vadd.f32 %v3398_v2, %v3046_v58  ;;  %v4167_v25 = vpop.permute.xlu1 %4166  ;;  %v3052_v36 = vadd.f32 %v7139_v11, %v6611_v18 }
 0x2fa   : > { %v3955_v42 = vsel %vm3699_vm9, %v3393_v51, %v3827_v48  ;;  %vm3701_vm11 = vcmp.gt.f32.partialorder %v3397_v17, 0.0  ;;  %v3829_v40 = vmul.f32 0.01, %v3397_v17  ;;  %3661 = vmatmul.mubr.bf16.gmra.mrb[40].mxu1 %v5588_v63  ;;  %v3054_v63 = vadd.f32 %v7141_v56, %v7853_v41 }
 0x2fb   : > { %v4467_v55 = vmul.f32 %v4162_v35, %v3955_v42  ;;  %v3956_v57 = vsel %vm3700_vm10, %v3395_v23, %v3828_v0  ;;  %vm3702_vm12 = vcmp.gt.f32.partialorder %v3399_v37, 0.0  ;;  %v3830_v30 = vmul.f32 0.01, %v3399_v37  ;;  %3670 = vmatprep.mubr.bf16.mxu1 %v5589_v39 }
 0x2fc   : > { %v4468_v59 = vmul.f32 %v4162_v35, %v3956_v57  ;;  %v3957_v3 = vsel %vm3701_vm11, %v3397_v17, %v3829_v40  ;;  %v3056_v17 = vadd.f32 %v7146_v47, %v7853_v41 }
 0x2fd   : > { %v4590_v24 = vadd.f32 %v4589_v15, %v4467_v55  ;;  %v4469_v45 = vmul.f32 %v4167_v25, %v3957_v3  ;;  %v3958_v51 = vsel %vm3702_vm12, %v3399_v37, %v3830_v30  ;;  %v3402_v58 = vpop.f32.mrb[64].mxu1  ;;  %v5592_v15 = vld [vmem:[%s7695_s3 + $0x3ec] ss:$16 sps:$4 sm:$0xff]   ;;  %v4172_v55 = vpop.permute.xlu0 %4171  ;;  %v3060_v3 = vadd.f32 %v7155_v16, %v6623_v4  ;;  %v5594_v16 = vld [vmem:[%s7695_s3 + $0x3e8] ss:$16 sps:$4 sm:$0xff]  }
 0x2fe   : > { %v4659_v23 = vadd.f32 %v4658_v54, %v4468_v59  ;;  %v4470_v48 = vmul.f32 %v4167_v25, %v3958_v51  ;;  %v3403_v2 = vadd.f32 %v3402_v58, %v3050_v38  ;;  %v3404_v39 = vpop.f32.mrb[65].mxu1  ;;  %v4177_v59 = vpop.permute.xlu1 %4176 }
 0x2ff   : > { %v4591_v0 = vadd.f32 %v4590_v24, %v4469_v45  ;;  %v3405_v18 = vadd.f32 %v3404_v39, %v3052_v36  ;;  %v3406_v11 = vpop.f32.mrb[66].mxu1  ;;  %v3062_v45 = vadd.f32 %v7157_v1, %v6623_v4 }
 0x300   : > { %v4660_v37 = vadd.f32 %v4659_v23, %v4470_v48  ;;  %vm3703_vm13 = vcmp.gt.f32.partialorder %v3403_v2, 0.0  ;;  %v3831_v56 = vmul.f32 0.01, %v3403_v2  ;;  %v3407_v54 = vadd.f32 %v3406_v11, %v3054_v63  ;;  %v3408_v35 = vpop.f32.mrb[67].mxu1 }
 0x301   : > { %vm3704_vm14 = vcmp.gt.f32.partialorder %v3405_v18, 0.0  ;;  %v3832_v42 = vmul.f32 0.01, %v3405_v18  ;;  %v3409_v40 = vadd.f32 %v3408_v35, %v3056_v17  ;;  %v3064_v23 = vadd.f32 %v7159_v28, %v6620_v13 }
 0x302   : > { %v3959_v57 = vsel %vm3703_vm13, %v3403_v2, %v3831_v56  ;;  %vm3705_vm15 = vcmp.gt.f32.partialorder %v3407_v54, 0.0  ;;  %v3833_v30 = vmul.f32 0.01, %v3407_v54  ;;  %3671 = vmatmul.mubr.bf16.gmra.mrb[44].mxu1 %v5591_v43  ;;  %v3066_v17 = vadd.f32 %v7164_v32, %v6620_v13  ;;  %v4187_v32 = vpop.permute.xlu1 %4186 }
 0x303   : > { %v4471_v47 = vmul.f32 %v4172_v55, %v3959_v57  ;;  %v3960_v25 = vsel %vm3704_vm14, %v3405_v18, %v3832_v42  ;;  %vm3706_vm1 = vcmp.gt.f32.partialorder %v3409_v40, 0.0  ;;  %v3834_v38 = vmul.f32 0.01, %v3409_v40  ;;  %3680 = vmatprep.mubr.bf16.mxu1 %v5592_v15 }
 0x304   : > { %v4472_v36 = vmul.f32 %v4172_v55, %v3960_v25  ;;  %v3961_v24 = vsel %vm3705_vm15, %v3407_v54, %v3833_v30  ;;  %v4182_v54 = vpop.permute.xlu0 %4181  ;;  %v3070_v57 = vadd.f32 %v7173_v19, %v6642_v5  ;;  %v3072_v25 = vadd.f32 %v7175_v61, %v6642_v5 }
 0x305   : > { %v4592_v51 = vadd.f32 %v4591_v0, %v4471_v47  ;;  %v4473_v58 = vmul.f32 %v4177_v59, %v3961_v24  ;;  %v3962_v41 = vsel %vm3706_vm1, %v3409_v40, %v3834_v38  ;;  %v3412_v63 = vpop.f32.mrb[68].mxu1  ;;  %v3074_v24 = vadd.f32 %v7177_v9, %v6640_v62 }
 0x306   : > { %v4661_v48 = vadd.f32 %v4660_v37, %v4472_v36  ;;  %v4474_v2 = vmul.f32 %v4177_v59, %v3962_v41  ;;  %v3413_v39 = vadd.f32 %v3412_v63, %v3060_v3  ;;  %v3414_v43 = vpop.f32.mrb[69].mxu1  ;;  %v3076_v63 = vadd.f32 %v7184_v33, %v6640_v62  ;;  %v4197_v62 = vpop.permute.xlu1 %4196 }
 0x307   : > { %v4593_v18 = vadd.f32 %v4592_v51, %v4473_v58  ;;  %v3415_v4 = vadd.f32 %v3414_v43, %v3062_v45  ;;  %v3416_v1 = vpop.f32.mrb[70].mxu1  ;;  %v3080_v33 = vadd.f32 %v7191_v10, %v6656_v44 }
 0x308   : > { %v4662_v0 = vadd.f32 %v4661_v48, %v4474_v2  ;;  %vm3707_vm2 = vcmp.gt.f32.partialorder %v3413_v39, 0.0  ;;  %v3835_v11 = vmul.f32 0.01, %v3413_v39  ;;  %v3417_v15 = vadd.f32 %v3416_v1, %v3064_v23  ;;  %v3418_v56 = vpop.f32.mrb[71].mxu1 }
 0x309   : > { %vm3708_vm3 = vcmp.gt.f32.partialorder %v3415_v4, 0.0  ;;  %v3836_v28 = vmul.f32 0.01, %v3415_v4  ;;  %v3419_v37 = vadd.f32 %v3418_v56, %v3066_v17  ;;  %v4192_v17 = vpop.permute.xlu0 %4191  ;;  %v3082_v56 = vadd.f32 %v7195_v50, %v6656_v44 }
 0x30a   : > { %v3963_v35 = vsel %vm3707_vm2, %v3413_v39, %v3835_v11  ;;  %vm3709_vm4 = vcmp.gt.f32.partialorder %v3417_v15, 0.0  ;;  %v3837_v42 = vmul.f32 0.01, %v3417_v15  ;;  %3681 = vmatmul.mubr.bf16.gmra.mrb[48].mxu1 %v5594_v16 }
 0x30b   : > { %v4475_v40 = vmul.f32 %v4182_v54, %v3963_v35  ;;  %v3964_v55 = vsel %vm3708_vm3, %v3415_v4, %v3836_v28  ;;  %vm3710_vm5 = vcmp.gt.f32.partialorder %v3419_v37, 0.0  ;;  %v3838_v13 = vmul.f32 0.01, %v3419_v37 }
 0x30c   : > { %v4476_v30 = vmul.f32 %v4182_v54, %v3964_v55  ;;  %v3965_v47 = vsel %vm3709_vm4, %v3417_v15, %v3837_v42  ;;  %v7854_v42 = vld [vmem:[#allocation14_spill] sm:$0xff] }
 0x30d   : > { %v4594_v38 = vadd.f32 %v4593_v18, %v4475_v40  ;;  %v4477_v59 = vmul.f32 %v4187_v32, %v3965_v47  ;;  %v3966_v3 = vsel %vm3710_vm5, %v3419_v37, %v3838_v13  ;;  %v3422_v36 = vpop.f32.mrb[72].mxu1  ;;  %v3084_v40 = vadd.f32 %v7199_v52, %v7854_v42 }
 0x30e   : > { %v4663_v45 = vadd.f32 %v4662_v0, %v4476_v30  ;;  %v4478_v51 = vmul.f32 %v4187_v32, %v3966_v3  ;;  %v3423_v58 = vadd.f32 %v3422_v36, %v3070_v57  ;;  %v3424_v41 = vpop.f32.mrb[73].mxu1  ;;  %v3086_v30 = vadd.f32 %v7204_v49, %v7854_v42  ;;  %v4207_v49 = vpop.permute.xlu1 %4206 }
 0x30f   : > { %v4595_v19 = vadd.f32 %v4594_v38, %v4477_v59  ;;  %v3425_v23 = vadd.f32 %v3424_v41, %v3072_v25  ;;  %v3426_v48 = vpop.f32.mrb[74].mxu1 }
 0x310   : > { %v4664_v2 = vadd.f32 %v4663_v45, %v4478_v51  ;;  %vm3711_vm0 = vcmp.gt.f32.partialorder %v3423_v58, 0.0  ;;  %v3839_v5 = vmul.f32 0.01, %v3423_v58  ;;  %v3427_v61 = vadd.f32 %v3426_v48, %v3074_v24  ;;  %v3428_v39 = vpop.f32.mrb[75].mxu1  ;;  %v4202_v24 = vpop.permute.xlu0 %4201 }
 0x311   : > { %vm3712_vm6 = vcmp.gt.f32.partialorder %v3425_v23, 0.0  ;;  %v3840_v43 = vmul.f32 0.01, %v3425_v23  ;;  %v3429_v16 = vadd.f32 %v3428_v39, %v3076_v63  ;;  %v3090_v63 = vadd.f32 %v7213_v46, %v6676_v34 }
 0x312   : > { %v3967_v9 = vsel %vm3711_vm0, %v3423_v58, %v3839_v5  ;;  %vm3713_vm7 = vcmp.gt.f32.partialorder %v3427_v61, 0.0  ;;  %v3841_v18 = vmul.f32 0.01, %v3427_v61  ;;  %v3092_v48 = vadd.f32 %v7215_v60, %v6676_v34 }
 0x313   : > { %v4479_v4 = vmul.f32 %v4192_v17, %v3967_v9  ;;  %v3968_v1 = vsel %vm3712_vm6, %v3425_v23, %v3840_v43  ;;  %vm3714_vm8 = vcmp.gt.f32.partialorder %v3429_v16, 0.0  ;;  %v3842_v0 = vmul.f32 0.01, %v3429_v16  ;;  %v7855_v43 = vld [vmem:[#allocation15_spill] sm:$0xff] }
 0x314   : > { %v4480_v11 = vmul.f32 %v4192_v17, %v3968_v1  ;;  %v3969_v15 = vsel %vm3713_vm7, %v3427_v61, %v3841_v18  ;;  %v3096_v1 = vadd.f32 %v7222_v14, %v7855_v43  ;;  %v4217_v14 = vpop.permute.xlu1 %4216 }
 0x315   : > { %v4596_v28 = vadd.f32 %v4595_v19, %v4479_v4  ;;  %v4481_v37 = vmul.f32 %v4197_v62, %v3969_v15  ;;  %v3970_v54 = vsel %vm3714_vm8, %v3429_v16, %v3842_v0  ;;  %v3432_v35 = vpop.f32.mrb[76].mxu1  ;;  %v3094_v16 = vadd.f32 %v7217_v26, %v7855_v43 }
 0x316   : > { %v4665_v55 = vadd.f32 %v4664_v2, %v4480_v11  ;;  %v4482_v13 = vmul.f32 %v4197_v62, %v3970_v54  ;;  %v3433_v32 = vadd.f32 %v3432_v35, %v3080_v33  ;;  %v3434_v57 = vpop.f32.mrb[77].mxu1 }
 0x317   : > { %v4597_v10 = vadd.f32 %v4596_v28, %v4481_v37  ;;  %v3435_v47 = vadd.f32 %v3434_v57, %v3082_v56  ;;  %v3436_v25 = vpop.f32.mrb[78].mxu1  ;;  %v4212_v28 = vpop.permute.xlu0 %4211 }
 0x318   : > { %v4666_v38 = vadd.f32 %v4665_v55, %v4482_v13  ;;  %vm3715_vm9 = vcmp.gt.f32.partialorder %v3433_v32, 0.0  ;;  %v3843_v44 = vmul.f32 0.01, %v3433_v32  ;;  %v3437_v50 = vadd.f32 %v3436_v25, %v3084_v40  ;;  %v3438_v59 = vpop.f32.mrb[79].mxu1  ;;  %v7856_v25 = vld [vmem:[#allocation35_spill] sm:$0xff] }
 0x319   : > { %vm3716_vm10 = vcmp.gt.f32.partialorder %v3435_v47, 0.0  ;;  %v3844_v3 = vmul.f32 0.01, %v3435_v47  ;;  %v3439_v36 = vadd.f32 %v3438_v59, %v3086_v30  ;;  %v3100_v40 = vadd.f32 %v7231_v31, %v6688_v8 }
 0x31a   : > { %v3971_v52 = vsel %vm3715_vm9, %v3433_v32, %v3843_v44  ;;  %vm3717_vm11 = vcmp.gt.f32.partialorder %v3437_v50, 0.0  ;;  %v3845_v45 = vmul.f32 0.01, %v3437_v50  ;;  %v3102_v32 = vadd.f32 %v7233_v21, %v6688_v8 }
 0x31b   : > { %v4483_v51 = vmul.f32 %v4202_v24, %v3971_v52  ;;  %v3972_v58 = vsel %vm3716_vm10, %v3435_v47, %v3844_v3  ;;  %vm3718_vm12 = vcmp.gt.f32.partialorder %v3439_v36, 0.0  ;;  %v3846_v41 = vmul.f32 0.01, %v3439_v36 }
 0x31c   : > { %v4484_v19 = vmul.f32 %v4202_v24, %v3972_v58  ;;  %v3973_v23 = vsel %vm3717_vm11, %v3437_v50, %v3845_v45 }
 0x31d   : > { %v4598_v2 = vadd.f32 %v4597_v10, %v4483_v51  ;;  %v4485_v5 = vmul.f32 %v4207_v49, %v3973_v23  ;;  %v3974_v61 = vsel %vm3718_vm12, %v3439_v36, %v3846_v41  ;;  %v3442_v39 = vpop.f32.mrb[80].mxu1  ;;  %v7857_v36 = vld [vmem:[#allocation37_spill] sm:$0xff] }
 0x31e   : > { %v4667_v17 = vadd.f32 %v4666_v38, %v4484_v19  ;;  %v4486_v9 = vmul.f32 %v4207_v49, %v3974_v61  ;;  %v3443_v18 = vadd.f32 %v3442_v39, %v3090_v63  ;;  %v3444_v4 = vpop.f32.mrb[81].mxu1  ;;  %v3104_v38 = vadd.f32 %v7856_v25, %v6685_v27  ;;  %v4222_v63 = vpop.permute.xlu0 %4221  ;;  %v7858_v61 = vld [vmem:[#allocation17_spill] sm:$0xff]  ;;  %v7859_v39 = vld [vmem:[#allocation39_spill] sm:$0xff] }
 0x31f   : > { %v4599_v46 = vadd.f32 %v4598_v2, %v4485_v5  ;;  %v3445_v0 = vadd.f32 %v3444_v4, %v3092_v48  ;;  %v3446_v62 = vpop.f32.mrb[82].mxu1  ;;  %v3106_v24 = vadd.f32 %v7857_v36, %v6685_v27  ;;  %v4227_v27 = vpop.permute.xlu1 %4226  ;;  %v3110_v43 = vadd.f32 %v7859_v39, %v7858_v61 }
 0x320   : > { %v4668_v33 = vadd.f32 %v4667_v17, %v4486_v9  ;;  %vm3719_vm13 = vcmp.gt.f32.partialorder %v3443_v18, 0.0  ;;  %v3847_v34 = vmul.f32 0.01, %v3443_v18  ;;  %v3447_v60 = vadd.f32 %v3446_v62, %v3094_v16  ;;  %v3448_v11 = vpop.f32.mrb[83].mxu1  ;;  %v7860_v9 = vld [vmem:[#allocation41_spill] sm:$0xff]  ;;  %v7861_v62 = vld [vmem:[#allocation16_spill] sm:$0xff] }
 0x321   : > { %vm3720_vm14 = vcmp.gt.f32.partialorder %v3445_v0, 0.0  ;;  %v3848_v15 = vmul.f32 0.01, %v3445_v0  ;;  %v3449_v56 = vadd.f32 %v3448_v11, %v3096_v1 }
 0x322   : > { %v3975_v26 = vsel %vm3719_vm13, %v3443_v18, %v3847_v34  ;;  %vm3721_vm15 = vcmp.gt.f32.partialorder %v3447_v60, 0.0  ;;  %v3849_v37 = vmul.f32 0.01, %v3447_v60  ;;  %v3112_v18 = vadd.f32 %v7860_v9, %v7858_v61 }
 0x323   : > { %v4487_v54 = vmul.f32 %v4212_v28, %v3975_v26  ;;  %v3976_v35 = vsel %vm3720_vm14, %v3445_v0, %v3848_v15  ;;  %vm3722_vm1 = vcmp.gt.f32.partialorder %v3449_v56, 0.0  ;;  %v3850_v42 = vmul.f32 0.01, %v3449_v56 }
 0x324   : > { %v4488_v55 = vmul.f32 %v4212_v28, %v3976_v35  ;;  %v3977_v13 = vsel %vm3721_vm15, %v3447_v60, %v3849_v37  ;;  %v7863_v28 = vld [vmem:[#allocation44_spill] sm:$0xff] }
 0x325   : > { %v4600_v57 = vadd.f32 %v4599_v46, %v4487_v54  ;;  %v4489_v30 = vmul.f32 %v4217_v14, %v3977_v13  ;;  %v3978_v10 = vsel %vm3722_vm1, %v3449_v56, %v3850_v42  ;;  %v3452_v47 = vpop.f32.mrb[84].mxu1  ;;  %v3116_v26 = vadd.f32 %v7863_v28, %v7861_v62 }
 0x326   : > { %v4669_v44 = vadd.f32 %v4668_v33, %v4488_v55  ;;  %v4490_v50 = vmul.f32 %v4217_v14, %v3978_v10  ;;  %v3453_v59 = vadd.f32 %v3452_v47, %v3100_v40  ;;  %v3454_v3 = vpop.f32.mrb[85].mxu1  ;;  %v7862_v33 = vld [vmem:[#allocation43_spill] sm:$0xff] }
 0x327   : > { %v4601_v31 = vadd.f32 %v4600_v57, %v4489_v30  ;;  %v3455_v52 = vadd.f32 %v3454_v3, %v3102_v32  ;;  %v3456_v45 = vpop.f32.mrb[86].mxu1  ;;  %v3114_v34 = vadd.f32 %v7862_v33, %v7861_v62  ;;  %v4232_v57 = vpop.permute.xlu0 %4231 }
 0x328   : > { %v4670_v51 = vadd.f32 %v4669_v44, %v4490_v50  ;;  %vm3723_vm2 = vcmp.gt.f32.partialorder %v3453_v59, 0.0  ;;  %v3851_v8 = vmul.f32 0.01, %v3453_v59  ;;  %v3457_v21 = vadd.f32 %v3456_v45, %v3104_v38  ;;  %v3458_v58 = vpop.f32.mrb[87].mxu1  ;;  %v4237_v44 = vpop.permute.xlu1 %4236  ;;  %v7864_v50 = vld [vmem:[#allocation19_spill] sm:$0xff] }
 0x329   : > { %vm3724_vm3 = vcmp.gt.f32.partialorder %v3455_v52, 0.0  ;;  %v3852_v41 = vmul.f32 0.01, %v3455_v52  ;;  %v3459_v49 = vadd.f32 %v3458_v58, %v3106_v24  ;;  %v7867_v58 = vld [vmem:[#allocation18_spill] sm:$0xff] }
 0x32a   : > { %v3979_v19 = vsel %vm3723_vm2, %v3453_v59, %v3851_v8  ;;  %vm3725_vm4 = vcmp.gt.f32.partialorder %v3457_v21, 0.0  ;;  %v3853_v23 = vmul.f32 0.01, %v3457_v21  ;;  %v7865_v59 = vld [vmem:[#allocation47_spill] sm:$0xff] }
 0x32b   : > { %v4491_v48 = vmul.f32 %v4222_v63, %v3979_v19  ;;  %v3980_v2 = vsel %vm3724_vm3, %v3455_v52, %v3852_v41  ;;  %vm3726_vm5 = vcmp.gt.f32.partialorder %v3459_v49, 0.0  ;;  %v3854_v5 = vmul.f32 0.01, %v3459_v49  ;;  %v7868_v41 = vld [vmem:[#allocation49_spill] sm:$0xff] }
 0x32c   : > { %v4492_v16 = vmul.f32 %v4222_v63, %v3980_v2  ;;  %v3981_v17 = vsel %vm3725_vm4, %v3457_v21, %v3853_v23  ;;  %v3120_v3 = vadd.f32 %v7865_v59, %v7864_v50  ;;  %v7869_v2 = vld [vmem:[#allocation50_spill] sm:$0xff] }
 0x32d   : > { %v4602_v4 = vadd.f32 %v4601_v31, %v4491_v48  ;;  %v4493_v1 = vmul.f32 %v4227_v27, %v3981_v17  ;;  %v3982_v46 = vsel %vm3726_vm5, %v3459_v49, %v3854_v5  ;;  %v3462_v0 = vpop.f32.mrb[88].mxu1  ;;  %v7866_v31 = vld [vmem:[#allocation48_spill] sm:$0xff]  ;;  %v3124_v49 = vadd.f32 %v7868_v41, %v7867_v58 }
 0x32e   : > { %v4671_v60 = vadd.f32 %v4670_v51, %v4492_v16  ;;  %v4494_v11 = vmul.f32 %v4227_v27, %v3982_v46  ;;  %v3463_v15 = vadd.f32 %v3462_v0, %v3110_v43  ;;  %v3464_v56 = vpop.f32.mrb[89].mxu1  ;;  %v3122_v52 = vadd.f32 %v7866_v31, %v7864_v50 }
 0x32f   : > { %v4603_v37 = vadd.f32 %v4602_v4, %v4493_v1  ;;  %v3465_v54 = vadd.f32 %v3464_v56, %v3112_v18  ;;  %v3466_v35 = vpop.f32.mrb[90].mxu1  ;;  %v3126_v5 = vadd.f32 %v7869_v2, %v7867_v58  ;;  %v4242_v1 = vpop.permute.xlu0 %4241 }
 0x330   : > { %v4672_v42 = vadd.f32 %v4671_v60, %v4494_v11  ;;  %vm3727_vm0 = vcmp.gt.f32.partialorder %v3463_v15, 0.0  ;;  %v3855_v14 = vmul.f32 0.01, %v3463_v15  ;;  %v3467_v40 = vadd.f32 %v3466_v35, %v3114_v34  ;;  %v3468_v55 = vpop.f32.mrb[91].mxu1  ;;  %v4247_v60 = vpop.permute.xlu1 %4246  ;;  %v7870_v11 = vld [vmem:[#allocation21_spill] sm:$0xff] }
 0x331   : > { %vm3728_vm6 = vcmp.gt.f32.partialorder %v3465_v54, 0.0  ;;  %v3856_v13 = vmul.f32 0.01, %v3465_v54  ;;  %v3469_v32 = vadd.f32 %v3468_v55, %v3116_v26  ;;  %v7873_v55 = vld [vmem:[#allocation20_spill] sm:$0xff] }
 0x332   : > { %v3983_v30 = vsel %vm3727_vm0, %v3463_v15, %v3855_v14  ;;  %vm3729_vm7 = vcmp.gt.f32.partialorder %v3467_v40, 0.0  ;;  %v3857_v10 = vmul.f32 0.01, %v3467_v40  ;;  %v7871_v15 = vld [vmem:[#allocation53_spill] sm:$0xff] }
 0x333   : > { %v4495_v47 = vmul.f32 %v4232_v57, %v3983_v30  ;;  %v3984_v25 = vsel %vm3728_vm6, %v3465_v54, %v3856_v13  ;;  %vm3730_vm8 = vcmp.gt.f32.partialorder %v3469_v32, 0.0  ;;  %v3858_v38 = vmul.f32 0.01, %v3469_v32  ;;  %v7874_v13 = vld [vmem:[#allocation55_spill] sm:$0xff] }
 0x334   : > { %v4496_v36 = vmul.f32 %v4232_v57, %v3984_v25  ;;  %v3985_v24 = vsel %vm3729_vm7, %v3467_v40, %v3857_v10  ;;  %v3130_v56 = vadd.f32 %v7871_v15, %v7870_v11  ;;  %v7875_v25 = vld [vmem:[#allocation57_spill] sm:$0xff] }
 0x335   : > { %v4604_v45 = vadd.f32 %v4603_v37, %v4495_v47  ;;  %v4497_v51 = vmul.f32 %v4237_v44, %v3985_v24  ;;  %v3986_v8 = vsel %vm3730_vm8, %v3469_v32, %v3858_v38  ;;  %v3472_v21 = vpop.f32.mrb[92].mxu1  ;;  %v7872_v37 = vld [vmem:[#allocation54_spill] sm:$0xff]  ;;  %v3134_v32 = vadd.f32 %v7874_v13, %v7873_v55 }
 0x336   : > { %v4673_v63 = vadd.f32 %v4672_v42, %v4496_v36  ;;  %v4498_v19 = vmul.f32 %v4237_v44, %v3986_v8  ;;  %v3473_v23 = vadd.f32 %v3472_v21, %v3120_v3  ;;  %v3474_v48 = vpop.f32.mrb[93].mxu1  ;;  %v3132_v54 = vadd.f32 %v7872_v37, %v7870_v11 }
 0x337   : > { %v4605_v27 = vadd.f32 %v4604_v45, %v4497_v51  ;;  %v3475_v61 = vadd.f32 %v3474_v48, %v3122_v52  ;;  %v3476_v39 = vpop.f32.mrb[94].mxu1  ;;  %v3136_v38 = vadd.f32 %v7875_v25, %v7873_v55  ;;  %v4252_v51 = vpop.permute.xlu0 %4251 }
 0x338   : > { %v4674_v43 = vadd.f32 %v4673_v63, %v4498_v19  ;;  %vm3731_vm9 = vcmp.gt.f32.partialorder %v3473_v23, 0.0  ;;  %v3859_v16 = vmul.f32 0.01, %v3473_v23  ;;  %v3477_v17 = vadd.f32 %v3476_v39, %v3124_v49  ;;  %v3478_v9 = vpop.f32.mrb[95].mxu1  ;;  %v4257_v63 = vpop.permute.xlu1 %4256  ;;  %v7876_v19 = vld [vmem:[#allocation23_spill] sm:$0xff] }
 0x339   : > { %vm3732_vm10 = vcmp.gt.f32.partialorder %v3475_v61, 0.0  ;;  %v3860_v18 = vmul.f32 0.01, %v3475_v61  ;;  %v3479_v4 = vadd.f32 %v3478_v9, %v3126_v5  ;;  %v7879_v9 = vld [vmem:[#allocation22_spill] sm:$0xff] }
 0x33a   : > { %v3987_v46 = vsel %vm3731_vm9, %v3473_v23, %v3859_v16  ;;  %vm3733_vm11 = vcmp.gt.f32.partialorder %v3477_v17, 0.0  ;;  %v3861_v0 = vmul.f32 0.01, %v3477_v17  ;;  %v7877_v23 = vld [vmem:[#allocation59_spill] sm:$0xff] }
 0x33b   : > { %v4499_v62 = vmul.f32 %v4242_v1, %v3987_v46  ;;  %v3988_v33 = vsel %vm3732_vm10, %v3475_v61, %v3860_v18  ;;  %vm3734_vm12 = vcmp.gt.f32.partialorder %v3479_v4, 0.0  ;;  %v3862_v34 = vmul.f32 0.01, %v3479_v4  ;;  %v7880_v18 = vld [vmem:[#allocation63_spill] sm:$0xff] }
 0x33c   : > { %v4500_v28 = vmul.f32 %v4242_v1, %v3988_v33  ;;  %v3989_v26 = vsel %vm3733_vm11, %v3477_v17, %v3861_v0  ;;  %v3140_v48 = vadd.f32 %v7877_v23, %v7876_v19  ;;  %v7881_v33 = vld [vmem:[#allocation64_spill] sm:$0xff] }
 0x33d   : > { %v4606_v35 = vadd.f32 %v4605_v27, %v4499_v62  ;;  %v4501_v42 = vmul.f32 %v4247_v60, %v3989_v26  ;;  %v3990_v14 = vsel %vm3734_vm12, %v3479_v4, %v3862_v34  ;;  %v3482_v40 = vpop.f32.mrb[96].mxu1  ;;  %v7878_v27 = vld [vmem:[#allocation61_spill] sm:$0xff]  ;;  %v3144_v4 = vadd.f32 %v7880_v18, %v7879_v9 }
 0x33e   : > { %v4675_v57 = vadd.f32 %v4674_v43, %v4500_v28  ;;  %v4502_v30 = vmul.f32 %v4247_v60, %v3990_v14  ;;  %v3483_v10 = vadd.f32 %v3482_v40, %v3130_v56  ;;  %v3484_v47 = vpop.f32.mrb[97].mxu1  ;;  %v3142_v61 = vadd.f32 %v7878_v27, %v7876_v19 }
 0x33f   : > { %v4607_v44 = vadd.f32 %v4606_v35, %v4501_v42  ;;  %v3485_v50 = vadd.f32 %v3484_v47, %v3132_v54  ;;  %v3486_v59 = vpop.f32.mrb[98].mxu1  ;;  %v3146_v34 = vadd.f32 %v7881_v33, %v7879_v9  ;;  %v4262_v42 = vpop.permute.xlu0 %4261 }
 0x340   : > { %v4676_v3 = vadd.f32 %v4675_v57, %v4502_v30  ;;  %vm3735_vm13 = vcmp.gt.f32.partialorder %v3483_v10, 0.0  ;;  %v3863_v36 = vmul.f32 0.01, %v3483_v10  ;;  %v3487_v24 = vadd.f32 %v3486_v59, %v3134_v32  ;;  %v3488_v31 = vpop.f32.mrb[99].mxu1  ;;  %v4267_v57 = vpop.permute.xlu1 %4266  ;;  %v7882_v30 = vld [vmem:[#allocation25_spill] sm:$0xff] }
 0x341   : > { %vm3736_vm14 = vcmp.gt.f32.partialorder %v3485_v50, 0.0  ;;  %v3864_v52 = vmul.f32 0.01, %v3485_v50  ;;  %v3489_v45 = vadd.f32 %v3488_v31, %v3136_v38  ;;  %v7885_v31 = vld [vmem:[#allocation24_spill] sm:$0xff] }
 0x342   : > { %v3991_v8 = vsel %vm3735_vm13, %v3483_v10, %v3863_v36  ;;  %vm3737_vm15 = vcmp.gt.f32.partialorder %v3487_v24, 0.0  ;;  %v3865_v21 = vmul.f32 0.01, %v3487_v24  ;;  %v7883_v10 = vld [vmem:[#allocation67_spill] sm:$0xff] }
 0x343   : > { %v4503_v58 = vmul.f32 %v4252_v51, %v3991_v8  ;;  %v3992_v41 = vsel %vm3736_vm14, %v3485_v50, %v3864_v52  ;;  %vm3738_vm1 = vcmp.gt.f32.partialorder %v3489_v45, 0.0  ;;  %v3866_v49 = vmul.f32 0.01, %v3489_v45  ;;  %v7886_v52 = vld [vmem:[#allocation69_spill] sm:$0xff] }
 0x344   : > { %v4504_v2 = vmul.f32 %v4252_v51, %v3992_v41  ;;  %v3993_v5 = vsel %vm3737_vm15, %v3487_v24, %v3865_v21  ;;  %v3150_v47 = vadd.f32 %v7883_v10, %v7882_v30  ;;  %v7887_v41 = vld [vmem:[#allocation70_spill] sm:$0xff] }
 0x345   : > { %v4608_v39 = vadd.f32 %v4607_v44, %v4503_v58  ;;  %v4505_v43 = vmul.f32 %v4257_v63, %v3993_v5  ;;  %v3994_v16 = vsel %vm3738_vm1, %v3489_v45, %v3866_v49  ;;  %v3492_v17 = vpop.f32.mrb[100].mxu1  ;;  %v7884_v44 = vld [vmem:[#allocation68_spill] sm:$0xff]  ;;  %v3154_v45 = vadd.f32 %v7886_v52, %v7885_v31 }
 0x346   : > { %v4677_v1 = vadd.f32 %v4676_v3, %v4504_v2  ;;  %v4506_v46 = vmul.f32 %v4257_v63, %v3994_v16  ;;  %v3493_v0 = vadd.f32 %v3492_v17, %v3140_v48  ;;  %v3494_v62 = vpop.f32.mrb[101].mxu1  ;;  %v3152_v50 = vadd.f32 %v7884_v44, %v7882_v30 }
 0x347   : > { %v4609_v60 = vadd.f32 %v4608_v39, %v4505_v43  ;;  %v3495_v11 = vadd.f32 %v3494_v62, %v3142_v61  ;;  %v3496_v15 = vpop.f32.mrb[102].mxu1  ;;  %v3156_v49 = vadd.f32 %v7887_v41, %v7885_v31  ;;  %v4272_v43 = vpop.permute.xlu0 %4271 }
 0x348   : > { %v4678_v56 = vadd.f32 %v4677_v1, %v4506_v46  ;;  %vm3739_vm2 = vcmp.gt.f32.partialorder %v3493_v0, 0.0  ;;  %v3867_v28 = vmul.f32 0.01, %v3493_v0  ;;  %v3497_v26 = vadd.f32 %v3496_v15, %v3144_v4  ;;  %v3498_v37 = vpop.f32.mrb[103].mxu1  ;;  %v4277_v1 = vpop.permute.xlu1 %4276  ;;  %v7888_v46 = vld [vmem:[#allocation27_spill] sm:$0xff] }
 0x349   : > { %vm3740_vm3 = vcmp.gt.f32.partialorder %v3495_v11, 0.0  ;;  %v3868_v54 = vmul.f32 0.01, %v3495_v11  ;;  %v3499_v35 = vadd.f32 %v3498_v37, %v3146_v34  ;;  %v7891_v37 = vld [vmem:[#allocation26_spill] sm:$0xff] }
 0x34a   : > { %v3995_v14 = vsel %vm3739_vm2, %v3493_v0, %v3867_v28  ;;  %vm3741_vm4 = vcmp.gt.f32.partialorder %v3497_v26, 0.0  ;;  %v3869_v40 = vmul.f32 0.01, %v3497_v26  ;;  %v7889_v0 = vld [vmem:[#allocation73_spill] sm:$0xff] }
 0x34b   : > { %v4507_v55 = vmul.f32 %v4262_v42, %v3995_v14  ;;  %v3996_v13 = vsel %vm3740_vm3, %v3495_v11, %v3868_v54  ;;  %vm3742_vm5 = vcmp.gt.f32.partialorder %v3499_v35, 0.0  ;;  %v3870_v32 = vmul.f32 0.01, %v3499_v35  ;;  %v7892_v54 = vld [vmem:[#allocation75_spill] sm:$0xff] }
 0x34c   : > { %v4508_v25 = vmul.f32 %v4262_v42, %v3996_v13  ;;  %v3997_v38 = vsel %vm3741_vm4, %v3497_v26, %v3869_v40  ;;  %v3160_v62 = vadd.f32 %v7889_v0, %v7888_v46  ;;  %v7893_v13 = vld [vmem:[#allocation77_spill] sm:$0xff] }
 0x34d   : > { %v4610_v59 = vadd.f32 %v4609_v60, %v4507_v55  ;;  %v4509_v3 = vmul.f32 %v4267_v57, %v3997_v38  ;;  %v3998_v36 = vsel %vm3742_vm5, %v3499_v35, %v3870_v32  ;;  %v3502_v24 = vpop.f32.mrb[104].mxu1  ;;  %v7890_v60 = vld [vmem:[#allocation74_spill] sm:$0xff]  ;;  %v3164_v35 = vadd.f32 %v7892_v54, %v7891_v37 }
 0x34e   : > { %v4679_v51 = vadd.f32 %v4678_v56, %v4508_v25  ;;  %v4510_v8 = vmul.f32 %v4267_v57, %v3998_v36  ;;  %v3503_v21 = vadd.f32 %v3502_v24, %v3150_v47  ;;  %v3504_v58 = vpop.f32.mrb[105].mxu1  ;;  %v3162_v11 = vadd.f32 %v7890_v60, %v7888_v46 }
 0x34f   : > { %v4611_v63 = vadd.f32 %v4610_v59, %v4509_v3  ;;  %v3505_v19 = vadd.f32 %v3504_v58, %v3152_v50  ;;  %v3506_v23 = vpop.f32.mrb[106].mxu1  ;;  %v3166_v32 = vadd.f32 %v7893_v13, %v7891_v37  ;;  %v4282_v3 = vpop.permute.xlu0 %4281 }
 0x350   : > { %v4680_v48 = vadd.f32 %v4679_v51, %v4510_v8  ;;  %vm3743_vm0 = vcmp.gt.f32.partialorder %v3503_v21, 0.0  ;;  %v3871_v2 = vmul.f32 0.01, %v3503_v21  ;;  %v3507_v5 = vadd.f32 %v3506_v23, %v3154_v45  ;;  %v3508_v27 = vpop.f32.mrb[107].mxu1  ;;  %v4287_v51 = vpop.permute.xlu1 %4286  ;;  %v7894_v8 = vld [vmem:[#allocation8_spill] sm:$0xff] }
 0x351   : > { %vm3744_vm6 = vcmp.gt.f32.partialorder %v3505_v19, 0.0  ;;  %v3872_v61 = vmul.f32 0.01, %v3505_v19  ;;  %v3509_v39 = vadd.f32 %v3508_v27, %v3156_v49  ;;  %v7897_v27 = vld [vmem:[#allocation7_spill] sm:$0xff] }
 0x352   : > { %v3999_v16 = vsel %vm3743_vm0, %v3503_v21, %v3871_v2  ;;  %vm3745_vm7 = vcmp.gt.f32.partialorder %v3507_v5, 0.0  ;;  %v3873_v17 = vmul.f32 0.01, %v3507_v5  ;;  %v7895_v21 = vld [vmem:[#allocation79_spill] sm:$0xff] }
 0x353   : > { %v4511_v9 = vmul.f32 %v4272_v43, %v3999_v16  ;;  %v4000_v18 = vsel %vm3744_vm6, %v3505_v19, %v3872_v61  ;;  %vm3746_vm8 = vcmp.gt.f32.partialorder %v3509_v39, 0.0  ;;  %v3874_v4 = vmul.f32 0.01, %v3509_v39  ;;  %v7898_v61 = vld [vmem:[#allocation83_spill] sm:$0xff] }
 0x354   : > { %v4512_v33 = vmul.f32 %v4272_v43, %v4000_v18  ;;  %v4001_v34 = vsel %vm3745_vm7, %v3507_v5, %v3873_v17  ;;  %v3170_v58 = vadd.f32 %v7895_v21, %v7894_v8  ;;  %v7899_v18 = vld [vmem:[#allocation84_spill] sm:$0xff] }
 0x355   : > { %v4612_v15 = vadd.f32 %v4611_v63, %v4511_v9  ;;  %v4513_v56 = vmul.f32 %v4277_v1, %v4001_v34  ;;  %v4002_v28 = vsel %vm3746_vm8, %v3509_v39, %v3874_v4  ;;  %v3512_v26 = vpop.f32.mrb[108].mxu1  ;;  %v7896_v63 = vld [vmem:[#allocation81_spill] sm:$0xff]  ;;  %v3174_v39 = vadd.f32 %v7898_v61, %v7897_v27 }
 0x356   : > { %v4681_v42 = vadd.f32 %v4680_v48, %v4512_v33  ;;  %v4514_v14 = vmul.f32 %v4277_v1, %v4002_v28  ;;  %v3513_v40 = vadd.f32 %v3512_v26, %v3160_v62  ;;  %v3514_v55 = vpop.f32.mrb[109].mxu1  ;;  %v3172_v19 = vadd.f32 %v7896_v63, %v7894_v8 }
 0x357   : > { %v4613_v57 = vadd.f32 %v4612_v15, %v4513_v56  ;;  %v3515_v30 = vadd.f32 %v3514_v55, %v3162_v11  ;;  %v3516_v10 = vpop.f32.mrb[110].mxu1  ;;  %v3176_v4 = vadd.f32 %v7899_v18, %v7897_v27  ;;  %v4292_v56 = vpop.permute.xlu0 %4291 }
 0x358   : > { %v4682_v47 = vadd.f32 %v4681_v42, %v4514_v14  ;;  %vm3747_vm9 = vcmp.gt.f32.partialorder %v3513_v40, 0.0  ;;  %v3875_v25 = vmul.f32 0.01, %v3513_v40  ;;  %v3517_v38 = vadd.f32 %v3516_v10, %v3164_v35  ;;  %v3518_v44 = vpop.f32.mrb[111].mxu1  ;;  %v4297_v42 = vpop.permute.xlu1 %4296  ;;  %v7900_v14 = vld [vmem:[#allocation10_spill] sm:$0xff] }
 0x359   : > { %vm3748_vm10 = vcmp.gt.f32.partialorder %v3515_v30, 0.0  ;;  %v3876_v50 = vmul.f32 0.01, %v3515_v30  ;;  %v3519_v59 = vadd.f32 %v3518_v44, %v3166_v32  ;;  %v7903_v44 = vld [vmem:[#allocation9_spill] sm:$0xff] }
 0x35a   : > { %v4003_v36 = vsel %vm3747_vm9, %v3513_v40, %v3875_v25  ;;  %vm3749_vm11 = vcmp.gt.f32.partialorder %v3517_v38, 0.0  ;;  %v3877_v24 = vmul.f32 0.01, %v3517_v38  ;;  %v7901_v40 = vld [vmem:[#allocation87_spill] sm:$0xff] }
 0x35b   : > { %v4515_v31 = vmul.f32 %v4282_v3, %v4003_v36  ;;  %v4004_v52 = vsel %vm3748_vm10, %v3515_v30, %v3876_v50  ;;  %vm3750_vm12 = vcmp.gt.f32.partialorder %v3519_v59, 0.0  ;;  %v3878_v45 = vmul.f32 0.01, %v3519_v59  ;;  %v7904_v50 = vld [vmem:[#allocation89_spill] sm:$0xff] }
 0x35c   : > { %v4516_v41 = vmul.f32 %v4282_v3, %v4004_v52  ;;  %v4005_v49 = vsel %vm3749_vm11, %v3517_v38, %v3877_v24  ;;  %v3180_v55 = vadd.f32 %v7901_v40, %v7900_v14  ;;  %v7905_v52 = vld [vmem:[#allocation90_spill] sm:$0xff] }
 0x35d   : > { %v4614_v23 = vadd.f32 %v4613_v57, %v4515_v31  ;;  %v4517_v48 = vmul.f32 %v4287_v51, %v4005_v49  ;;  %v4006_v2 = vsel %vm3750_vm12, %v3519_v59, %v3878_v45  ;;  %v3522_v5 = vpop.f32.mrb[112].mxu1  ;;  %v7902_v57 = vld [vmem:[#allocation88_spill] sm:$0xff]  ;;  %v3184_v59 = vadd.f32 %v7904_v50, %v7903_v44 }
 0x35e   : > { %v4683_v43 = vadd.f32 %v4682_v47, %v4516_v41  ;;  %v4518_v16 = vmul.f32 %v4287_v51, %v4006_v2  ;;  %v3523_v17 = vadd.f32 %v3522_v5, %v3170_v58  ;;  %v3524_v9 = vpop.f32.mrb[113].mxu1  ;;  %v3182_v30 = vadd.f32 %v7902_v57, %v7900_v14 }
 0x35f   : > { %v4615_v1 = vadd.f32 %v4614_v23, %v4517_v48  ;;  %v3525_v46 = vadd.f32 %v3524_v9, %v3172_v19  ;;  %v3526_v0 = vpop.f32.mrb[114].mxu1  ;;  %v3186_v45 = vadd.f32 %v7905_v52, %v7903_v44  ;;  %v4302_v48 = vpop.permute.xlu0 %4301  ;;  %v7910_v52 = vld [vmem:[#allocation29_spill] sm:$0xff] }
 0x360   : > { %v4684_v62 = vadd.f32 %v4683_v43, %v4518_v16  ;;  %vm3751_vm13 = vcmp.gt.f32.partialorder %v3523_v17, 0.0  ;;  %v3879_v33 = vmul.f32 0.01, %v3523_v17  ;;  %v3527_v34 = vadd.f32 %v3526_v0, %v3174_v39  ;;  %v3528_v60 = vpop.f32.mrb[115].mxu1  ;;  %v4307_v43 = vpop.permute.xlu1 %4306  ;;  %v7906_v16 = vld [vmem:[#allocation28_spill] sm:$0xff] }
 0x361   : > { %vm3752_vm14 = vcmp.gt.f32.partialorder %v3525_v46, 0.0  ;;  %v3880_v11 = vmul.f32 0.01, %v3525_v46  ;;  %v3529_v15 = vadd.f32 %v3528_v60, %v3176_v4  ;;  %v3192_v4 = vadd.f32 %v7415_v22, %v7906_v16 }
 0x362   : > { %v4007_v28 = vsel %vm3751_vm13, %v3523_v17, %v3879_v33  ;;  %vm3753_vm15 = vcmp.gt.f32.partialorder %v3527_v34, 0.0  ;;  %v3881_v26 = vmul.f32 0.01, %v3527_v34  ;;  %v3190_v17 = vadd.f32 %v7411_v7, %v7906_v16  ;;  %v7907_v33 = vld [vmem:[#allocation11_spill] sm:$0xff] }
 0x363   : > { %v4519_v37 = vmul.f32 %v4292_v56, %v4007_v28  ;;  %v4008_v54 = vsel %vm3752_vm14, %v3525_v46, %v3880_v11  ;;  %vm3754_vm1 = vcmp.gt.f32.partialorder %v3529_v15, 0.0  ;;  %v3882_v35 = vmul.f32 0.01, %v3529_v15  ;;  %v7908_v28 = vld [vmem:[#allocation91_spill] sm:$0xff] }
 0x364   : > { %v4520_v13 = vmul.f32 %v4292_v56, %v4008_v54  ;;  %v4009_v32 = vsel %vm3753_vm15, %v3527_v34, %v3881_v26  ;;  %v3194_v34 = vadd.f32 %v7419_v29, %v7907_v33  ;;  %v3196_v26 = vadd.f32 %v7908_v28, %v7907_v33  ;;  %v7911_v33 = vld [vmem:[#allocation32_spill] sm:$0xff] }
 0x365   : > { %v4616_v10 = vadd.f32 %v4615_v1, %v4519_v37  ;;  %v4521_v47 = vmul.f32 %v4297_v42, %v4009_v32  ;;  %v4010_v25 = vsel %vm3754_vm1, %v3529_v15, %v3882_v35  ;;  %v3532_v38 = vpop.f32.mrb[116].mxu1 }
 0x366   : > { %v4685_v3 = vadd.f32 %v4684_v62, %v4520_v13  ;;  %v4522_v36 = vmul.f32 %v4297_v42, %v4010_v25  ;;  %v3533_v24 = vadd.f32 %v3532_v38, %v3180_v55  ;;  %v3534_v31 = vpop.f32.mrb[117].mxu1  ;;  %v4312_v13 = vpop.permute.xlu0 %4311  ;;  %v7909_v25 = vld [vmem:[#allocation30_spill] sm:$0xff] }
 0x367   : > { %v4617_v51 = vadd.f32 %v4616_v10, %v4521_v47  ;;  %v3535_v8 = vadd.f32 %v3534_v31, %v3182_v30  ;;  %v3536_v21 = vpop.f32.mrb[118].mxu1  ;;  %v4317_v47 = vpop.permute.xlu1 %4316  ;;  %v3200_v38 = vadd.f32 %v7433_v20, %v7909_v25 }
 0x368   : > { %v4686_v58 = vadd.f32 %v4685_v3, %v4522_v36  ;;  %vm3755_vm2 = vcmp.gt.f32.partialorder %v3533_v24, 0.0  ;;  %v3883_v41 = vmul.f32 0.01, %v3533_v24  ;;  %v3537_v49 = vadd.f32 %v3536_v21, %v3184_v59  ;;  %v3538_v63 = vpop.f32.mrb[119].mxu1 }
 0x369   : > { %vm3756_vm3 = vcmp.gt.f32.partialorder %v3535_v8, 0.0  ;;  %v3884_v19 = vmul.f32 0.01, %v3535_v8  ;;  %v3539_v23 = vadd.f32 %v3538_v63, %v3186_v45  ;;  %v3202_v59 = vadd.f32 %v7437_v12, %v7909_v25 }
 0x36a   : > { %v4011_v2 = vsel %vm3755_vm2, %v3533_v24, %v3883_v41  ;;  %vm3757_vm4 = vcmp.gt.f32.partialorder %v3537_v49, 0.0  ;;  %v3885_v5 = vmul.f32 0.01, %v3537_v49  ;;  %v3204_v45 = vadd.f32 %v7441_v53, %v7910_v52 }
 0x36b   : > { %v4523_v27 = vmul.f32 %v4302_v48, %v4011_v2  ;;  %v4012_v61 = vsel %vm3756_vm3, %v3535_v8, %v3884_v19  ;;  %vm3758_vm5 = vcmp.gt.f32.partialorder %v3539_v23, 0.0  ;;  %v3886_v39 = vmul.f32 0.01, %v3539_v23 }
 0x36c   : > { %v4524_v9 = vmul.f32 %v4302_v48, %v4012_v61  ;;  %v4013_v18 = vsel %vm3757_vm4, %v3537_v49, %v3885_v5  ;;  %v3206_v41 = vadd.f32 %v7448_v6, %v7910_v52  ;;  %v4327_v6 = vpop.permute.xlu1 %4326 }
 0x36d   : > { %v4618_v1 = vadd.f32 %v4617_v51, %v4523_v27  ;;  %v4525_v46 = vmul.f32 %v4307_v43, %v4013_v18  ;;  %v4014_v0 = vsel %vm3758_vm5, %v3539_v23, %v3886_v39  ;;  %v3542_v62 = vpop.f32.mrb[120].mxu1  ;;  %v4322_v27 = vpop.permute.xlu0 %4321 }
 0x36e   : > { %v4687_v60 = vadd.f32 %v4686_v58, %v4524_v9  ;;  %v4526_v11 = vmul.f32 %v4307_v43, %v4014_v0  ;;  %v3543_v15 = vadd.f32 %v3542_v62, %v3190_v17  ;;  %v3544_v56 = vpop.f32.mrb[121].mxu1 }
 0x36f   : > { %v4619_v7 = vadd.f32 %v4618_v1, %v4525_v46  ;;  %v3545_v37 = vadd.f32 %v3544_v56, %v3192_v4  ;;  %v3546_v54 = vpop.f32.mrb[122].mxu1 }
 0x370   : > { %v4688_v35 = vadd.f32 %v4687_v60, %v4526_v11  ;;  %vm3759_vm0 = vcmp.gt.f32.partialorder %v3543_v15, 0.0  ;;  %v3887_v22 = vmul.f32 0.01, %v3543_v15  ;;  %v3547_v42 = vadd.f32 %v3546_v54, %v3194_v34  ;;  %v3548_v14 = vpop.f32.mrb[123].mxu1 }
 0x371   : > { %vm3760_vm6 = vcmp.gt.f32.partialorder %v3545_v37, 0.0  ;;  %v3888_v40 = vmul.f32 0.01, %v3545_v37  ;;  %v3549_v55 = vadd.f32 %v3548_v14, %v3196_v26 }
 0x372   : > { %v4015_v29 = vsel %vm3759_vm0, %v3543_v15, %v3887_v22  ;;  %vm3761_vm7 = vcmp.gt.f32.partialorder %v3547_v42, 0.0  ;;  %v3889_v32 = vmul.f32 0.01, %v3547_v42 }
 0x373   : > { %v4527_v57 = vmul.f32 %v4312_v13, %v4015_v29  ;;  %v4016_v30 = vsel %vm3760_vm6, %v3545_v37, %v3888_v40  ;;  %vm3762_vm8 = vcmp.gt.f32.partialorder %v3549_v55, 0.0  ;;  %v3890_v10 = vmul.f32 0.01, %v3549_v55 }
 0x374   : > { %v4528_v44 = vmul.f32 %v4312_v13, %v4016_v30  ;;  %v4017_v50 = vsel %vm3761_vm7, %v3547_v42, %v3889_v32  ;;  %v4332_v42 = vpop.permute.xlu0 %4331  ;;  %v4337_v32 = vpop.permute.xlu1 %4336 }
 0x375   : > { %v4620_v3 = vadd.f32 %v4619_v7, %v4527_v57  ;;  %v4529_v36 = vmul.f32 %v4317_v47, %v4017_v50  ;;  %v4018_v24 = vsel %vm3762_vm8, %v3549_v55, %v3890_v10  ;;  %v3552_v31 = vpop.f32.mrb[124].mxu1  ;;  %v7912_v7 = vld [vmem:[#allocation31_spill] sm:$0xff] }
 0x376   : > { %v4689_v51 = vadd.f32 %v4688_v35, %v4528_v44  ;;  %v4530_v8 = vmul.f32 %v4317_v47, %v4018_v24  ;;  %v3553_v21 = vadd.f32 %v3552_v31, %v3200_v38  ;;  %v3554_v58 = vpop.f32.mrb[125].mxu1 }
 0x377   : > { %v4621_v20 = vadd.f32 %v4620_v3, %v4529_v36  ;;  %v3555_v49 = vadd.f32 %v3554_v58, %v3202_v59  ;;  %v3556_v63 = vpop.f32.mrb[126].mxu1  ;;  %v7913_v59 = vld [vmem:[#allocation34_spill] sm:$0xff] }
 0x378   : > { %v4690_v19 = vadd.f32 %v4689_v51, %v4530_v8  ;;  %vm3763_vm9 = vcmp.gt.f32.partialorder %v3553_v21, 0.0  ;;  %v3891_v12 = vmul.f32 0.01, %v3553_v21  ;;  %v3557_v23 = vadd.f32 %v3556_v63, %v3204_v45  ;;  %v3558_v48 = vpop.f32.mrb[127].mxu1  ;;  %v7914_v8 = vld [vmem:[#allocation33_spill] sm:$0xff] }
 0x379   : > { %vm3764_vm10 = vcmp.gt.f32.partialorder %v3555_v49, 0.0  ;;  %v3892_v2 = vmul.f32 0.01, %v3555_v49  ;;  %v3559_v5 = vadd.f32 %v3558_v48, %v3206_v41 }
 0x37a   : > { %v4019_v53 = vsel %vm3763_vm9, %v3553_v21, %v3891_v12  ;;  %vm3765_vm11 = vcmp.gt.f32.partialorder %v3557_v23, 0.0  ;;  %v3893_v61 = vmul.f32 0.01, %v3557_v23 }
 0x37b   : > { %v4531_v39 = vmul.f32 %v4322_v27, %v4019_v53  ;;  %v4020_v43 = vsel %vm3764_vm10, %v3555_v49, %v3892_v2  ;;  %vm3766_vm12 = vcmp.gt.f32.partialorder %v3559_v5, 0.0  ;;  %v3894_v16 = vmul.f32 0.01, %v3559_v5  ;;  %v4342_v49 = vpop.permute.xlu0 %4341  ;;  %v4347_v2 = vpop.permute.xlu1 %4346 }
 0x37c   : > { %v4532_v17 = vmul.f32 %v4322_v27, %v4020_v43  ;;  %v4021_v9 = vsel %vm3765_vm11, %v3557_v23, %v3893_v61 }
 0x37d   : > { %v4622_v18 = vadd.f32 %v4621_v20, %v4531_v39  ;;  %v4533_v4 = vmul.f32 %v4327_v6, %v4021_v9  ;;  %v4022_v1 = vsel %vm3766_vm12, %v3559_v5, %v3894_v16  ;;  %v3562_v46 = vpop.f32.mrb[0].mxu1 }
 0x37e   : > { %v4691_v0 = vadd.f32 %v4690_v19, %v4532_v17  ;;  %v4534_v62 = vmul.f32 %v4327_v6, %v4022_v1  ;;  %v5224_v34 = vadd.f32 %v3562_v46, %v7911_v33  ;;  %v3564_v60 = vpop.f32.mrb[1].mxu1  ;;  %v7915_v17 = vld [vmem:[#allocation38_spill] sm:$0xff] }
 0x37f   : > { %v4623_v11 = vadd.f32 %v4622_v18, %v4533_v4  ;;  %v5225_v15 = vadd.f32 %v3564_v60, %v7911_v33  ;;  %v3566_v56 = vpop.f32.mrb[2].mxu1  ;;  %v7916_v33 = vld [vmem:[#allocation36_spill] sm:$0xff] }
 0x380   : > { %v4692_v28 = vadd.f32 %v4691_v0, %v4534_v62  ;;  %vm3767_vm13 = vcmp.gt.f32.partialorder %v5224_v34, 0.0  ;;  %v3895_v26 = vmul.f32 0.01, %v5224_v34  ;;  %v5226_v37 = vadd.f32 %v3566_v56, %v7912_v7  ;;  %v3568_v54 = vpop.f32.mrb[3].mxu1  ;;  %v4352_v56 = vpop.permute.xlu0 %4351 }
 0x381   : > { %vm3768_vm14 = vcmp.gt.f32.partialorder %v5225_v15, 0.0  ;;  %v3896_v35 = vmul.f32 0.01, %v5225_v15  ;;  %v5227_v22 = vadd.f32 %v3568_v54, %v7912_v7 }
 0x382   : > { %v4023_v14 = vsel %vm3767_vm13, %v5224_v34, %v3895_v26  ;;  %vm3769_vm15 = vcmp.gt.f32.partialorder %v5226_v37, 0.0  ;;  %v3897_v40 = vmul.f32 0.01, %v5226_v37 }
 0x383   : > { %v4535_v55 = vmul.f32 %v4332_v42, %v4023_v14  ;;  %v4024_v13 = vsel %vm3768_vm14, %v5225_v15, %v3896_v35  ;;  %vm3770_vm1 = vcmp.gt.f32.partialorder %v5227_v22, 0.0  ;;  %v3898_v29 = vmul.f32 0.01, %v5227_v22  ;;  %v4357_v35 = vpop.permute.xlu1 %4356 }
 0x384   : > { %v4536_v57 = vmul.f32 %v4332_v42, %v4024_v13  ;;  %v4025_v30 = vsel %vm3769_vm15, %v5226_v37, %v3897_v40 }
 0x385   : > { %v4624_v10 = vadd.f32 %v4623_v11, %v4535_v55  ;;  %v4537_v47 = vmul.f32 %v4337_v32, %v4025_v30  ;;  %v4026_v25 = vsel %vm3770_vm1, %v5227_v22, %v3898_v29  ;;  %v3572_v38 = vpop.f32.mrb[4].mxu1 }
 0x386   : > { %v4693_v44 = vadd.f32 %v4692_v28, %v4536_v57  ;;  %v4538_v50 = vmul.f32 %v4337_v32, %v4026_v25  ;;  %v5228_v3 = vadd.f32 %v3572_v38, %v7913_v59  ;;  %v3574_v36 = vpop.f32.mrb[5].mxu1  ;;  %v7917_v57 = vld [vmem:[#allocation42_spill] sm:$0xff] }
 0x387   : > { %v4625_v24 = vadd.f32 %v4624_v10, %v4537_v47  ;;  %v5229_v31 = vadd.f32 %v3574_v36, %v7913_v59  ;;  %v3576_v52 = vpop.f32.mrb[6].mxu1  ;;  %v7918_v59 = vld [vmem:[#allocation40_spill] sm:$0xff] }
 0x388   : > { %v4694_v45 = vadd.f32 %v4693_v44, %v4538_v50  ;;  %vm3771_vm2 = vcmp.gt.f32.partialorder %v5228_v3, 0.0  ;;  %v3899_v51 = vmul.f32 0.01, %v5228_v3  ;;  %v5230_v21 = vadd.f32 %v3576_v52, %v7914_v8  ;;  %v3578_v58 = vpop.f32.mrb[7].mxu1  ;;  %v4362_v52 = vpop.permute.xlu0 %4361 }
 0x389   : > { %vm3772_vm3 = vcmp.gt.f32.partialorder %v5229_v31, 0.0  ;;  %v3900_v41 = vmul.f32 0.01, %v5229_v31  ;;  %v5231_v20 = vadd.f32 %v3578_v58, %v7914_v8 }
 0x38a   : > { %v4027_v63 = vsel %vm3771_vm2, %v5228_v3, %v3899_v51  ;;  %vm3773_vm4 = vcmp.gt.f32.partialorder %v5230_v21, 0.0  ;;  %v3901_v19 = vmul.f32 0.01, %v5230_v21 }
 0x38b   : > { %v4539_v12 = vmul.f32 %v4342_v49, %v4027_v63  ;;  %v4028_v23 = vsel %vm3772_vm3, %v5229_v31, %v3900_v41  ;;  %vm3774_vm5 = vcmp.gt.f32.partialorder %v5231_v20, 0.0  ;;  %v3902_v48 = vmul.f32 0.01, %v5231_v20  ;;  %v4367_v41 = vpop.permute.xlu1 %4366 }
 0x38c   : > { %v4540_v5 = vmul.f32 %v4342_v49, %v4028_v23  ;;  %v4029_v27 = vsel %vm3773_vm4, %v5230_v21, %v3901_v19 }
 0x38d   : > { %v4626_v53 = vadd.f32 %v4625_v24, %v4539_v12  ;;  %v4541_v61 = vmul.f32 %v4347_v2, %v4029_v27  ;;  %v4030_v39 = vsel %vm3774_vm5, %v5231_v20, %v3902_v48  ;;  %v3582_v43 = vpop.f32.mrb[8].mxu1 }
 0x38e   : > { %v4695_v16 = vadd.f32 %v4694_v45, %v4540_v5  ;;  %v4542_v6 = vmul.f32 %v4347_v2, %v4030_v39  ;;  %v5232_v9 = vadd.f32 %v3582_v43, %v7915_v17  ;;  %v3584_v18 = vpop.f32.mrb[9].mxu1  ;;  %v7919_v5 = vld [vmem:[#allocation46_spill] sm:$0xff] }
 0x38f   : > { %v4627_v4 = vadd.f32 %v4626_v53, %v4541_v61  ;;  %v5233_v1 = vadd.f32 %v3584_v18, %v7915_v17  ;;  %v3586_v46 = vpop.f32.mrb[10].mxu1  ;;  %v7920_v17 = vld [vmem:[#allocation45_spill] sm:$0xff] }
 0x390   : > { %v4696_v0 = vadd.f32 %v4695_v16, %v4542_v6  ;;  %vm3775_vm0 = vcmp.gt.f32.partialorder %v5232_v9, 0.0  ;;  %v3903_v62 = vmul.f32 0.01, %v5232_v9  ;;  %v5234_v34 = vadd.f32 %v3586_v46, %v7916_v33  ;;  %v3588_v60 = vpop.f32.mrb[11].mxu1  ;;  %v4372_v46 = vpop.permute.xlu0 %4371 }
 0x391   : > { %vm3776_vm6 = vcmp.gt.f32.partialorder %v5233_v1, 0.0  ;;  %v3904_v11 = vmul.f32 0.01, %v5233_v1  ;;  %v5235_v15 = vadd.f32 %v3588_v60, %v7916_v33 }
 0x392   : > { %v4031_v28 = vsel %vm3775_vm0, %v5232_v9, %v3903_v62  ;;  %vm3777_vm7 = vcmp.gt.f32.partialorder %v5234_v34, 0.0  ;;  %v3905_v26 = vmul.f32 0.01, %v5234_v34 }
 0x393   : > { %v4543_v7 = vmul.f32 %v4352_v56, %v4031_v28  ;;  %v4032_v37 = vsel %vm3776_vm6, %v5233_v1, %v3904_v11  ;;  %vm3778_vm8 = vcmp.gt.f32.partialorder %v5235_v15, 0.0  ;;  %v3906_v54 = vmul.f32 0.01, %v5235_v15  ;;  %v4377_v11 = vpop.permute.xlu1 %4376 }
 0x394   : > { %v4544_v22 = vmul.f32 %v4352_v56, %v4032_v37  ;;  %v4033_v42 = vsel %vm3777_vm7, %v5234_v34, %v3905_v26 }
 0x395   : > { %v4628_v14 = vadd.f32 %v4627_v4, %v4543_v7  ;;  %v4545_v40 = vmul.f32 %v4357_v35, %v4033_v42  ;;  %v4034_v55 = vsel %vm3778_vm8, %v5235_v15, %v3906_v54  ;;  %v3592_v13 = vpop.f32.mrb[12].mxu1 }
 0x396   : > { %v4697_v29 = vadd.f32 %v4696_v0, %v4544_v22  ;;  %v4546_v32 = vmul.f32 %v4357_v35, %v4034_v55  ;;  %v5236_v30 = vadd.f32 %v3592_v13, %v7917_v57  ;;  %v3594_v10 = vpop.f32.mrb[13].mxu1  ;;  %v7921_v22 = vld [vmem:[#allocation52_spill] sm:$0xff] }
 0x397   : > { %v4629_v47 = vadd.f32 %v4628_v14, %v4545_v40  ;;  %v5237_v25 = vadd.f32 %v3594_v10, %v7917_v57  ;;  %v3596_v38 = vpop.f32.mrb[14].mxu1  ;;  %v7922_v57 = vld [vmem:[#allocation51_spill] sm:$0xff] }
 0x398   : > { %v4698_v44 = vadd.f32 %v4697_v29, %v4546_v32  ;;  %vm3779_vm9 = vcmp.gt.f32.partialorder %v5236_v30, 0.0  ;;  %v3907_v50 = vmul.f32 0.01, %v5236_v30  ;;  %v5238_v3 = vadd.f32 %v3596_v38, %v7918_v59  ;;  %v3598_v36 = vpop.f32.mrb[15].mxu1  ;;  %v4382_v38 = vpop.permute.xlu0 %4381 }
 0x399   : > { %vm3780_vm10 = vcmp.gt.f32.partialorder %v5237_v25, 0.0  ;;  %v3908_v24 = vmul.f32 0.01, %v5237_v25  ;;  %v5239_v31 = vadd.f32 %v3598_v36, %v7918_v59 }
 0x39a   : > { %v4035_v45 = vsel %vm3779_vm9, %v5236_v30, %v3907_v50  ;;  %vm3781_vm11 = vcmp.gt.f32.partialorder %v5238_v3, 0.0  ;;  %v3909_v51 = vmul.f32 0.01, %v5238_v3 }
 0x39b   : > { %v4547_v8 = vmul.f32 %v4362_v52, %v4035_v45  ;;  %v4036_v21 = vsel %vm3780_vm10, %v5237_v25, %v3908_v24  ;;  %vm3782_vm12 = vcmp.gt.f32.partialorder %v5239_v31, 0.0  ;;  %v3910_v58 = vmul.f32 0.01, %v5239_v31  ;;  %v4387_v24 = vpop.permute.xlu1 %4386 }
 0x39c   : > { %v4548_v20 = vmul.f32 %v4362_v52, %v4036_v21  ;;  %v4037_v49 = vsel %vm3781_vm11, %v5238_v3, %v3909_v51 }
 0x39d   : > { %v4630_v63 = vadd.f32 %v4629_v47, %v4547_v8  ;;  %v4549_v19 = vmul.f32 %v4367_v41, %v4037_v49  ;;  %v4038_v12 = vsel %vm3782_vm12, %v5239_v31, %v3910_v58  ;;  %v3602_v23 = vpop.f32.mrb[16].mxu1 }
 0x39e   : > { %v4699_v48 = vadd.f32 %v4698_v44, %v4548_v20  ;;  %v4550_v2 = vmul.f32 %v4367_v41, %v4038_v12  ;;  %v5240_v27 = vadd.f32 %v3602_v23, %v7919_v5  ;;  %v3604_v53 = vpop.f32.mrb[17].mxu1  ;;  %v7923_v20 = vld [vmem:[#allocation58_spill] sm:$0xff] }
 0x39f   : > { %v4631_v61 = vadd.f32 %v4630_v63, %v4549_v19  ;;  %v5241_v39 = vadd.f32 %v3604_v53, %v7919_v5  ;;  %v3606_v43 = vpop.f32.mrb[18].mxu1  ;;  %v7924_v5 = vld [vmem:[#allocation56_spill] sm:$0xff] }
 0x3a0   : > { %v4700_v16 = vadd.f32 %v4699_v48, %v4550_v2  ;;  %vm3783_vm13 = vcmp.gt.f32.partialorder %v5240_v27, 0.0  ;;  %v3911_v6 = vmul.f32 0.01, %v5240_v27  ;;  %v5242_v9 = vadd.f32 %v3606_v43, %v7920_v17  ;;  %v3608_v18 = vpop.f32.mrb[19].mxu1  ;;  %v4392_v43 = vpop.permute.xlu0 %4391 }
 0x3a1   : > { %vm3784_vm14 = vcmp.gt.f32.partialorder %v5241_v39, 0.0  ;;  %v3912_v4 = vmul.f32 0.01, %v5241_v39  ;;  %v5243_v1 = vadd.f32 %v3608_v18, %v7920_v17 }
 0x3a2   : > { %v4039_v0 = vsel %vm3783_vm13, %v5240_v27, %v3911_v6  ;;  %vm3785_vm15 = vcmp.gt.f32.partialorder %v5242_v9, 0.0  ;;  %v3913_v62 = vmul.f32 0.01, %v5242_v9 }
 0x3a3   : > { %v4551_v33 = vmul.f32 %v4372_v46, %v4039_v0  ;;  %v4040_v34 = vsel %vm3784_vm14, %v5241_v39, %v3912_v4  ;;  %vm3786_vm1 = vcmp.gt.f32.partialorder %v5243_v1, 0.0  ;;  %v3914_v60 = vmul.f32 0.01, %v5243_v1  ;;  %v4397_v4 = vpop.permute.xlu1 %4396 }
 0x3a4   : > { %v4552_v15 = vmul.f32 %v4372_v46, %v4040_v34  ;;  %v4041_v56 = vsel %vm3785_vm15, %v5242_v9, %v3913_v62 }
 0x3a5   : > { %v4632_v28 = vadd.f32 %v4631_v61, %v4551_v33  ;;  %v4553_v26 = vmul.f32 %v4377_v11, %v4041_v56  ;;  %v4042_v7 = vsel %vm3786_vm1, %v5243_v1, %v3914_v60  ;;  %v3612_v37 = vpop.f32.mrb[20].mxu1 }
 0x3a6   : > { %v4701_v54 = vadd.f32 %v4700_v16, %v4552_v15  ;;  %v4554_v35 = vmul.f32 %v4377_v11, %v4042_v7  ;;  %v5244_v42 = vadd.f32 %v3612_v37, %v7921_v22  ;;  %v3614_v14 = vpop.f32.mrb[21].mxu1  ;;  %v7925_v15 = vld [vmem:[#allocation62_spill] sm:$0xff] }
 0x3a7   : > { %v4633_v40 = vadd.f32 %v4632_v28, %v4553_v26  ;;  %v5245_v55 = vadd.f32 %v3614_v14, %v7921_v22  ;;  %v3616_v13 = vpop.f32.mrb[22].mxu1  ;;  %v7926_v22 = vld [vmem:[#allocation60_spill] sm:$0xff] }
 0x3a8   : > { %v4702_v29 = vadd.f32 %v4701_v54, %v4554_v35  ;;  %vm3787_vm2 = vcmp.gt.f32.partialorder %v5244_v42, 0.0  ;;  %v3915_v32 = vmul.f32 0.01, %v5244_v42  ;;  %v5246_v30 = vadd.f32 %v3616_v13, %v7922_v57  ;;  %v3618_v10 = vpop.f32.mrb[23].mxu1  ;;  %v4402_v13 = vpop.permute.xlu0 %4401 }
 0x3a9   : > { %vm3788_vm3 = vcmp.gt.f32.partialorder %v5245_v55, 0.0  ;;  %v3916_v47 = vmul.f32 0.01, %v5245_v55  ;;  %v5247_v25 = vadd.f32 %v3618_v10, %v7922_v57 }
 0x3aa   : > { %v4043_v44 = vsel %vm3787_vm2, %v5244_v42, %v3915_v32  ;;  %vm3789_vm4 = vcmp.gt.f32.partialorder %v5246_v30, 0.0  ;;  %v3917_v50 = vmul.f32 0.01, %v5246_v30 }
 0x3ab   : > { %v4555_v59 = vmul.f32 %v4382_v38, %v4043_v44  ;;  %v4044_v3 = vsel %vm3788_vm3, %v5245_v55, %v3916_v47  ;;  %vm3790_vm5 = vcmp.gt.f32.partialorder %v5247_v25, 0.0  ;;  %v3918_v36 = vmul.f32 0.01, %v5247_v25  ;;  %v4407_v47 = vpop.permute.xlu1 %4406 }
 0x3ac   : > { %v4556_v31 = vmul.f32 %v4382_v38, %v4044_v3  ;;  %v4045_v52 = vsel %vm3789_vm4, %v5246_v30, %v3917_v50 }
 0x3ad   : > { %v4634_v45 = vadd.f32 %v4633_v40, %v4555_v59  ;;  %v4557_v51 = vmul.f32 %v4387_v24, %v4045_v52  ;;  %v4046_v8 = vsel %vm3790_vm5, %v5247_v25, %v3918_v36  ;;  %v3622_v21 = vpop.f32.mrb[24].mxu1 }
 0x3ae   : > { %v4703_v58 = vadd.f32 %v4702_v29, %v4556_v31  ;;  %v4558_v41 = vmul.f32 %v4387_v24, %v4046_v8  ;;  %v5248_v49 = vadd.f32 %v3622_v21, %v7923_v20  ;;  %v3624_v63 = vpop.f32.mrb[25].mxu1  ;;  %v7927_v31 = vld [vmem:[#allocation66_spill] sm:$0xff] }
 0x3af   : > { %v4635_v19 = vadd.f32 %v4634_v45, %v4557_v51  ;;  %v5249_v12 = vadd.f32 %v3624_v63, %v7923_v20  ;;  %v3626_v23 = vpop.f32.mrb[26].mxu1  ;;  %v7928_v20 = vld [vmem:[#allocation65_spill] sm:$0xff] }
 0x3b0   : > { %v4704_v48 = vadd.f32 %v4703_v58, %v4558_v41  ;;  %vm3791_vm0 = vcmp.gt.f32.partialorder %v5248_v49, 0.0  ;;  %v3919_v2 = vmul.f32 0.01, %v5248_v49  ;;  %v5250_v27 = vadd.f32 %v3626_v23, %v7924_v5  ;;  %v3628_v53 = vpop.f32.mrb[27].mxu1  ;;  %v4412_v23 = vpop.permute.xlu0 %4411 }
 0x3b1   : > { %vm3792_vm6 = vcmp.gt.f32.partialorder %v5249_v12, 0.0  ;;  %v3920_v61 = vmul.f32 0.01, %v5249_v12  ;;  %v5251_v39 = vadd.f32 %v3628_v53, %v7924_v5 }
 0x3b2   : > { %v4047_v16 = vsel %vm3791_vm0, %v5248_v49, %v3919_v2  ;;  %vm3793_vm7 = vcmp.gt.f32.partialorder %v5250_v27, 0.0  ;;  %v3921_v6 = vmul.f32 0.01, %v5250_v27 }
 0x3b3   : > { %v4559_v17 = vmul.f32 %v4392_v43, %v4047_v16  ;;  %v4048_v9 = vsel %vm3792_vm6, %v5249_v12, %v3920_v61  ;;  %vm3794_vm8 = vcmp.gt.f32.partialorder %v5251_v39, 0.0  ;;  %v3922_v18 = vmul.f32 0.01, %v5251_v39  ;;  %v4417_v61 = vpop.permute.xlu1 %4416 }
 0x3b4   : > { %v4560_v1 = vmul.f32 %v4392_v43, %v4048_v9  ;;  %v4049_v46 = vsel %vm3793_vm7, %v5250_v27, %v3921_v6 }
 0x3b5   : > { %v4636_v0 = vadd.f32 %v4635_v19, %v4559_v17  ;;  %v4561_v62 = vmul.f32 %v4397_v4, %v4049_v46  ;;  %v4050_v33 = vsel %vm3794_vm8, %v5251_v39, %v3922_v18  ;;  %v3632_v34 = vpop.f32.mrb[28].mxu1 }
 0x3b6   : > { %v4705_v60 = vadd.f32 %v4704_v48, %v4560_v1  ;;  %v4562_v11 = vmul.f32 %v4397_v4, %v4050_v33  ;;  %v5252_v56 = vadd.f32 %v3632_v34, %v7925_v15  ;;  %v3634_v28 = vpop.f32.mrb[29].mxu1  ;;  %v7929_v1 = vld [vmem:[#allocation72_spill] sm:$0xff] }
 0x3b7   : > { %v4637_v26 = vadd.f32 %v4636_v0, %v4561_v62  ;;  %v5253_v7 = vadd.f32 %v3634_v28, %v7925_v15  ;;  %v3636_v37 = vpop.f32.mrb[30].mxu1  ;;  %v7930_v15 = vld [vmem:[#allocation71_spill] sm:$0xff] }
 0x3b8   : > { %v4706_v54 = vadd.f32 %v4705_v60, %v4562_v11  ;;  %vm3795_vm9 = vcmp.gt.f32.partialorder %v5252_v56, 0.0  ;;  %v3923_v35 = vmul.f32 0.01, %v5252_v56  ;;  %v5254_v42 = vadd.f32 %v3636_v37, %v7926_v22  ;;  %v3638_v14 = vpop.f32.mrb[31].mxu1  ;;  %v4422_v37 = vpop.permute.xlu0 %4421 }
 0x3b9   : > { %vm3796_vm10 = vcmp.gt.f32.partialorder %v5253_v7, 0.0  ;;  %v3924_v40 = vmul.f32 0.01, %v5253_v7  ;;  %v5255_v55 = vadd.f32 %v3638_v14, %v7926_v22 }
 0x3ba   : > { %v4051_v29 = vsel %vm3795_vm9, %v5252_v56, %v3923_v35  ;;  %vm3797_vm11 = vcmp.gt.f32.partialorder %v5254_v42, 0.0  ;;  %v3925_v32 = vmul.f32 0.01, %v5254_v42 }
 0x3bb   : > { %v4563_v57 = vmul.f32 %v4402_v13, %v4051_v29  ;;  %v4052_v30 = vsel %vm3796_vm10, %v5253_v7, %v3924_v40  ;;  %vm3798_vm12 = vcmp.gt.f32.partialorder %v5255_v55, 0.0  ;;  %v3926_v10 = vmul.f32 0.01, %v5255_v55  ;;  %v4427_v40 = vpop.permute.xlu1 %4426 }
 0x3bc   : > { %v4564_v25 = vmul.f32 %v4402_v13, %v4052_v30  ;;  %v4053_v38 = vsel %vm3797_vm11, %v5254_v42, %v3925_v32 }
 0x3bd   : > { %v4638_v44 = vadd.f32 %v4637_v26, %v4563_v57  ;;  %v4565_v50 = vmul.f32 %v4407_v47, %v4053_v38  ;;  %v4054_v59 = vsel %vm3798_vm12, %v5255_v55, %v3926_v10  ;;  %v3642_v3 = vpop.f32.mrb[32].mxu1 }
 0x3be   : > { %v4707_v36 = vadd.f32 %v4706_v54, %v4564_v25  ;;  %v4566_v24 = vmul.f32 %v4407_v47, %v4054_v59  ;;  %v5256_v52 = vadd.f32 %v3642_v3, %v7927_v31  ;;  %v3644_v45 = vpop.f32.mrb[33].mxu1  ;;  %v7931_v25 = vld [vmem:[#allocation78_spill] sm:$0xff] }
 0x3bf   : > { %v4639_v51 = vadd.f32 %v4638_v44, %v4565_v50  ;;  %v5257_v8 = vadd.f32 %v3644_v45, %v7927_v31  ;;  %v3646_v21 = vpop.f32.mrb[34].mxu1  ;;  %v7932_v31 = vld [vmem:[#allocation76_spill] sm:$0xff] }
 0x3c0   : > { %v4708_v58 = vadd.f32 %v4707_v36, %v4566_v24  ;;  %vm3799_vm13 = vcmp.gt.f32.partialorder %v5256_v52, 0.0  ;;  %v3927_v41 = vmul.f32 0.01, %v5256_v52  ;;  %v5258_v49 = vadd.f32 %v3646_v21, %v7928_v20  ;;  %v3648_v63 = vpop.f32.mrb[35].mxu1  ;;  %v4432_v21 = vpop.permute.xlu0 %4431 }
 0x3c1   : > { %vm3800_vm14 = vcmp.gt.f32.partialorder %v5257_v8, 0.0  ;;  %v3928_v19 = vmul.f32 0.01, %v5257_v8  ;;  %v5259_v12 = vadd.f32 %v3648_v63, %v7928_v20 }
 0x3c2   : > { %v4055_v48 = vsel %vm3799_vm13, %v5256_v52, %v3927_v41  ;;  %vm3801_vm15 = vcmp.gt.f32.partialorder %v5258_v49, 0.0  ;;  %v3929_v2 = vmul.f32 0.01, %v5258_v49 }
 0x3c3   : > { %v4567_v5 = vmul.f32 %v4412_v23, %v4055_v48  ;;  %v4056_v27 = vsel %vm3800_vm14, %v5257_v8, %v3928_v19  ;;  %vm3802_vm1 = vcmp.gt.f32.partialorder %v5259_v12, 0.0  ;;  %v3930_v53 = vmul.f32 0.01, %v5259_v12  ;;  %v4437_v19 = vpop.permute.xlu1 %4436 }
 0x3c4   : > { %v4568_v39 = vmul.f32 %v4412_v23, %v4056_v27  ;;  %v4057_v43 = vsel %vm3801_vm15, %v5258_v49, %v3929_v2 }
 0x3c5   : > { %v4640_v16 = vadd.f32 %v4639_v51, %v4567_v5  ;;  %v4569_v6 = vmul.f32 %v4417_v61, %v4057_v43  ;;  %v4058_v17 = vsel %vm3802_vm1, %v5259_v12, %v3930_v53  ;;  %v3652_v9 = vpop.f32.mrb[36].mxu1 }
 0x3c6   : > { %v4709_v18 = vadd.f32 %v4708_v58, %v4568_v39  ;;  %v4570_v4 = vmul.f32 %v4417_v61, %v4058_v17  ;;  %v5260_v46 = vadd.f32 %v3652_v9, %v7929_v1  ;;  %v3654_v0 = vpop.f32.mrb[37].mxu1  ;;  %v7933_v39 = vld [vmem:[#allocation82_spill] sm:$0xff] }
 0x3c7   : > { %v4641_v62 = vadd.f32 %v4640_v16, %v4569_v6  ;;  %v5261_v33 = vadd.f32 %v3654_v0, %v7929_v1  ;;  %v3656_v34 = vpop.f32.mrb[38].mxu1  ;;  %v7934_v1 = vld [vmem:[#allocation80_spill] sm:$0xff] }
 0x3c8   : > { %v4710_v60 = vadd.f32 %v4709_v18, %v4570_v4  ;;  %vm3803_vm2 = vcmp.gt.f32.partialorder %v5260_v46, 0.0  ;;  %v3931_v11 = vmul.f32 0.01, %v5260_v46  ;;  %v5262_v56 = vadd.f32 %v3656_v34, %v7930_v15  ;;  %v3658_v28 = vpop.f32.mrb[39].mxu1  ;;  %v4442_v34 = vpop.permute.xlu0 %4441 }
 0x3c9   : > { %vm3804_vm3 = vcmp.gt.f32.partialorder %v5261_v33, 0.0  ;;  %v3932_v26 = vmul.f32 0.01, %v5261_v33  ;;  %v5263_v7 = vadd.f32 %v3658_v28, %v7930_v15 }
 0x3ca   : > { %v4059_v54 = vsel %vm3803_vm2, %v5260_v46, %v3931_v11  ;;  %vm3805_vm4 = vcmp.gt.f32.partialorder %v5262_v56, 0.0  ;;  %v3933_v35 = vmul.f32 0.01, %v5262_v56 }
 0x3cb   : > { %v4571_v22 = vmul.f32 %v4422_v37, %v4059_v54  ;;  %v4060_v42 = vsel %vm3804_vm3, %v5261_v33, %v3932_v26  ;;  %vm3806_vm5 = vcmp.gt.f32.partialorder %v5263_v7, 0.0  ;;  %v3934_v14 = vmul.f32 0.01, %v5263_v7  ;;  %v4447_v26 = vpop.permute.xlu1 %4446 }
 0x3cc   : > { %v4572_v55 = vmul.f32 %v4422_v37, %v4060_v42  ;;  %v4061_v13 = vsel %vm3805_vm4, %v5262_v56, %v3933_v35 }
 0x3cd   : > { %v4642_v29 = vadd.f32 %v4641_v62, %v4571_v22  ;;  %v4573_v32 = vmul.f32 %v4427_v40, %v4061_v13  ;;  %v4062_v57 = vsel %vm3806_vm5, %v5263_v7, %v3934_v14  ;;  %v3662_v30 = vpop.f32.mrb[40].mxu1 }
 0x3ce   : > { %v4711_v10 = vadd.f32 %v4710_v60, %v4572_v55  ;;  %v4574_v47 = vmul.f32 %v4427_v40, %v4062_v57  ;;  %v5264_v38 = vadd.f32 %v3662_v30, %v7931_v25  ;;  %v3664_v44 = vpop.f32.mrb[41].mxu1  ;;  %v7935_v55 = vld [vmem:[#allocation86_spill] sm:$0xff] }
 0x3cf   : > { %v4643_v50 = vadd.f32 %v4642_v29, %v4573_v32  ;;  %v5265_v59 = vadd.f32 %v3664_v44, %v7931_v25  ;;  %v3666_v3 = vpop.f32.mrb[42].mxu1  ;;  %v7936_v25 = vld [vmem:[#allocation85_spill] sm:$0xff] }
 0x3d0   : > { %v4712_v36 = vadd.f32 %v4711_v10, %v4574_v47  ;;  %vm3807_vm0 = vcmp.gt.f32.partialorder %v5264_v38, 0.0  ;;  %v3935_v24 = vmul.f32 0.01, %v5264_v38  ;;  %v5266_v52 = vadd.f32 %v3666_v3, %v7932_v31  ;;  %v3668_v45 = vpop.f32.mrb[43].mxu1  ;;  %v4452_v3 = vpop.permute.xlu0 %4451 }
 0x3d1   : > { %vm3808_vm6 = vcmp.gt.f32.partialorder %v5265_v59, 0.0  ;;  %v3936_v51 = vmul.f32 0.01, %v5265_v59  ;;  %v5267_v8 = vadd.f32 %v3668_v45, %v7932_v31 }
 0x3d2   : > { %v4063_v58 = vsel %vm3807_vm0, %v5264_v38, %v3935_v24  ;;  %vm3809_vm7 = vcmp.gt.f32.partialorder %v5266_v52, 0.0  ;;  %v3937_v41 = vmul.f32 0.01, %v5266_v52 }
 0x3d3   : > { %v4575_v20 = vmul.f32 %v4432_v21, %v4063_v58  ;;  %v4064_v49 = vsel %vm3808_vm6, %v5265_v59, %v3936_v51  ;;  %vm3810_vm8 = vcmp.gt.f32.partialorder %v5267_v8, 0.0  ;;  %v3938_v63 = vmul.f32 0.01, %v5267_v8  ;;  %v4457_v51 = vpop.permute.xlu1 %4456 }
 0x3d4   : > { %v4576_v12 = vmul.f32 %v4432_v21, %v4064_v49  ;;  %v4065_v23 = vsel %vm3809_vm7, %v5266_v52, %v3937_v41 }
 0x3d5   : > { %v4644_v48 = vadd.f32 %v4643_v50, %v4575_v20  ;;  %v4577_v2 = vmul.f32 %v4437_v19, %v4065_v23  ;;  %v4066_v5 = vsel %vm3810_vm8, %v5267_v8, %v3938_v63  ;;  %v3672_v27 = vpop.f32.mrb[44].mxu1 }
 0x3d6   : > { %v4713_v53 = vadd.f32 %v4712_v36, %v4576_v12  ;;  %v4578_v61 = vmul.f32 %v4437_v19, %v4066_v5  ;;  %v5268_v43 = vadd.f32 %v3672_v27, %v7933_v39  ;;  %v3674_v16 = vpop.f32.mrb[45].mxu1 }
 0x3d7   : > { %v4645_v6 = vadd.f32 %v4644_v48, %v4577_v2  ;;  %v5269_v17 = vadd.f32 %v3674_v16, %v7933_v39  ;;  %v3676_v9 = vpop.f32.mrb[46].mxu1 }
 0x3d8   : > { %v4714_v18 = vadd.f32 %v4713_v53, %v4578_v61  ;;  %vm3811_vm9 = vcmp.gt.f32.partialorder %v5268_v43, 0.0  ;;  %v3939_v4 = vmul.f32 0.01, %v5268_v43  ;;  %v5270_v46 = vadd.f32 %v3676_v9, %v7934_v1  ;;  %v3678_v0 = vpop.f32.mrb[47].mxu1 }
 0x3d9   : > { %vm3812_vm10 = vcmp.gt.f32.partialorder %v5269_v17, 0.0  ;;  %v3940_v62 = vmul.f32 0.01, %v5269_v17  ;;  %v5271_v33 = vadd.f32 %v3678_v0, %v7934_v1  ;;  %v5660_v61 = vmov 1966171168  }
 0x3da   : > { %v4067_v60 = vsel %vm3811_vm9, %v5268_v43, %v3939_v4  ;;  %vm3813_vm11 = vcmp.gt.f32.partialorder %v5270_v46, 0.0  ;;  %v3941_v11 = vmul.f32 0.01, %v5270_v46  ;;  %v4733_v39 = vunpack.c.l.s4 %v5660_v61 }
 0x3db   : > { %v4579_v15 = vmul.f32 %v4442_v34, %v4067_v60  ;;  %v4068_v56 = vsel %vm3812_vm10, %v5269_v17, %v3940_v62  ;;  %vm3814_vm12 = vcmp.gt.f32.partialorder %v5271_v33, 0.0  ;;  %v3942_v28 = vmul.f32 0.01, %v5271_v33 }
 0x3dc   : > { %v4580_v7 = vmul.f32 %v4442_v34, %v4068_v56  ;;  %v4069_v37 = vsel %vm3813_vm11, %v5270_v46, %v3941_v11  ;;  %v4735_v43 = vlaneseq  ;;  %v4734_v4 = vunpack.c.0.s8 %v4733_v39 }
 0x3dd   : > { %v4646_v54 = vadd.f32 %v4645_v6, %v4579_v15  ;;  %v4581_v35 = vmul.f32 %v4447_v26, %v4069_v37  ;;  %v4070_v22 = vsel %vm3814_vm12, %v5271_v33, %v3942_v28  ;;  %v3682_v42 = vpop.f32.mrb[48].mxu1 }
 0x3de   : > { %v4715_v14 = vadd.f32 %v4714_v18, %v4580_v7  ;;  %v4582_v40 = vmul.f32 %v4447_v26, %v4070_v22  ;;  %v5272_v13 = vadd.f32 %v3682_v42, %v7935_v55  ;;  %v3684_v29 = vpop.f32.mrb[49].mxu1  ;;  %v4726_v18 = vstv %s4725_s10 }
 0x3df   : > { %v4647_v32 = vadd.f32 %v4646_v54, %v4581_v35  ;;  %v5273_v57 = vadd.f32 %v3684_v29, %v7935_v55  ;;  %v3686_v30 = vpop.f32.mrb[50].mxu1  ;;  %v4736_v1 = vshrl.u32 %v4735_v43, 7  ;;  %vm4749_vm2 = vcmp.lt.s32.totalorder %v4735_v43, 256 }
 0x3e0   : > { %v4716_v10 = vadd.f32 %v4715_v14, %v4582_v40  ;;  %vm3815_vm13 = vcmp.gt.f32.partialorder %v5272_v13, 0.0  ;;  %v3943_v47 = vmul.f32 0.01, %v5272_v13  ;;  %v5274_v38 = vadd.f32 %v3686_v30, %v7936_v25  ;;  %v3688_v44 = vpop.f32.mrb[51].mxu1 }
 0x3e1   : > { %vm3816_vm14 = vcmp.gt.f32.partialorder %v5273_v57, 0.0  ;;  %v3944_v50 = vmul.f32 0.01, %v5273_v57  ;;  %v5275_v59 = vadd.f32 %v3688_v44, %v7936_v25  ;;  %v4737_v34 = vsub.s32 %v4734_v4, %v4736_v1 }
 0x3e2   : > { %v4071_v36 = vsel %vm3815_vm13, %v5272_v13, %v3943_v47  ;;  %vm3817_vm15 = vcmp.gt.f32.partialorder %v5274_v38, 0.0  ;;  %v3945_v24 = vmul.f32 0.01, %v5274_v38 }
 0x3e3   : > { %v4583_v31 = vmul.f32 %v4452_v3, %v4071_v36  ;;  %v4072_v52 = vsel %vm3816_vm14, %v5273_v57, %v3944_v50  ;;  %vm3818_vm1 = vcmp.gt.f32.partialorder %v5275_v59, 0.0  ;;  %v3946_v45 = vmul.f32 0.01, %v5275_v59 }
 0x3e4   : > { %v4584_v8 = vmul.f32 %v4452_v3, %v4072_v52  ;;  %v4073_v21 = vsel %vm3817_vm15, %v5274_v38, %v3945_v24 }
 0x3e5   : > { %v4648_v58 = vadd.f32 %v4647_v32, %v4583_v31  ;;  %v4585_v41 = vmul.f32 %v4457_v51, %v4073_v21  ;;  %v4074_v20 = vsel %vm3818_vm1, %v5275_v59, %v3946_v45 }
 0x3e6   : > { %v4717_v49 = vadd.f32 %v4716_v10, %v4584_v8  ;;  %v4586_v63 = vmul.f32 %v4457_v51, %v4074_v20 }
 0x3e7   : > { %v4649_v19 = vadd.f32 %v4648_v58, %v4585_v41 }
 0x3e8   : > { %v4718_v12 = vadd.f32 %v4717_v49, %v4586_v63 }
 0x3e9   : > { %v4650_v23 = vrot.slane %v4649_v19, 4 }
 0x3ea   : > { %v4719_v48 = vrot.slane %v4718_v12, 4 }
 0x3eb   : > { %v4651_v2 = vadd.f32 %v4650_v23, %v4649_v19 }
 0x3ec   : > { %v4720_v5 = vadd.f32 %v4719_v48, %v4718_v12 }
 0x3ed   : > { %v4652_v27 = vrot.slane %v4651_v2, 2 }
 0x3ee   : > { %v4721_v53 = vrot.slane %v4720_v5, 2 }
 0x3ef   : > { %v4653_v16 = vadd.f32 %v4652_v27, %v4651_v2 }
 0x3f0   : > { %v4722_v6 = vadd.f32 %v4721_v53, %v4720_v5 }
 0x3f1   : > { %v4654_v17 = vrot.slane %v4653_v16, 1 }
 0x3f2   : > { %v4723_v9 = vrot.slane %v4722_v6, 1 }
 0x3f3   : > { %v4655_v46 = vadd.f32 %v4654_v17, %v4653_v16 }
 0x3f4   : > { %v4724_v0 = vadd.f32 %v4723_v9, %v4722_v6 }
 0x3f5   : > { %v4727_v62 = vadd.f32 %v4726_v18, %v4655_v46 }
 0x3f6   : > { %v4728_v33 = vadd.f32 %v4726_v18, %v4724_v0 }
 0x3f8   : > { %v4731_v60 = vcombine.low %v4727_v62, %v4728_v33 }
 0x3fa   : > { %v4738_v11 = vrot.slane %v4731_v60, %v4737_v34 }
 0x3fc   : > { %v4745_v15 = vrot.slane %v4738_v11, %v4737_v34 }
 0x3fe   : > { %4751 = vst.msk [vmem:[%s311_s16] sm:$0x3] %vm4749_vm2, %v4745_v15 }
 0x3ff   : > { %5608 = shalt.err (!%p5605_p5)
}
 0x400   : > { %s5609_s25 = scalar_lea.hbm %s7648_s20, 32  ;;  %s5613_s10 = scalar_lea.hbm %s7699_s7, 64 }
 0x401   : > { %p5610_p7 = scmp.ne.s32.totalorder %s7648_s20, %s5609_s25  ;;  %p5614_p12 = scmp.lt.u32.totalorder %s7648_s20, %s7699_s7 }
 0x402   : > { %p5615_p13 = scmp.lt.u32.totalorder %s5613_s10, %s5609_s25  ;;  %p5617_p1 = scmp.lt.u32.totalorder %s5609_s25, %s7648_s20 }
 0x403   : > { %p5611_p10 = pnand %p5610_p7, %p5743_p6 }
 0x404   : > { %p5616_p0 = por %p5615_p13, %p5614_p12 }
 0x405   : > { %p5612_p11 = pneg %p5611_p10 }
 0x406   : > { %p5618_p2 = por %p5617_p1, %p5616_p0 }
 0x408   : > { %p5619_p3 = pnand %p5618_p2, %p5612_p11 }
 0x40a   : > { %5622 = shalt.err (!%p5619_p3)
}
 0x40b   : > { %5328 = dma.vmem_to_hbm [thread:$0]  (%p5743_p6), %s7650_s17, 32, %s7648_s20, %s4753_s21  }
 0x40c PF: > { %s4779_s16 = sand.u32 1, %s5645_s26   ;;  %p5331_p4 = pnand %p4834_p9, %p5747_p8 }
 0x40d   : > { %s4780_s18 = scalar_lea.sflag [#allocation5], %s4779_s16 }
 0x40e   : > { %5640 = dma.done.wait (!%p5331_p4), %s4780_s18, 32  }
 0x40f   : > { %5642 = vsyncadd (!%p5331_p4), %s4780_s18, 4294967264  ;;  %p18_p5 = scmp.ge.s32.totalorder %s5728_s8, 4   ;;  %s7937_s26 = smov %s5649_s27 }
 0x410   : > { %s7938_s27 = smov %s5653_s28  ;;  %s7939_s28 = smov %s5741_s11 }
 0x411   : > { %s7940_s29 = smov %s5728_s8  ;;  %20 = sbr.rel (!%p18_p5) target bundleno = 5 (0x5), region = 111 }
 0x418   :  { %4785 = vsyncpa [#allocation5], 1 }
 0x419   :  { %4787 = vsyncpa [#allocation5 + $0x1], 1 }

</bundles_post_ra>
